<compile_context>
chip_gen: v5e
topology: v5e:2x2
jax: 0.10.0
libtpu: 0.0.40
codegen_flags: <defaults>
</compile_context>

<pallas_src>
import numpy as np

import jax
import jax.numpy as jnp
from jax.experimental import pallas as pl
from jax.experimental.pallas import tpu as pltpu


# ---------------------------------------------------------------------------
# Fused LeNet-5 kernel (B_TILE images per grid step)
# ---------------------------------------------------------------------------
def _lenet5_kernel(x_ref, w1_ref, b1_ref, rp1_ref, cp1_ref,
                   w2_ref, b2_ref, rp2_ref, cp2_ref,
                   w3_ref, b3_ref, w4_ref, b4_ref, w5_ref, b5_ref,
                   out_ref):
    f32, bf16 = jnp.float32, jnp.bfloat16

    def sig(v):
        # sigmoid with the divide on the EUP (approx reciprocal), not the VPU.
        return pl.reciprocal(1.0 + jnp.exp(-v), approx=True)

    k = w1_ref.shape[0]                                   # 5

    # ---- conv1 + sigmoid over the whole batch tile (rows stacked per image).
    m1 = rp1_ref.shape[1]                                 # b_tile*32 - 4
    xv = x_ref[...]                                       # (b_tile*32, 32*cin)
    acc1 = jnp.dot(xv[0:m1, :].astype(bf16), w1_ref[0],
                   preferred_element_type=f32)
    for di in range(1, k):
        acc1 = acc1 + jnp.dot(xv[di:di + m1, :].astype(bf16), w1_ref[di],
                              preferred_element_type=f32)
    a1 = sig(acc1 + b1_ref[...])                          # (m1, 28*6)

    # ---- pool1: 0.25 * RP1 @ a1 @ CP1  (2x2 / stride-2 average pool).
    p1 = 0.25 * jnp.dot(
        jnp.dot(rp1_ref[...], a1.astype(bf16),
                preferred_element_type=f32).astype(bf16),
        cp1_ref[...], preferred_element_type=f32)         # (b_tile*14, 14*6)

    # ---- conv2 + sigmoid.
    m2 = rp2_ref.shape[1]                                 # b_tile*14 - 4
    acc2 = jnp.dot(p1[0:m2, :].astype(bf16), w2_ref[0],
                   preferred_element_type=f32)
    for di in range(1, k):
        acc2 = acc2 + jnp.dot(p1[di:di + m2, :].astype(bf16), w2_ref[di],
                              preferred_element_type=f32)
    a2 = sig(acc2 + b2_ref[...])                          # (m2, 10*16)

    # ---- pool2 (pool-row-major so fc3 sees contiguous (b_tile, 80) slabs).
    p2 = 0.25 * jnp.dot(
        jnp.dot(rp2_ref[...], a2.astype(bf16),
                preferred_element_type=f32).astype(bf16),
        cp2_ref[...], preferred_element_type=f32)         # (5*b_tile, 5*16)

    # ---- fc3 + sigmoid: batched across the image tile; the torch NCHW
    #      flatten order is folded into w3 at init (split per pooled row).
    bt = out_ref.shape[0]                                 # b_tile
    r3 = jnp.dot(p2[0:bt, :].astype(bf16), w3_ref[0],
                 preferred_element_type=f32)
    for i in range(1, w3_ref.shape[0]):                   # 5 pooled rows
        r3 = r3 + jnp.dot(p2[i * bt:(i + 1) * bt, :].astype(bf16), w3_ref[i],
                          preferred_element_type=f32)
    x3 = sig(r3 + b3_ref[...])                            # (b_tile, 120)

    # ---- fc4 + sigmoid, fc5 (fc5 padded to 128 lanes -> dense output store).
    x4 = sig(jnp.dot(x3.astype(bf16), w4_ref[...],
                     preferred_element_type=f32) + b4_ref[...])    # (b_tile, 84)
    x5 = jnp.dot(x4.astype(bf16), w5_ref[...],
                 preferred_element_type=f32) + b5_ref[...]         # (b_tile, 128)
    out_ref[...] = x5.astype(out_ref.dtype)


# ---------------------------------------------------------------------------
# One-time (init-time) parameter preparation
# ---------------------------------------------------------------------------
def _band_conv_weight(w, w_in, w_out):
    """torch conv weight (O, C, k, k) -> (k, w_in*C, w_out*O) banded matrices.

    With activations laid out as act[row, col*C + c], conv output row i is
    sum_di act[i + di, :] @ band[di], i.e. out[i, j*O + o] = conv(x, w)[o, i, j].
    """
    w = np.asarray(w, np.float32)
    o_ch, c_ch, k, _ = w.shape
    band = np.zeros((k, w_in * c_ch, w_out * o_ch), np.float32)
    for di in range(k):
        for j in range(w_out):
            for dj in range(k):
                jp = j + dj
                band[di, jp * c_ch:(jp + 1) * c_ch,
                     j * o_ch:(j + 1) * o_ch] = w[:, :, di, dj].T
    return band


def _row_pool_stacked(b_tile, row_stride, h_valid, m_in, image_major):
    """Row half of a 2x2 avg pool on the batch-row-stacked conv output.

    Image b's conv-output row i lives at stacked row b*row_stride + i (only
    i < h_valid is meaningful).  Output row (b*h_out + i) if image_major else
    (i*b_tile + b) sums the two conv rows 2i, 2i+1 of image b.
    """
    h_out = h_valid // 2
    r = np.zeros((b_tile * h_out, m_in), np.float32)
    for b in range(b_tile):
        for i in range(h_out):
            row = b * h_out + i if image_major else i * b_tile + b
            r[row, b * row_stride + 2 * i] = 1.0
            r[row, b * row_stride + 2 * i + 1] = 1.0
    return r


def _col_pool(w_in, c_ch):
    """Column half of the 2x2 avg pool on the (col*C + c) layout."""
    c = np.zeros((w_in * c_ch, (w_in // 2) * c_ch), np.float32)
    for j in range(w_in // 2):
        for t in (0, 1):
            for ch in range(c_ch):
                c[(2 * j + t) * c_ch + ch, j * c_ch + ch] = 1.0
    return c


def init_params(key, in_channels=1, out_channels=10):
    """PyTorch-style LeNet-5 parameters (same init scheme as nn.Conv2d/Linear)."""
    def uniform(k, shape, fan_in):
        bound = 1.0 / np.sqrt(fan_in)
        return jax.random.uniform(k, shape, jnp.float32, -bound, bound)

    ks = jax.random.split(key, 10)
    return {
        "conv1_w": uniform(ks[0], (6, in_channels, 5, 5), in_channels * 25),
        "conv1_b": uniform(ks[1], (6,), in_channels * 25),
        "conv2_w": uniform(ks[2], (16, 6, 5, 5), 6 * 25),
        "conv2_b": uniform(ks[3], (16,), 6 * 25),
        "fc3_w": uniform(ks[4], (120, 400), 400),   # torch Linear: (out, in)
        "fc3_b": uniform(ks[5], (120,), 400),
        "fc4_w": uniform(ks[6], (84, 120), 120),
        "fc4_b": uniform(ks[7], (84,), 120),
        "fc5_w": uniform(ks[8], (out_channels, 84), 84),
        "fc5_b": uniform(ks[9], (out_channels,), 84),
    }


def prepare_kernel_params(p, height=28, width=28, b_tile=8):
    """Convert torch-layout LeNet-5 parameters into the fused-kernel operands."""
    k, pad = 5, 2
    o1, o2 = p["conv1_w"].shape[0], p["conv2_w"].shape[0]            # 6, 16
    hp_in, wp_in = height + 2 * pad, width + 2 * pad                 # 32, 32
    ho1, wo1 = hp_in - k + 1, wp_in - k + 1                          # 28, 28
    hp1, wp1 = ho1 // 2, wo1 // 2                                    # 14, 14
    ho2, wo2 = hp1 - k + 1, wp1 - k + 1                              # 10, 10
    hp2, wp2 = ho2 // 2, wo2 // 2                                    # 5, 5

    m1 = b_tile * hp_in - (k - 1)                                    # 252
    m2 = b_tile * hp1 - (k - 1)                                      # 108

    rp1 = _row_pool_stacked(b_tile, hp_in, ho1, m1, image_major=True)
    rp2 = _row_pool_stacked(b_tile, hp1, ho2, m2, image_major=False)
    cp1 = _col_pool(wo1, o1)
    cp2 = _col_pool(wo2, o2)

    # Fold the NCHW flatten order into fc3, split per pooled spatial row:
    # block i multiplies p2 rows [i*b_tile, (i+1)*b_tile).
    n_fc3 = p["fc3_w"].shape[0]
    w3 = np.asarray(p["fc3_w"], np.float32).reshape(n_fc3, o2, hp2, wp2)
    w3 = w3.transpose(2, 3, 1, 0).reshape(hp2, wp2 * o2, n_fc3)      # (5, 80, 120)

    # fc5 padded to 128 output lanes so the output store is lane-dense.
    n_out = p["fc5_w"].shape[0]
    n_fc4 = p["fc4_w"].shape[0]
    n_out_pad = max(128, -(-n_out // 128) * 128)
    w5 = np.zeros((n_fc4, n_out_pad), np.float32)
    w5[:, :n_out] = np.asarray(p["fc5_w"], np.float32).T
    b5 = np.zeros((1, n_out_pad), np.float32)
    b5[0, :n_out] = np.asarray(p["fc5_b"], np.float32)

    bf = jnp.bfloat16   # MXU-native operands; accumulation stays f32 in-kernel.
    return {
        "w1": jnp.asarray(_band_conv_weight(p["conv1_w"], wp_in, wo1), bf),
        "b1": jnp.asarray(np.tile(np.asarray(p["conv1_b"], np.float32), wo1)[None, :]),
        "rp1": jnp.asarray(rp1, bf), "cp1": jnp.asarray(cp1, bf),
        "w2": jnp.asarray(_band_conv_weight(p["conv2_w"], wp1, wo2), bf),
        "b2": jnp.asarray(np.tile(np.asarray(p["conv2_b"], np.float32), wo2)[None, :]),
        "rp2": jnp.asarray(rp2, bf), "cp2": jnp.asarray(cp2, bf),
        "w3": jnp.asarray(w3, bf),
        "b3": jnp.asarray(np.asarray(p["fc3_b"], np.float32)[None, :]),
        "w4": jnp.asarray(np.asarray(p["fc4_w"], np.float32).T, bf),
        "b4": jnp.asarray(np.asarray(p["fc4_b"], np.float32)[None, :]),
        "w5": jnp.asarray(w5, bf),
        "b5": jnp.asarray(b5),
    }


# ---------------------------------------------------------------------------
# Forward wrapper: one pallas_call for the whole network, tiled over the batch
# ---------------------------------------------------------------------------
_WEIGHT_ORDER = ("w1", "b1", "rp1", "cp1", "w2", "b2", "rp2", "cp2",
                 "w3", "b3", "w4", "b4", "w5", "b5")


def _const_spec(a):
    if a.ndim == 3:
        return pl.BlockSpec(a.shape, lambda t: (0, 0, 0))
    return pl.BlockSpec(a.shape, lambda t: (0, 0))


def lenet5_forward(x, kp, *, n_out=10):
    """x: (B, Cin, 28, 28) float32 NCHW -> logits (B, n_out)."""
    B, cin, H, W = x.shape
    pad, k = 2, 5
    hp, wp = H + 2 * pad, W + 2 * pad
    h_pool1 = (hp - k + 1) // 2
    b_tile = kp["rp1"].shape[0] // h_pool1               # images per grid step

    # Pad the batch to a multiple of b_tile (tail images discarded after).
    bp = -(-B // b_tile) * b_tile
    xpad = jnp.pad(x, ((0, bp - B), (0, 0), (pad, pad), (pad, pad)))
    if cin == 1:
        x2d = xpad.reshape(bp * hp, wp)                  # no transpose needed
    else:
        x2d = xpad.transpose(0, 2, 3, 1).reshape(bp * hp, wp * cin)

    weights = [kp[name] for name in _WEIGHT_ORDER]
    n_out_pad = kp["w5"].shape[1]
    nt = bp // b_tile

    in_specs = [pl.BlockSpec((b_tile * hp, wp * cin), lambda t: (t, 0))]
    in_specs += [_const_spec(a) for a in weights]

    out = pl.pallas_call(
        _lenet5_kernel,
        grid=(nt,),
        in_specs=in_specs,
        out_specs=pl.BlockSpec((b_tile, n_out_pad), lambda t: (t, 0)),
        out_shape=jax.ShapeDtypeStruct((bp, n_out_pad), jnp.float32),
        compiler_params=pltpu.CompilerParams(
            dimension_semantics=("parallel",)),
    )(x2d, *weights)
    return out[:B, :n_out]


# ---------------------------------------------------------------------------
# Plain-XLA reference of the PyTorch module (for a numerical self-check)
# ---------------------------------------------------------------------------
def _reference_forward(x, p):
    hi = jax.lax.Precision.HIGHEST

    def conv(t, w, b, pad):
        out = jax.lax.conv_general_dilated(
            t, w, window_strides=(1, 1), padding=[(pad, pad), (pad, pad)],
            dimension_numbers=("NCHW", "OIHW", "NCHW"), precision=hi)
        return out + b[None, :, None, None]

    def pool(t):
        bsz, c, h, w = t.shape
        return t.reshape(bsz, c, h // 2, 2, w // 2, 2).mean(axis=(3, 5))

    x1 = pool(jax.nn.sigmoid(conv(x, p["conv1_w"], p["conv1_b"], 2)))
    x2 = pool(jax.nn.sigmoid(conv(x1, p["conv2_w"], p["conv2_b"], 0)))
    x3 = jax.nn.sigmoid(x2.reshape(x2.shape[0], -1) @ p["fc3_w"].T + p["fc3_b"])
    x4 = jax.nn.sigmoid(x3 @ p["fc4_w"].T + p["fc4_b"])
    return x4 @ p["fc5_w"].T + p["fc5_b"]


if __name__ == "__main__":
    key = jax.random.PRNGKey(0)
    k_param, k_x = jax.random.split(key)
    params = init_params(k_param, in_channels=1, out_channels=10)
    kparams = prepare_kernel_params(params, b_tile=8)

    # LeNet-5 geometry requires 28x28 input (fc3 expects 16*5*5 = 400 features).
    # B=16 with b_tile=8 -> grid of 2 "parallel" tiles (both v7x TensorCores busy).
    x = jax.random.normal(k_x, (16, 1, 28, 28), jnp.float32)

    out = jax.block_until_ready(jax.jit(lenet5_forward)(x, kparams))
    assert out.shape == (16, 10) and out.dtype == jnp.float32
    assert bool(jnp.all(jnp.isfinite(out)))

    # Numerical self-check vs. a plain-XLA f32 implementation of the module.
    # Tolerance accounts for bf16 MXU operands + approx-reciprocal sigmoid.
    ref = jax.block_until_ready(_reference_forward(x, params))
    max_err = float(jnp.max(jnp.abs(out - ref)))
    assert max_err < 3e-2, f"mismatch vs reference: max_err={max_err}"

    print("KERNEL_OK")
</pallas_src>

<mosaic_0001>
module attributes {stable_mosaic.version = 11 : i64} {
  func.func @_lenet5_kernel(%arg0: i32, %arg1: memref<256x32xf32, #tpu.memory_space<vmem>>, %arg2: memref<5x32x168xbf16, #tpu.memory_space<vmem>>, %arg3: memref<1x168xf32, #tpu.memory_space<vmem>>, %arg4: memref<112x252xbf16, #tpu.memory_space<vmem>>, %arg5: memref<168x84xbf16, #tpu.memory_space<vmem>>, %arg6: memref<5x84x160xbf16, #tpu.memory_space<vmem>>, %arg7: memref<1x160xf32, #tpu.memory_space<vmem>>, %arg8: memref<40x108xbf16, #tpu.memory_space<vmem>>, %arg9: memref<160x80xbf16, #tpu.memory_space<vmem>>, %arg10: memref<5x80x120xbf16, #tpu.memory_space<vmem>>, %arg11: memref<1x120xf32, #tpu.memory_space<vmem>>, %arg12: memref<120x84xbf16, #tpu.memory_space<vmem>>, %arg13: memref<1x84xf32, #tpu.memory_space<vmem>>, %arg14: memref<84x128xbf16, #tpu.memory_space<vmem>>, %arg15: memref<1x128xf32, #tpu.memory_space<vmem>>, %arg16: memref<8x128xf32, #tpu.memory_space<vmem>>) attributes {dimension_semantics = [#tpu.dimension_semantics<parallel>], iteration_bounds = array<i64: 2>, scalar_prefetch = 0 : i64, scratch_operands = 0 : i64, tpu.core_type = #tpu.core_type<tc>, window_params = [{transform_indices = @transform_0, window_bounds = array<i64: 256, 32>}, {pipeline_mode = #tpu.pipeline_mode<synchronous>, transform_indices = @transform_1, window_bounds = array<i64: 5, 32, 168>}, {pipeline_mode = #tpu.pipeline_mode<synchronous>, transform_indices = @transform_2, window_bounds = array<i64: 1, 168>}, {pipeline_mode = #tpu.pipeline_mode<synchronous>, transform_indices = @transform_3, window_bounds = array<i64: 112, 252>}, {pipeline_mode = #tpu.pipeline_mode<synchronous>, transform_indices = @transform_4, window_bounds = array<i64: 168, 84>}, {pipeline_mode = #tpu.pipeline_mode<synchronous>, transform_indices = @transform_5, window_bounds = array<i64: 5, 84, 160>}, {pipeline_mode = #tpu.pipeline_mode<synchronous>, transform_indices = @transform_6, window_bounds = array<i64: 1, 160>}, {pipeline_mode = #tpu.pipeline_mode<synchronous>, transform_indices = @transform_7, window_bounds = array<i64: 40, 108>}, {pipeline_mode = #tpu.pipeline_mode<synchronous>, transform_indices = @transform_8, window_bounds = array<i64: 160, 80>}, {pipeline_mode = #tpu.pipeline_mode<synchronous>, transform_indices = @transform_9, window_bounds = array<i64: 5, 80, 120>}, {pipeline_mode = #tpu.pipeline_mode<synchronous>, transform_indices = @transform_10, window_bounds = array<i64: 1, 120>}, {pipeline_mode = #tpu.pipeline_mode<synchronous>, transform_indices = @transform_11, window_bounds = array<i64: 120, 84>}, {pipeline_mode = #tpu.pipeline_mode<synchronous>, transform_indices = @transform_12, window_bounds = array<i64: 1, 84>}, {pipeline_mode = #tpu.pipeline_mode<synchronous>, transform_indices = @transform_13, window_bounds = array<i64: 84, 128>}, {pipeline_mode = #tpu.pipeline_mode<synchronous>, transform_indices = @transform_14, window_bounds = array<i64: 1, 128>}, {transform_indices = @transform_15, window_bounds = array<i64: 8, 128>}]} {
    %c0 = arith.constant 0 : index
    %c0_0 = arith.constant 0 : index
    %0 = vector.load %arg1[%c0, %c0_0] : memref<256x32xf32, #tpu.memory_space<vmem>>, vector<256x32xf32>
    %1 = vector.extract_strided_slice %0 {offsets = [0, 0], sizes = [252, 32], strides = [1, 1]} : vector<256x32xf32> to vector<252x32xf32>
    %2 = arith.truncf %1 : vector<252x32xf32> to vector<252x32xbf16>
    %c0_1 = arith.constant 0 : index
    %c0_2 = arith.constant 0 : index
    %c0_3 = arith.constant 0 : index
    %3 = vector.load %arg2[%c0_1, %c0_2, %c0_3] : memref<5x32x168xbf16, #tpu.memory_space<vmem>>, vector<1x32x168xbf16>
    %4 = vector.shape_cast %3 : vector<1x32x168xbf16> to vector<32x168xbf16>
    %cst = arith.constant dense<0.000000e+00> : vector<252x168xf32>
    %5 = tpu.matmul %2, %4, %cst {dimension_numbers = #tpu.dot_dimension_numbers<[1], [0], [0], [1], [0, 0, 1, 1], [], []>} : vector<252x32xbf16>, vector<32x168xbf16>, vector<252x168xf32> -> vector<252x168xf32>
    %6 = vector.extract_strided_slice %0 {offsets = [1, 0], sizes = [252, 32], strides = [1, 1]} : vector<256x32xf32> to vector<252x32xf32>
    %7 = arith.truncf %6 : vector<252x32xf32> to vector<252x32xbf16>
    %c1 = arith.constant 1 : index
    %c0_4 = arith.constant 0 : index
    %c0_5 = arith.constant 0 : index
    %8 = vector.load %arg2[%c1, %c0_4, %c0_5] : memref<5x32x168xbf16, #tpu.memory_space<vmem>>, vector<1x32x168xbf16>
    %9 = vector.shape_cast %8 : vector<1x32x168xbf16> to vector<32x168xbf16>
    %cst_6 = arith.constant dense<0.000000e+00> : vector<252x168xf32>
    %10 = tpu.matmul %7, %9, %cst_6 {dimension_numbers = #tpu.dot_dimension_numbers<[1], [0], [0], [1], [0, 0, 1, 1], [], []>} : vector<252x32xbf16>, vector<32x168xbf16>, vector<252x168xf32> -> vector<252x168xf32>
    %11 = arith.addf %5, %10 : vector<252x168xf32>
    %12 = vector.extract_strided_slice %0 {offsets = [2, 0], sizes = [252, 32], strides = [1, 1]} : vector<256x32xf32> to vector<252x32xf32>
    %13 = arith.truncf %12 : vector<252x32xf32> to vector<252x32xbf16>
    %c2 = arith.constant 2 : index
    %c0_7 = arith.constant 0 : index
    %c0_8 = arith.constant 0 : index
    %14 = vector.load %arg2[%c2, %c0_7, %c0_8] : memref<5x32x168xbf16, #tpu.memory_space<vmem>>, vector<1x32x168xbf16>
    %15 = vector.shape_cast %14 : vector<1x32x168xbf16> to vector<32x168xbf16>
    %cst_9 = arith.constant dense<0.000000e+00> : vector<252x168xf32>
    %16 = tpu.matmul %13, %15, %cst_9 {dimension_numbers = #tpu.dot_dimension_numbers<[1], [0], [0], [1], [0, 0, 1, 1], [], []>} : vector<252x32xbf16>, vector<32x168xbf16>, vector<252x168xf32> -> vector<252x168xf32>
    %17 = arith.addf %11, %16 : vector<252x168xf32>
    %18 = vector.extract_strided_slice %0 {offsets = [3, 0], sizes = [252, 32], strides = [1, 1]} : vector<256x32xf32> to vector<252x32xf32>
    %19 = arith.truncf %18 : vector<252x32xf32> to vector<252x32xbf16>
    %c3 = arith.constant 3 : index
    %c0_10 = arith.constant 0 : index
    %c0_11 = arith.constant 0 : index
    %20 = vector.load %arg2[%c3, %c0_10, %c0_11] : memref<5x32x168xbf16, #tpu.memory_space<vmem>>, vector<1x32x168xbf16>
    %21 = vector.shape_cast %20 : vector<1x32x168xbf16> to vector<32x168xbf16>
    %cst_12 = arith.constant dense<0.000000e+00> : vector<252x168xf32>
    %22 = tpu.matmul %19, %21, %cst_12 {dimension_numbers = #tpu.dot_dimension_numbers<[1], [0], [0], [1], [0, 0, 1, 1], [], []>} : vector<252x32xbf16>, vector<32x168xbf16>, vector<252x168xf32> -> vector<252x168xf32>
    %23 = arith.addf %17, %22 : vector<252x168xf32>
    %24 = vector.extract_strided_slice %0 {offsets = [4, 0], sizes = [252, 32], strides = [1, 1]} : vector<256x32xf32> to vector<252x32xf32>
    %25 = arith.truncf %24 : vector<252x32xf32> to vector<252x32xbf16>
    %c4 = arith.constant 4 : index
    %c0_13 = arith.constant 0 : index
    %c0_14 = arith.constant 0 : index
    %26 = vector.load %arg2[%c4, %c0_13, %c0_14] : memref<5x32x168xbf16, #tpu.memory_space<vmem>>, vector<1x32x168xbf16>
    %27 = vector.shape_cast %26 : vector<1x32x168xbf16> to vector<32x168xbf16>
    %cst_15 = arith.constant dense<0.000000e+00> : vector<252x168xf32>
    %28 = tpu.matmul %25, %27, %cst_15 {dimension_numbers = #tpu.dot_dimension_numbers<[1], [0], [0], [1], [0, 0, 1, 1], [], []>} : vector<252x32xbf16>, vector<32x168xbf16>, vector<252x168xf32> -> vector<252x168xf32>
    %29 = arith.addf %23, %28 : vector<252x168xf32>
    %c0_16 = arith.constant 0 : index
    %c0_17 = arith.constant 0 : index
    %30 = vector.load %arg3[%c0_16, %c0_17] : memref<1x168xf32, #tpu.memory_space<vmem>>, vector<1x168xf32>
    %31 = vector.broadcast %30 : vector<1x168xf32> to vector<252x168xf32>
    %32 = arith.addf %29, %31 : vector<252x168xf32>
    %cst_18 = arith.constant 0.000000e+00 : f32
    %33 = vector.broadcast %cst_18 : f32 to vector<252x168xf32>
    %34 = arith.subf %33, %32 : vector<252x168xf32>
    %35 = math.exp %34 : vector<252x168xf32>
    %cst_19 = arith.constant 1.000000e+00 : f32
    %36 = vector.broadcast %cst_19 : f32 to vector<252x168xf32>
    %37 = arith.addf %36, %35 : vector<252x168xf32>
    %38 = tpu.reciprocal %37 {approx = true} : vector<252x168xf32> -> vector<252x168xf32>
    %c0_20 = arith.constant 0 : index
    %c0_21 = arith.constant 0 : index
    %39 = vector.load %arg4[%c0_20, %c0_21] : memref<112x252xbf16, #tpu.memory_space<vmem>>, vector<112x252xbf16>
    %40 = arith.truncf %38 : vector<252x168xf32> to vector<252x168xbf16>
    %cst_22 = arith.constant dense<0.000000e+00> : vector<112x168xf32>
    %41 = tpu.matmul %39, %40, %cst_22 {dimension_numbers = #tpu.dot_dimension_numbers<[1], [0], [0], [1], [0, 0, 1, 1], [], []>} : vector<112x252xbf16>, vector<252x168xbf16>, vector<112x168xf32> -> vector<112x168xf32>
    %42 = arith.truncf %41 : vector<112x168xf32> to vector<112x168xbf16>
    %c0_23 = arith.constant 0 : index
    %c0_24 = arith.constant 0 : index
    %43 = vector.load %arg5[%c0_23, %c0_24] : memref<168x84xbf16, #tpu.memory_space<vmem>>, vector<168x84xbf16>
    %cst_25 = arith.constant dense<0.000000e+00> : vector<112x84xf32>
    %44 = tpu.matmul %42, %43, %cst_25 {dimension_numbers = #tpu.dot_dimension_numbers<[1], [0], [0], [1], [0, 0, 1, 1], [], []>} : vector<112x168xbf16>, vector<168x84xbf16>, vector<112x84xf32> -> vector<112x84xf32>
    %cst_26 = arith.constant 2.500000e-01 : f32
    %45 = vector.broadcast %cst_26 : f32 to vector<112x84xf32>
    %46 = arith.mulf %45, %44 : vector<112x84xf32>
    %47 = vector.extract_strided_slice %46 {offsets = [0, 0], sizes = [108, 84], strides = [1, 1]} : vector<112x84xf32> to vector<108x84xf32>
    %48 = arith.truncf %47 : vector<108x84xf32> to vector<108x84xbf16>
    %c0_27 = arith.constant 0 : index
    %c0_28 = arith.constant 0 : index
    %c0_29 = arith.constant 0 : index
    %49 = vector.load %arg6[%c0_27, %c0_28, %c0_29] : memref<5x84x160xbf16, #tpu.memory_space<vmem>>, vector<1x84x160xbf16>
    %50 = vector.shape_cast %49 : vector<1x84x160xbf16> to vector<84x160xbf16>
    %cst_30 = arith.constant dense<0.000000e+00> : vector<108x160xf32>
    %51 = tpu.matmul %48, %50, %cst_30 {dimension_numbers = #tpu.dot_dimension_numbers<[1], [0], [0], [1], [0, 0, 1, 1], [], []>} : vector<108x84xbf16>, vector<84x160xbf16>, vector<108x160xf32> -> vector<108x160xf32>
    %52 = vector.extract_strided_slice %46 {offsets = [1, 0], sizes = [108, 84], strides = [1, 1]} : vector<112x84xf32> to vector<108x84xf32>
    %53 = arith.truncf %52 : vector<108x84xf32> to vector<108x84xbf16>
    %c1_31 = arith.constant 1 : index
    %c0_32 = arith.constant 0 : index
    %c0_33 = arith.constant 0 : index
    %54 = vector.load %arg6[%c1_31, %c0_32, %c0_33] : memref<5x84x160xbf16, #tpu.memory_space<vmem>>, vector<1x84x160xbf16>
    %55 = vector.shape_cast %54 : vector<1x84x160xbf16> to vector<84x160xbf16>
    %cst_34 = arith.constant dense<0.000000e+00> : vector<108x160xf32>
    %56 = tpu.matmul %53, %55, %cst_34 {dimension_numbers = #tpu.dot_dimension_numbers<[1], [0], [0], [1], [0, 0, 1, 1], [], []>} : vector<108x84xbf16>, vector<84x160xbf16>, vector<108x160xf32> -> vector<108x160xf32>
    %57 = arith.addf %51, %56 : vector<108x160xf32>
    %58 = vector.extract_strided_slice %46 {offsets = [2, 0], sizes = [108, 84], strides = [1, 1]} : vector<112x84xf32> to vector<108x84xf32>
    %59 = arith.truncf %58 : vector<108x84xf32> to vector<108x84xbf16>
    %c2_35 = arith.constant 2 : index
    %c0_36 = arith.constant 0 : index
    %c0_37 = arith.constant 0 : index
    %60 = vector.load %arg6[%c2_35, %c0_36, %c0_37] : memref<5x84x160xbf16, #tpu.memory_space<vmem>>, vector<1x84x160xbf16>
    %61 = vector.shape_cast %60 : vector<1x84x160xbf16> to vector<84x160xbf16>
    %cst_38 = arith.constant dense<0.000000e+00> : vector<108x160xf32>
    %62 = tpu.matmul %59, %61, %cst_38 {dimension_numbers = #tpu.dot_dimension_numbers<[1], [0], [0], [1], [0, 0, 1, 1], [], []>} : vector<108x84xbf16>, vector<84x160xbf16>, vector<108x160xf32> -> vector<108x160xf32>
    %63 = arith.addf %57, %62 : vector<108x160xf32>
    %64 = vector.extract_strided_slice %46 {offsets = [3, 0], sizes = [108, 84], strides = [1, 1]} : vector<112x84xf32> to vector<108x84xf32>
    %65 = arith.truncf %64 : vector<108x84xf32> to vector<108x84xbf16>
    %c3_39 = arith.constant 3 : index
    %c0_40 = arith.constant 0 : index
    %c0_41 = arith.constant 0 : index
    %66 = vector.load %arg6[%c3_39, %c0_40, %c0_41] : memref<5x84x160xbf16, #tpu.memory_space<vmem>>, vector<1x84x160xbf16>
    %67 = vector.shape_cast %66 : vector<1x84x160xbf16> to vector<84x160xbf16>
    %cst_42 = arith.constant dense<0.000000e+00> : vector<108x160xf32>
    %68 = tpu.matmul %65, %67, %cst_42 {dimension_numbers = #tpu.dot_dimension_numbers<[1], [0], [0], [1], [0, 0, 1, 1], [], []>} : vector<108x84xbf16>, vector<84x160xbf16>, vector<108x160xf32> -> vector<108x160xf32>
    %69 = arith.addf %63, %68 : vector<108x160xf32>
    %70 = vector.extract_strided_slice %46 {offsets = [4, 0], sizes = [108, 84], strides = [1, 1]} : vector<112x84xf32> to vector<108x84xf32>
    %71 = arith.truncf %70 : vector<108x84xf32> to vector<108x84xbf16>
    %c4_43 = arith.constant 4 : index
    %c0_44 = arith.constant 0 : index
    %c0_45 = arith.constant 0 : index
    %72 = vector.load %arg6[%c4_43, %c0_44, %c0_45] : memref<5x84x160xbf16, #tpu.memory_space<vmem>>, vector<1x84x160xbf16>
    %73 = vector.shape_cast %72 : vector<1x84x160xbf16> to vector<84x160xbf16>
    %cst_46 = arith.constant dense<0.000000e+00> : vector<108x160xf32>
    %74 = tpu.matmul %71, %73, %cst_46 {dimension_numbers = #tpu.dot_dimension_numbers<[1], [0], [0], [1], [0, 0, 1, 1], [], []>} : vector<108x84xbf16>, vector<84x160xbf16>, vector<108x160xf32> -> vector<108x160xf32>
    %75 = arith.addf %69, %74 : vector<108x160xf32>
    %c0_47 = arith.constant 0 : index
    %c0_48 = arith.constant 0 : index
    %76 = vector.load %arg7[%c0_47, %c0_48] : memref<1x160xf32, #tpu.memory_space<vmem>>, vector<1x160xf32>
    %77 = vector.broadcast %76 : vector<1x160xf32> to vector<108x160xf32>
    %78 = arith.addf %75, %77 : vector<108x160xf32>
    %cst_49 = arith.constant 0.000000e+00 : f32
    %79 = vector.broadcast %cst_49 : f32 to vector<108x160xf32>
    %80 = arith.subf %79, %78 : vector<108x160xf32>
    %81 = math.exp %80 : vector<108x160xf32>
    %cst_50 = arith.constant 1.000000e+00 : f32
    %82 = vector.broadcast %cst_50 : f32 to vector<108x160xf32>
    %83 = arith.addf %82, %81 : vector<108x160xf32>
    %84 = tpu.reciprocal %83 {approx = true} : vector<108x160xf32> -> vector<108x160xf32>
    %c0_51 = arith.constant 0 : index
    %c0_52 = arith.constant 0 : index
    %85 = vector.load %arg8[%c0_51, %c0_52] : memref<40x108xbf16, #tpu.memory_space<vmem>>, vector<40x108xbf16>
    %86 = arith.truncf %84 : vector<108x160xf32> to vector<108x160xbf16>
    %cst_53 = arith.constant dense<0.000000e+00> : vector<40x160xf32>
    %87 = tpu.matmul %85, %86, %cst_53 {dimension_numbers = #tpu.dot_dimension_numbers<[1], [0], [0], [1], [0, 0, 1, 1], [], []>} : vector<40x108xbf16>, vector<108x160xbf16>, vector<40x160xf32> -> vector<40x160xf32>
    %88 = arith.truncf %87 : vector<40x160xf32> to vector<40x160xbf16>
    %c0_54 = arith.constant 0 : index
    %c0_55 = arith.constant 0 : index
    %89 = vector.load %arg9[%c0_54, %c0_55] : memref<160x80xbf16, #tpu.memory_space<vmem>>, vector<160x80xbf16>
    %cst_56 = arith.constant dense<0.000000e+00> : vector<40x80xf32>
    %90 = tpu.matmul %88, %89, %cst_56 {dimension_numbers = #tpu.dot_dimension_numbers<[1], [0], [0], [1], [0, 0, 1, 1], [], []>} : vector<40x160xbf16>, vector<160x80xbf16>, vector<40x80xf32> -> vector<40x80xf32>
    %cst_57 = arith.constant 2.500000e-01 : f32
    %91 = vector.broadcast %cst_57 : f32 to vector<40x80xf32>
    %92 = arith.mulf %91, %90 : vector<40x80xf32>
    %93 = vector.extract_strided_slice %92 {offsets = [0, 0], sizes = [8, 80], strides = [1, 1]} : vector<40x80xf32> to vector<8x80xf32>
    %94 = arith.truncf %93 : vector<8x80xf32> to vector<8x80xbf16>
    %c0_58 = arith.constant 0 : index
    %c0_59 = arith.constant 0 : index
    %c0_60 = arith.constant 0 : index
    %95 = vector.load %arg10[%c0_58, %c0_59, %c0_60] : memref<5x80x120xbf16, #tpu.memory_space<vmem>>, vector<1x80x120xbf16>
    %96 = vector.shape_cast %95 : vector<1x80x120xbf16> to vector<80x120xbf16>
    %cst_61 = arith.constant dense<0.000000e+00> : vector<8x120xf32>
    %97 = tpu.matmul %94, %96, %cst_61 {dimension_numbers = #tpu.dot_dimension_numbers<[1], [0], [0], [1], [0, 0, 1, 1], [], []>} : vector<8x80xbf16>, vector<80x120xbf16>, vector<8x120xf32> -> vector<8x120xf32>
    %98 = vector.extract_strided_slice %92 {offsets = [8, 0], sizes = [8, 80], strides = [1, 1]} : vector<40x80xf32> to vector<8x80xf32>
    %99 = arith.truncf %98 : vector<8x80xf32> to vector<8x80xbf16>
    %c1_62 = arith.constant 1 : index
    %c0_63 = arith.constant 0 : index
    %c0_64 = arith.constant 0 : index
    %100 = vector.load %arg10[%c1_62, %c0_63, %c0_64] : memref<5x80x120xbf16, #tpu.memory_space<vmem>>, vector<1x80x120xbf16>
    %101 = vector.shape_cast %100 : vector<1x80x120xbf16> to vector<80x120xbf16>
    %cst_65 = arith.constant dense<0.000000e+00> : vector<8x120xf32>
    %102 = tpu.matmul %99, %101, %cst_65 {dimension_numbers = #tpu.dot_dimension_numbers<[1], [0], [0], [1], [0, 0, 1, 1], [], []>} : vector<8x80xbf16>, vector<80x120xbf16>, vector<8x120xf32> -> vector<8x120xf32>
    %103 = arith.addf %97, %102 : vector<8x120xf32>
    %104 = vector.extract_strided_slice %92 {offsets = [16, 0], sizes = [8, 80], strides = [1, 1]} : vector<40x80xf32> to vector<8x80xf32>
    %105 = arith.truncf %104 : vector<8x80xf32> to vector<8x80xbf16>
    %c2_66 = arith.constant 2 : index
    %c0_67 = arith.constant 0 : index
    %c0_68 = arith.constant 0 : index
    %106 = vector.load %arg10[%c2_66, %c0_67, %c0_68] : memref<5x80x120xbf16, #tpu.memory_space<vmem>>, vector<1x80x120xbf16>
    %107 = vector.shape_cast %106 : vector<1x80x120xbf16> to vector<80x120xbf16>
    %cst_69 = arith.constant dense<0.000000e+00> : vector<8x120xf32>
    %108 = tpu.matmul %105, %107, %cst_69 {dimension_numbers = #tpu.dot_dimension_numbers<[1], [0], [0], [1], [0, 0, 1, 1], [], []>} : vector<8x80xbf16>, vector<80x120xbf16>, vector<8x120xf32> -> vector<8x120xf32>
    %109 = arith.addf %103, %108 : vector<8x120xf32>
    %110 = vector.extract_strided_slice %92 {offsets = [24, 0], sizes = [8, 80], strides = [1, 1]} : vector<40x80xf32> to vector<8x80xf32>
    %111 = arith.truncf %110 : vector<8x80xf32> to vector<8x80xbf16>
    %c3_70 = arith.constant 3 : index
    %c0_71 = arith.constant 0 : index
    %c0_72 = arith.constant 0 : index
    %112 = vector.load %arg10[%c3_70, %c0_71, %c0_72] : memref<5x80x120xbf16, #tpu.memory_space<vmem>>, vector<1x80x120xbf16>
    %113 = vector.shape_cast %112 : vector<1x80x120xbf16> to vector<80x120xbf16>
    %cst_73 = arith.constant dense<0.000000e+00> : vector<8x120xf32>
    %114 = tpu.matmul %111, %113, %cst_73 {dimension_numbers = #tpu.dot_dimension_numbers<[1], [0], [0], [1], [0, 0, 1, 1], [], []>} : vector<8x80xbf16>, vector<80x120xbf16>, vector<8x120xf32> -> vector<8x120xf32>
    %115 = arith.addf %109, %114 : vector<8x120xf32>
    %116 = vector.extract_strided_slice %92 {offsets = [32, 0], sizes = [8, 80], strides = [1, 1]} : vector<40x80xf32> to vector<8x80xf32>
    %117 = arith.truncf %116 : vector<8x80xf32> to vector<8x80xbf16>
    %c4_74 = arith.constant 4 : index
    %c0_75 = arith.constant 0 : index
    %c0_76 = arith.constant 0 : index
    %118 = vector.load %arg10[%c4_74, %c0_75, %c0_76] : memref<5x80x120xbf16, #tpu.memory_space<vmem>>, vector<1x80x120xbf16>
    %119 = vector.shape_cast %118 : vector<1x80x120xbf16> to vector<80x120xbf16>
    %cst_77 = arith.constant dense<0.000000e+00> : vector<8x120xf32>
    %120 = tpu.matmul %117, %119, %cst_77 {dimension_numbers = #tpu.dot_dimension_numbers<[1], [0], [0], [1], [0, 0, 1, 1], [], []>} : vector<8x80xbf16>, vector<80x120xbf16>, vector<8x120xf32> -> vector<8x120xf32>
    %121 = arith.addf %115, %120 : vector<8x120xf32>
    %c0_78 = arith.constant 0 : index
    %c0_79 = arith.constant 0 : index
    %122 = vector.load %arg11[%c0_78, %c0_79] : memref<1x120xf32, #tpu.memory_space<vmem>>, vector<1x120xf32>
    %123 = vector.broadcast %122 : vector<1x120xf32> to vector<8x120xf32>
    %124 = arith.addf %121, %123 : vector<8x120xf32>
    %cst_80 = arith.constant 0.000000e+00 : f32
    %125 = vector.broadcast %cst_80 : f32 to vector<8x120xf32>
    %126 = arith.subf %125, %124 : vector<8x120xf32>
    %127 = math.exp %126 : vector<8x120xf32>
    %cst_81 = arith.constant 1.000000e+00 : f32
    %128 = vector.broadcast %cst_81 : f32 to vector<8x120xf32>
    %129 = arith.addf %128, %127 : vector<8x120xf32>
    %130 = tpu.reciprocal %129 {approx = true} : vector<8x120xf32> -> vector<8x120xf32>
    %131 = arith.truncf %130 : vector<8x120xf32> to vector<8x120xbf16>
    %c0_82 = arith.constant 0 : index
    %c0_83 = arith.constant 0 : index
    %132 = vector.load %arg12[%c0_82, %c0_83] : memref<120x84xbf16, #tpu.memory_space<vmem>>, vector<120x84xbf16>
    %cst_84 = arith.constant dense<0.000000e+00> : vector<8x84xf32>
    %133 = tpu.matmul %131, %132, %cst_84 {dimension_numbers = #tpu.dot_dimension_numbers<[1], [0], [0], [1], [0, 0, 1, 1], [], []>} : vector<8x120xbf16>, vector<120x84xbf16>, vector<8x84xf32> -> vector<8x84xf32>
    %c0_85 = arith.constant 0 : index
    %c0_86 = arith.constant 0 : index
    %134 = vector.load %arg13[%c0_85, %c0_86] : memref<1x84xf32, #tpu.memory_space<vmem>>, vector<1x84xf32>
    %135 = vector.broadcast %134 : vector<1x84xf32> to vector<8x84xf32>
    %136 = arith.addf %133, %135 : vector<8x84xf32>
    %cst_87 = arith.constant 0.000000e+00 : f32
    %137 = vector.broadcast %cst_87 : f32 to vector<8x84xf32>
    %138 = arith.subf %137, %136 : vector<8x84xf32>
    %139 = math.exp %138 : vector<8x84xf32>
    %cst_88 = arith.constant 1.000000e+00 : f32
    %140 = vector.broadcast %cst_88 : f32 to vector<8x84xf32>
    %141 = arith.addf %140, %139 : vector<8x84xf32>
    %142 = tpu.reciprocal %141 {approx = true} : vector<8x84xf32> -> vector<8x84xf32>
    %143 = arith.truncf %142 : vector<8x84xf32> to vector<8x84xbf16>
    %c0_89 = arith.constant 0 : index
    %c0_90 = arith.constant 0 : index
    %144 = vector.load %arg14[%c0_89, %c0_90] : memref<84x128xbf16, #tpu.memory_space<vmem>>, vector<84x128xbf16>
    %cst_91 = arith.constant dense<0.000000e+00> : vector<8x128xf32>
    %145 = tpu.matmul %143, %144, %cst_91 {dimension_numbers = #tpu.dot_dimension_numbers<[1], [0], [0], [1], [0, 0, 1, 1], [], []>} : vector<8x84xbf16>, vector<84x128xbf16>, vector<8x128xf32> -> vector<8x128xf32>
    %c0_92 = arith.constant 0 : index
    %c0_93 = arith.constant 0 : index
    %146 = vector.load %arg15[%c0_92, %c0_93] : memref<1x128xf32, #tpu.memory_space<vmem>>, vector<1x128xf32>
    %147 = vector.broadcast %146 : vector<1x128xf32> to vector<8x128xf32>
    %148 = arith.addf %145, %147 : vector<8x128xf32>
    %c0_94 = arith.constant 0 : index
    %c0_95 = arith.constant 0 : index
    %149 = vector.load %arg16[%c0_94, %c0_95] : memref<8x128xf32, #tpu.memory_space<vmem>>, vector<8x128xf32>
    tpu.vector_store %arg16[%c0_94, %c0_95], %148 {strides = array<i32>} : memref<8x128xf32, #tpu.memory_space<vmem>>, vector<8x128xf32>,
    return
  }
  func.func @transform_0(%arg0: i32) -> (i32, i32) {
    %c0_i32 = arith.constant 0 : i32
    %c0_i32_0 = arith.constant 0 : i32
    return %arg0, %c0_i32 : i32, i32
  }
  func.func @transform_1(%arg0: i32) -> (i32, i32, i32) {
    %c0_i32 = arith.constant 0 : i32
    %c0_i32_0 = arith.constant 0 : i32
    %c0_i32_1 = arith.constant 0 : i32
    %c0_i32_2 = arith.constant 0 : i32
    return %c0_i32, %c0_i32_0, %c0_i32_1 : i32, i32, i32
  }
  func.func @transform_2(%arg0: i32) -> (i32, i32) {
    %c0_i32 = arith.constant 0 : i32
    %c0_i32_0 = arith.constant 0 : i32
    %c0_i32_1 = arith.constant 0 : i32
    return %c0_i32, %c0_i32_0 : i32, i32
  }
  func.func @transform_3(%arg0: i32) -> (i32, i32) {
    %c0_i32 = arith.constant 0 : i32
    %c0_i32_0 = arith.constant 0 : i32
    %c0_i32_1 = arith.constant 0 : i32
    return %c0_i32, %c0_i32_0 : i32, i32
  }
  func.func @transform_4(%arg0: i32) -> (i32, i32) {
    %c0_i32 = arith.constant 0 : i32
    %c0_i32_0 = arith.constant 0 : i32
    %c0_i32_1 = arith.constant 0 : i32
    return %c0_i32, %c0_i32_0 : i32, i32
  }
  func.func @transform_5(%arg0: i32) -> (i32, i32, i32) {
    %c0_i32 = arith.constant 0 : i32
    %c0_i32_0 = arith.constant 0 : i32
    %c0_i32_1 = arith.constant 0 : i32
    %c0_i32_2 = arith.constant 0 : i32
    return %c0_i32, %c0_i32_0, %c0_i32_1 : i32, i32, i32
  }
  func.func @transform_6(%arg0: i32) -> (i32, i32) {
    %c0_i32 = arith.constant 0 : i32
    %c0_i32_0 = arith.constant 0 : i32
    %c0_i32_1 = arith.constant 0 : i32
    return %c0_i32, %c0_i32_0 : i32, i32
  }
  func.func @transform_7(%arg0: i32) -> (i32, i32) {
    %c0_i32 = arith.constant 0 : i32
    %c0_i32_0 = arith.constant 0 : i32
    %c0_i32_1 = arith.constant 0 : i32
    return %c0_i32, %c0_i32_0 : i32, i32
  }
  func.func @transform_8(%arg0: i32) -> (i32, i32) {
    %c0_i32 = arith.constant 0 : i32
    %c0_i32_0 = arith.constant 0 : i32
    %c0_i32_1 = arith.constant 0 : i32
    return %c0_i32, %c0_i32_0 : i32, i32
  }
  func.func @transform_9(%arg0: i32) -> (i32, i32, i32) {
    %c0_i32 = arith.constant 0 : i32
    %c0_i32_0 = arith.constant 0 : i32
    %c0_i32_1 = arith.constant 0 : i32
    %c0_i32_2 = arith.constant 0 : i32
    return %c0_i32, %c0_i32_0, %c0_i32_1 : i32, i32, i32
  }
  func.func @transform_10(%arg0: i32) -> (i32, i32) {
    %c0_i32 = arith.constant 0 : i32
    %c0_i32_0 = arith.constant 0 : i32
    %c0_i32_1 = arith.constant 0 : i32
    return %c0_i32, %c0_i32_0 : i32, i32
  }
  func.func @transform_11(%arg0: i32) -> (i32, i32) {
    %c0_i32 = arith.constant 0 : i32
    %c0_i32_0 = arith.constant 0 : i32
    %c0_i32_1 = arith.constant 0 : i32
    return %c0_i32, %c0_i32_0 : i32, i32
  }
  func.func @transform_12(%arg0: i32) -> (i32, i32) {
    %c0_i32 = arith.constant 0 : i32
    %c0_i32_0 = arith.constant 0 : i32
    %c0_i32_1 = arith.constant 0 : i32
    return %c0_i32, %c0_i32_0 : i32, i32
  }
  func.func @transform_13(%arg0: i32) -> (i32, i32) {
    %c0_i32 = arith.constant 0 : i32
    %c0_i32_0 = arith.constant 0 : i32
    %c0_i32_1 = arith.constant 0 : i32
    return %c0_i32, %c0_i32_0 : i32, i32
  }
  func.func @transform_14(%arg0: i32) -> (i32, i32) {
    %c0_i32 = arith.constant 0 : i32
    %c0_i32_0 = arith.constant 0 : i32
    %c0_i32_1 = arith.constant 0 : i32
    return %c0_i32, %c0_i32_0 : i32, i32
  }
  func.func @transform_15(%arg0: i32) -> (i32, i32) {
    %c0_i32 = arith.constant 0 : i32
    %c0_i32_0 = arith.constant 0 : i32
    return %arg0, %c0_i32 : i32, i32
  }
}

</mosaic_0001>

<bundles_post_ra>
// kernel: lenet5_forward.1
= control target key start
LH: loop header
LB: loop body
LE: loop exit
PB: predicated region body
PF: predicated region fallthrough
CT: control target
= control target key end

     0   :  { %s9629_s0 = inlined_call_operand.vmem [shape: f32[512,32], index: 0, kind: input, shape index: {}]   ;;  %s9630_s1 = inlined_call_operand.vmem [shape: bf16[5,32,168], index: 1, kind: input, shape index: {}]   ;;  %s9631_s2 = inlined_call_operand.vmem [shape: f32[1,168], index: 2, kind: input, shape index: {}]   ;;  %s9632_s3 = inlined_call_operand.vmem [shape: bf16[112,252], index: 3, kind: input, shape index: {}]   ;;  %s9633_s4 = inlined_call_operand.vmem [shape: bf16[168,84], index: 4, kind: input, shape index: {}]   ;;  %s9634_s5 = inlined_call_operand.vmem [shape: bf16[5,84,160], index: 5, kind: input, shape index: {}]   ;;  %s9635_s6 = inlined_call_operand.vmem [shape: f32[1,160], index: 6, kind: input, shape index: {}]   ;;  %s9636_s7 = inlined_call_operand.vmem [shape: bf16[40,108], index: 7, kind: input, shape index: {}]   ;;  %s9637_s8 = inlined_call_operand.vmem [shape: bf16[160,80], index: 8, kind: input, shape index: {}]   ;;  %s9638_s9 = inlined_call_operand.vmem [shape: bf16[5,80,120], index: 9, kind: input, shape index: {}]   ;;  %s9639_s10 = inlined_call_operand.vmem [shape: f32[1,120], index: 10, kind: input, shape index: {}]   ;;  %s9640_s11 = inlined_call_operand.vmem [shape: bf16[120,84], index: 11, kind: input, shape index: {}]   ;;  %s9641_s12 = inlined_call_operand.vmem [shape: f32[1,84], index: 12, kind: input, shape index: {}]   ;;  %s9642_s13 = inlined_call_operand.vmem [shape: bf16[84,128], index: 13, kind: input, shape index: {}]   ;;  %s9643_s14 = inlined_call_operand.vmem [shape: f32[1,128], index: 14, kind: input, shape index: {}]   ;;  %s9644_s15 = inlined_call_operand.hbm [shape: f32[16,128], index: 15, kind: output, shape index: {}]  }
   0x1   :  { %9687 = sst [smem:[#allocation62_spill]] %s9629_s0 }
   0x2   :  { %9688 = sst [smem:[#allocation63_spill]] %s9630_s1 }
   0x3   :  { %20 = vsyncpa [#allocation3], 0 }
   0x4   :  { %22 = vsyncpa [#allocation3 + $0x1], 0  ;;  %s6893_s18 = smov 0   ;;  %s6895_s19 = smov 0  }
   0x5   :  { %s6897_s20 = smov 0   ;;  %s6899_s21 = smov 0  }
   0x6 LB: > { %9689 = sst [smem:[#allocation5_spill]] %s6799_s18  ;;  %s6914_s22 = sadd.s32 4294967295, %s6811_s21   ;;  %s6811_s21 = sphi %s6899_s21, %s9894_s21   ;;  %s6807_s20 = sphi %s6897_s20, %s9896_s20   ;;  %s6803_s19 = sphi %s6895_s19, %s9898_s19   ;;  %s6799_s18 = sphi %s6893_s18, %s9897_s18  }
   0x7   : > { %9690 = sst [smem:[#allocation6_spill]] %s6807_s20  ;;  %s5238_s23 = sadd.s32 4294967294, %s6811_s21  }
   0x8   : > { %s6918_s24 = sadd.s32 1, %s6811_s21   ;;  %s355_s25 = sadd.s32 1, %s6807_s20 }
   0x9   : > { %9691 = sst [smem:[#allocation7_spill]] %s6918_s24  ;;  %s352_s26 = ssub.s32 %s6811_s21, %s6918_s24 }
   0xa   : > { %p365_p0 = scmp.ne.s32.totalorder %s6807_s20, %s6803_s19  ;;  %p353_p1 = scmp.eq.s32.totalorder %s352_s26, 0 }
   0xb   : > { %p366_p2 = scmp.eq.s32.totalorder %s6914_s22, 1  ;;  %p371_p3 = scmp.ne.s32.totalorder %s6803_s19, %s6799_s18 }
   0xc   : > { %p372_p4 = scmp.eq.s32.totalorder %s5238_s23, 1  ;;  %p5241_p7 = scmp.ge.s32.totalorder %s6811_s21, 1 }
   0xd   : > { %s6929_s27 = scalar_select %p353_p1, %s6807_s20, %s355_s25  }
   0xe   : > { %p6931_p5 = por %p366_p2, %p365_p0  ;;  %p6935_p6 = por %p372_p4, %p371_p3 }
   0xf   : > { %9692 = sst [smem:[#allocation8_spill]] %s6929_s27  ;;  %p441_p8 = scmp.lt.s32.totalorder %s6811_s21, 3 }
  0x10   : > { %s9694_s29 = scalar_select %p6935_p6, 1, 0 }
  0x11   : > { %p442_p9 = pnand %p5241_p7, %p441_p8 }
  0x12   : > { %9695 = sst [smem:[#allocation9_spill]] %s9694_s29 }
  0x13   : > { %445 = sbr.rel (%p442_p9) target bundleno = 2687 (0xa7f), region = 80 }
  0x18   : > { %s9696_s1 = sld [smem:[#allocation63_spill]]  ;;  %s5243_s25 = sshll.u32 %s6914_s22, 5  ;;  %vm701_vm0 = vcmask 261120   ;;  %vm553_vm1 = vsmask.f32 7424  ;;  %vm1179_vm3 = vcmask 1046528  }
  0x19   : > { %p490_p10 = scmp.lt.s32.totalorder %s5243_s25, 63  ;;  %s9697_s0 = sld [smem:[#allocation62_spill]]  ;;  %vm1526_vm2 = vsmask.f32 6400  ;;  %vm1905_vm4 = vcmask 1045504   ;;  %vm2746_vm5 = vcmask 1014784  }
  0x1a   : > { %vm3071_vm6 = vcmask 1043456   ;;  %vm3049_vm7 = vcmask 326656   ;;  %vm3339_vm8 = vcmask 1041408   ;;  %vm3317_vm9 = vcmask 687104   ;;  %s486_s18 = sand.u32 1, %s6803_s19   ;;  %s6185_s23 = sshll.u32 %s6914_s22, 3 }
  0x1b   : > { %s9900_s25 = smov (!%p490_p10, %s5243_s25), 63  ;;  %vm4493_vm10 = vcmask 883712   ;;  %vm4754_vm11 = vcmask 654336   ;;  %vm5069_vm12 = vcmask 982016   ;;  %s5174_s27 = scalar_lea.hbm %s9644_s15, %s6185_s23 }
  0x1c   : > { %s5244_s17 = sshll.u32 %s9900_s25, 3  ;;  %s6769_s20 = scalar_lea.hbm %s9644_s15, 16 }
  0x1e   : > { %v5307_v0 = vld [vmem:[%s9696_s1 + $0x10] sm:$0xf]  ;;  %v6191_v1 = vld [vmem:[%s9696_s1 + $0x14] sm:$0xf0]  ;;  %v6190_v2 = vld [vmem:[%s9696_s1 + $0x14] sm:$0xf] }
  0x1f   : > { %v5308_v3 = vor.u32 %v6191_v1, %v5307_v0  ;;  %v5309_v4 = vld [vmem:[%s9696_s1 + $0x18] sm:$0xf0]  ;;  %v5299_v5 = vld [vmem:[%s9696_s1] sm:$0xf]  ;;  %v6189_v6 = vld [vmem:[%s9696_s1 + $0x4] sm:$0xf0]  ;;  %s6993_s26 = scalar_lea.vmem %s9697_s0, %s5244_s17 }
  0x20   : > { %v5312_v7 = vor.u32 %v6190_v2, %v5309_v4  ;;  %v5259_v8 = vld [vmem:[%s9696_s1 + $0x30] sm:$0xf]  ;;  %v6195_v9 = vld [vmem:[%s9696_s1 + $0x34] sm:$0xf0]  ;;  %v6194_v10 = vld [vmem:[%s9696_s1 + $0x34] sm:$0xf]  ;;  %v5300_v11 = vor.u32 %v6189_v6, %v5299_v5 }
  0x21   : > { %986 = vmatpush.bf16.msra.mxu2 %v5308_v3  ;;  %v5260_v12 = vor.u32 %v6195_v9, %v5259_v8  ;;  %v5261_v13 = vld [vmem:[%s9696_s1 + $0x38] sm:$0xf0]  ;;  %v6188_v14 = vld [vmem:[%s9696_s1 + $0x4] sm:$0xf]  ;;  %v5301_v15 = vld [vmem:[%s9696_s1 + $0x8] sm:$0xf0] }
  0x22   : > { %1075 = vmatpush.bf16.msra.mxu3 %v5312_v7  ;;  %v5264_v16 = vor.u32 %v6194_v10, %v5261_v13  ;;  %v5304_v17 = vor.u32 %v6188_v14, %v5301_v15  ;;  %v5251_v18 = vld [vmem:[%s9696_s1 + $0x20] sm:$0xf]  ;;  %v6193_v19 = vld [vmem:[%s9696_s1 + $0x24] sm:$0xf0]  ;;  %v6192_v21 = vld [vmem:[%s9696_s1 + $0x24] sm:$0xf] }
  0x23   : > { %756 = vmatpush.bf16.msra.mxu0 %v5260_v12  ;;  %v5252_v20 = vor.u32 %v6193_v19, %v5251_v18  ;;  %v5253_v22 = vld [vmem:[%s9696_s1 + $0x28] sm:$0xf0]  ;;  %v496_v24 = vld [vmem:[%s6993_s26] sm:$0xff]  ;;  %v498_v26 = vld [vmem:[%s6993_s26 + $0x10] sm:$0xff]  ;;  %s5178_s17 = sshll.u32 %s5174_s27, 4  ;;  %s5164_s0 = scalar_lea.sflag [#allocation3], %s486_s18  ;;  %s5179_s17 = int_to_ptr.hbm [resolvable:$true] %s5178_s17 }
  0x24   : > { %845 = vmatpush.bf16.msra.mxu1 %v5264_v16  ;;  %v5256_v23 = vor.u32 %v6192_v21, %v5253_v22  ;;  %v497_v25 = vld [vmem:[%s6993_s26 + $0x8] sm:$0xff]  ;;  %v499_v28 = vld [vmem:[%s6993_s26 + $0x18] sm:$0xff]  ;;  %v500_v36 = vld [vmem:[%s6993_s26 + $0x20] sm:$0xff]  ;;  %s6763_s22 = sshra.s32 %s5179_s17, 4  ;;  %s6764_s22 = int_to_ptr.hbm [resolvable:$true] %s6763_s22 }
  0x25   : > { %987 = vmatpush.bf16.msra.mxu2 %v5300_v11  ;;  %v6998_v27 = vpack.c.bf16 %v497_v25, %v496_v24  ;;  %v7001_v29 = vpack.c.bf16 %v499_v28, %v498_v26  ;;  %v501_v37 = vld [vmem:[%s6993_s26 + $0x28] sm:$0xff]  ;;  %v502_v45 = vld [vmem:[%s6993_s26 + $0x30] sm:$0xff]  ;;  %v503_v46 = vld [vmem:[%s6993_s26 + $0x38] sm:$0xff]  ;;  %p6770_p0 = scmp.lt.s32.totalorder %s6764_s22, %s9644_s15 }
  0x26   : > { %1076 = vmatpush.bf16.msra.mxu3 %v5304_v17  ;;  %v7021_v39 = vpack.c.bf16 %v501_v37, %v500_v36  ;;  %v7038_v47 = vpack.c.bf16 %v503_v46, %v502_v45  ;;  %v504_v53 = vld [vmem:[%s6993_s26 + $0x40] sm:$0xff]  ;;  %v505_v54 = vld [vmem:[%s6993_s26 + $0x48] sm:$0xff]  ;;  %v506_v61 = vld [vmem:[%s6993_s26 + $0x50] sm:$0xff] }
  0x27   : > { %757 = vmatpush.bf16.msra.mxu0 %v5252_v20  ;;  %9698 = vst [vmem:[#allocation10_spill] sm:$0xff] %v6998_v27  ;;  %v555_v30 = vshrl.u32 %v6998_v27, 16  ;;  %v557_v31 = vshll.u32 %v6998_v27, 16  ;;  %v562_v32 = vshll.u32 %v7001_v29, 16  ;;  %v566_v40 = vshrl.u32 %v7001_v29, 16  ;;  %v507_v62 = vld [vmem:[%s6993_s26 + $0x58] sm:$0xff] }
  0x28   : > { %846 = vmatpush.bf16.msra.mxu1 %v5256_v23  ;;  %9699 = vst [vmem:[#allocation11_spill] sm:$0xff] %v7001_v29  ;;  %5313 = vmatmul.msk.bf16.vlgmr.msra.gmra.mxu2 %vm701_vm0, %v6998_v27  ;;  %v570_v41 = vshll.u32 %v7021_v39, 16  ;;  %v574_v48 = vshrl.u32 %v7021_v39, 16  ;;  %v9673_v49 = vshll.u32 %v7038_v47, 16  ;;  %v7055_v55 = vpack.c.bf16 %v505_v54, %v504_v53  ;;  %v508_v5 = vld [vmem:[%s6993_s26 + $0x60] sm:$0xff]  ;;  %v509_v6 = vld [vmem:[%s6993_s26 + $0x68] sm:$0xff] }
  0x29   : > { %5329 = vmatmul.msk.bf16.vlgmr.msra.gmra.mxu3 %vm701_vm0, %v6998_v27  ;;  %v559_v33 = vrot.slane %v557_v31, 1  ;;  %v564_v34 = vrot.slane %v562_v32, 1  ;;  %9700 = vst [vmem:[#allocation12_spill] sm:$0xff] %v7021_v39  ;;  %v9675_v56 = vshrl.u32 %v7038_v47, 16  ;;  %v7072_v63 = vpack.c.bf16 %v507_v62, %v506_v61  ;;  %v510_v13 = vld [vmem:[%s6993_s26 + $0x70] sm:$0xff]  ;;  %v511_v14 = vld [vmem:[%s6993_s26 + $0x78] sm:$0xff] }
  0x2a   : > { %v572_v43 = vrot.slane %v570_v41, 1  ;;  %9701 = vst [vmem:[#allocation13_spill] sm:$0xff] %v7038_v47  ;;  %v580_v51 = vrot.slane %v9673_v49, 1  ;;  %v9671_v57 = vshll.u32 %v7055_v55, 16  ;;  %v9672_v0 = vshrl.u32 %v7055_v55, 16  ;;  %v512_v21 = vld [vmem:[%s6993_s26 + $0x80] sm:$0xff] }
  0x2b   : > { %v560_v35 = vor.u32 %v559_v33, %v555_v30  ;;  %v568_v42 = vor.u32 %v566_v40, %v564_v34  ;;  %9702 = vst [vmem:[#allocation14_spill] sm:$0xff] %v7055_v55  ;;  %v9667_v1 = vshll.u32 %v7072_v63, 16  ;;  %v7089_v7 = vpack.c.bf16 %v509_v6, %v508_v5  ;;  %v513_v22 = vld [vmem:[%s6993_s26 + $0x88] sm:$0xff]  ;;  %v516_v54 = vld [vmem:[%s6993_s26 + $0xa0] sm:$0xff] }
  0x2c   : > { %v576_v50 = vor.u32 %v574_v48, %v572_v43  ;;  %v584_v58 = vor.u32 %v9675_v56, %v580_v51  ;;  %v588_v59 = vrot.slane %v9671_v57, 1  ;;  %9703 = vst [vmem:[#allocation15_spill] sm:$0xff] %v7072_v63  ;;  %v9668_v8 = vshrl.u32 %v7072_v63, 16 }
  0x2d   : > { %v565_v38 = vsel %vm553_vm1, %v560_v35, %v564_v34  ;;  %v573_v44 = vsel %vm553_vm1, %v568_v42, %v572_v43  ;;  %v596_v3 = vrot.slane %v9667_v1, 1  ;;  %9704 = vst [vmem:[#allocation16_spill] sm:$0xff] %v7089_v7  ;;  %v9665_v9 = vshll.u32 %v7089_v7, 16  ;;  %v514_v34 = vld [vmem:[%s6993_s26 + $0x90] sm:$0xff]  ;;  %v515_v35 = vld [vmem:[%s6993_s26 + $0x98] sm:$0xff] }
  0x2e   : > { %5265 = vmatmul.msk.bf16.vlgmr.msra.gmra.mxu0 %vm701_vm0, %v565_v38  ;;  %5281 = vmatmul.msk.bf16.vlgmr.msra.gmra.mxu1 %vm701_vm0, %v565_v38  ;;  %v581_v52 = vsel %vm553_vm1, %v576_v50, %v580_v51  ;;  %v589_v60 = vsel %vm553_vm1, %v584_v58, %v588_v59  ;;  %v592_v2 = vor.u32 %v9672_v0, %v588_v59  ;;  %v9666_v16 = vshrl.u32 %v7089_v7, 16  ;;  %v517_v58 = vld [vmem:[%s6993_s26 + $0xa8] sm:$0xff] }
  0x2f   : > { %v600_v10 = vor.u32 %v9668_v8, %v596_v3  ;;  %v604_v11 = vrot.slane %v9665_v9, 1  ;;  %v7106_v15 = vpack.c.bf16 %v511_v14, %v510_v13  ;;  %v7123_v23 = vpack.c.bf16 %v513_v22, %v512_v21  ;;  %v518_v22 = vld [vmem:[%s6993_s26 + $0xb0] sm:$0xff] }
  0x30   : > { %v597_v4 = vsel %vm553_vm1, %v592_v2, %v596_v3  ;;  %v7140_v36 = vpack.c.bf16 %v515_v35, %v514_v34  ;;  %v7161_v59 = vpack.c.bf16 %v517_v58, %v516_v54  ;;  %v1528_v8 = vrot.slane %v557_v31, 2  ;;  %v5351_v31 = vld [vmem:[%s9696_s1 + $0x40] sm:$0xf] }
  0x31   : > { %v605_v12 = vsel %vm553_vm1, %v600_v10, %v604_v11  ;;  %9705 = vst [vmem:[#allocation17_spill] sm:$0xff] %v7106_v15  ;;  %v9661_v17 = vshll.u32 %v7106_v15, 16  ;;  %v608_v18 = vor.u32 %v9666_v16, %v604_v11  ;;  %v9664_v24 = vshrl.u32 %v7106_v15, 16 }
  0x32   : > { %9706 = vst [vmem:[#allocation18_spill] sm:$0xff] %v7123_v23  ;;  %v9659_v25 = vshll.u32 %v7123_v23, 16  ;;  %v9660_v37 = vshrl.u32 %v7123_v23, 16  ;;  %v9657_v38 = vshll.u32 %v7140_v36, 16  ;;  %v9658_v3 = vshrl.u32 %v7140_v36, 16 }
  0x33   : > { %v612_v19 = vrot.slane %v9661_v17, 1  ;;  %9707 = vst [vmem:[#allocation19_spill] sm:$0xff] %v7140_v36  ;;  %v527_v17 = vld [vmem:[%s6993_s26 + $0xf8] sm:$0xff] }
  0x34   : > { %v620_v28 = vrot.slane %v9659_v25, 1  ;;  %v628_v43 = vrot.slane %v9657_v38, 1 }
  0x35   : > { %v613_v20 = vsel %vm553_vm1, %v608_v18, %v612_v19  ;;  %v616_v26 = vor.u32 %v9664_v24, %v612_v19 }
  0x36   : > { %v624_v42 = vor.u32 %v9660_v37, %v620_v28  ;;  %v632_v10 = vor.u32 %v9658_v3, %v628_v43 }
  0x37   : > { %v621_v33 = vsel %vm553_vm1, %v616_v26, %v620_v28  ;;  %v519_v26 = vld [vmem:[%s6993_s26 + $0xb8] sm:$0xff] }
  0x38   : > { %5314 = vmatmul.msk.bf16.gmra.mxu2 %vm701_vm0, %v7001_v29  ;;  %v629_v51 = vsel %vm553_vm1, %v624_v42, %v628_v43  ;;  %v7186_v28 = vpack.c.bf16 %v519_v26, %v518_v22  ;;  %v9654_v43 = vshrl.u32 %v7161_v59, 16 }
  0x39   : > { %5330 = vmatmul.msk.bf16.gmra.mxu3 %vm701_vm0, %v7001_v29 }
  0x3a   : > { %v9652_v26 = vshrl.u32 %v7186_v28, 16 }
  0x3e   : > { %5266 = vmatmul.msk.bf16.gmra.mxu0 %vm701_vm0, %v573_v44  ;;  %5282 = vmatmul.msk.bf16.gmra.mxu1 %vm701_vm0, %v573_v44 }
  0x48   : > { %5315 = vmatmul.msk.bf16.gmra.mxu2 %vm701_vm0, %v7021_v39 }
  0x49   : > { %5331 = vmatmul.msk.bf16.gmra.mxu3 %vm701_vm0, %v7021_v39 }
  0x4e   : > { %5267 = vmatmul.msk.bf16.gmra.mxu0 %vm701_vm0, %v581_v52  ;;  %5283 = vmatmul.msk.bf16.gmra.mxu1 %vm701_vm0, %v581_v52 }
  0x58   : > { %5316 = vmatmul.msk.bf16.gmra.mxu2 %vm701_vm0, %v7038_v47 }
  0x59   : > { %5332 = vmatmul.msk.bf16.gmra.mxu3 %vm701_vm0, %v7038_v47 }
  0x5e   : > { %5268 = vmatmul.msk.bf16.gmra.mxu0 %vm701_vm0, %v589_v60  ;;  %5284 = vmatmul.msk.bf16.gmra.mxu1 %vm701_vm0, %v589_v60 }
  0x68   : > { %5317 = vmatmul.msk.bf16.gmra.mxu2 %vm701_vm0, %v7055_v55 }
  0x69   : > { %5333 = vmatmul.msk.bf16.gmra.mxu3 %vm701_vm0, %v7055_v55 }
  0x6e   : > { %5269 = vmatmul.msk.bf16.gmra.mxu0 %vm701_vm0, %v597_v4  ;;  %5285 = vmatmul.msk.bf16.gmra.mxu1 %vm701_vm0, %v597_v4  ;;  %v9653_v4 = vshll.u32 %v7161_v59, 16 }
  0x70   : > { %v636_v11 = vrot.slane %v9653_v4, 1 }
  0x72   : > { %v637_v19 = vsel %vm553_vm1, %v632_v10, %v636_v11 }
  0x78   : > { %5318 = vmatmul.msk.bf16.gmra.mxu2 %vm701_vm0, %v7072_v63 }
  0x79   : > { %5334 = vmatmul.msk.bf16.gmra.mxu3 %vm701_vm0, %v7072_v63 }
  0x7e   : > { %5270 = vmatmul.msk.bf16.gmra.mxu0 %vm701_vm0, %v605_v12  ;;  %5286 = vmatmul.msk.bf16.gmra.mxu1 %vm701_vm0, %v605_v12 }
  0x88   : > { %5319 = vmatmul.msk.bf16.gmra.mxu2 %vm701_vm0, %v7089_v7 }
  0x89   : > { %5335 = vmatmul.msk.bf16.gmra.mxu3 %vm701_vm0, %v7089_v7 }
  0x8e   : > { %5271 = vmatmul.msk.bf16.gmra.mxu0 %vm701_vm0, %v613_v20  ;;  %5287 = vmatmul.msk.bf16.gmra.mxu1 %vm701_vm0, %v613_v20 }
  0x98   : > { %5320 = vmatmul.msk.bf16.gmra.mxu2 %vm701_vm0, %v7106_v15 }
  0x99   : > { %5336 = vmatmul.msk.bf16.gmra.mxu3 %vm701_vm0, %v7106_v15 }
  0x9e   : > { %5272 = vmatmul.msk.bf16.gmra.mxu0 %vm701_vm0, %v621_v33  ;;  %5288 = vmatmul.msk.bf16.gmra.mxu1 %vm701_vm0, %v621_v33 }
  0xa8   : > { %5321 = vmatmul.msk.bf16.gmra.mxu2 %vm701_vm0, %v7123_v23 }
  0xa9   : > { %5337 = vmatmul.msk.bf16.gmra.mxu3 %vm701_vm0, %v7123_v23 }
  0xab   : > { %v989_v44 = vpop.f32.mrf.mxu2  ;;  %v759_v46 = vpop.f32.mrf.mxu0 }
  0xac   : > { %v1078_v45 = vpop.f32.mrf.mxu3  ;;  %v848_v50 = vpop.f32.mrf.mxu1  ;;  %v7153_v52 = vadd.f32 %v989_v44, %v759_v46  ;;  %v9651_v44 = vshll.u32 %v7186_v28, 16 }
  0xad   : > { %v7155_v53 = vadd.f32 %v1078_v45, %v848_v50  ;;  %v640_v50 = vor.u32 %v9654_v43, %v636_v11  ;;  %v525_v43 = vld [vmem:[%s6993_s26 + $0xe8] sm:$0xff] }
  0xae   : > { %5273 = vmatmul.msk.bf16.gmra.mxu0 %vm701_vm0, %v629_v51  ;;  %5289 = vmatmul.msk.bf16.gmra.mxu1 %vm701_vm0, %v629_v51  ;;  %v644_v51 = vrot.slane %v9651_v44, 1 }
  0xb3   : > { %v991_v60 = vpop.f32.mrf.mxu2  ;;  %v761_v62 = vpop.f32.mrf.mxu0 }
  0xb4   : > { %v1080_v61 = vpop.f32.mrf.mxu3  ;;  %v850_v2 = vpop.f32.mrf.mxu1  ;;  %v7165_v5 = vadd.f32 %v991_v60, %v761_v62  ;;  %v645_v62 = vsel %vm553_vm1, %v640_v50, %v644_v51 }
  0xb5   : > { %v7167_v6 = vadd.f32 %v1080_v61, %v850_v2 }
  0xb8   : > { %5322 = vmatmul.msk.bf16.gmra.mxu2 %vm701_vm0, %v7140_v36 }
  0xb9   : > { %5338 = vmatmul.msk.bf16.gmra.mxu3 %vm701_vm0, %v7140_v36 }
  0xbb   : > { %v994_v12 = vpop.f32.mrf.mxu2  ;;  %v764_v14 = vpop.f32.mrf.mxu0 }
  0xbc   : > { %v1083_v13 = vpop.f32.mrf.mxu3  ;;  %v853_v18 = vpop.f32.mrf.mxu1  ;;  %v7178_v20 = vadd.f32 %v994_v12, %v764_v14  ;;  %v520_v12 = vld [vmem:[%s6993_s26 + $0xc0] sm:$0xff] }
  0xbd   : > { %v7180_v21 = vadd.f32 %v1083_v13, %v853_v18  ;;  %v521_v13 = vld [vmem:[%s6993_s26 + $0xc8] sm:$0xff] }
  0xbe   : > { %5274 = vmatmul.msk.bf16.gmra.mxu0 %vm701_vm0, %v637_v19  ;;  %5290 = vmatmul.msk.bf16.gmra.mxu1 %vm701_vm0, %v637_v19  ;;  %v7211_v11 = vpack.c.bf16 %v521_v13, %v520_v12 }
  0xc3   : > { %v996_v33 = vpop.f32.mrf.mxu2  ;;  %v766_v35 = vpop.f32.mrf.mxu0 }
  0xc4   : > { %v1085_v34 = vpop.f32.mrf.mxu3  ;;  %v855_v42 = vpop.f32.mrf.mxu1  ;;  %v7190_v45 = vadd.f32 %v996_v33, %v766_v35  ;;  %v9650_v33 = vshll.u32 %v7211_v11, 16 }
  0xc5   : > { %v7192_v46 = vadd.f32 %v1085_v34, %v855_v42  ;;  %v648_v42 = vor.u32 %v9652_v26, %v644_v51  ;;  %v9656_v26 = vshrl.u32 %v7211_v11, 16 }
  0xc6   : > { %v652_v50 = vrot.slane %v9650_v33, 1 }
  0xc8   : > { %5323 = vmatmul.msk.bf16.gmra.mxu2 %vm701_vm0, %v7161_v59 }
  0xc9   : > { %5339 = vmatmul.msk.bf16.gmra.mxu3 %vm701_vm0, %v7161_v59 }
  0xcb   : > { %v999_v54 = vpop.f32.mrf.mxu2  ;;  %v769_v60 = vpop.f32.mrf.mxu0 }
  0xcc   : > { %v1088_v58 = vpop.f32.mrf.mxu3  ;;  %v858_v61 = vpop.f32.mrf.mxu1  ;;  %v7203_v2 = vadd.f32 %v999_v54, %v769_v60 }
  0xcd   : > { %v7205_v10 = vadd.f32 %v1088_v58, %v858_v61 }
  0xce   : > { %5275 = vmatmul.msk.bf16.gmra.mxu0 %vm701_vm0, %v645_v62  ;;  %5291 = vmatmul.msk.bf16.gmra.mxu1 %vm701_vm0, %v645_v62  ;;  %v653_v62 = vsel %vm553_vm1, %v648_v42, %v652_v50 }
  0xd3   : > { %v1001_v14 = vpop.f32.mrf.mxu2  ;;  %v771_v19 = vpop.f32.mrf.mxu0 }
  0xd4   : > { %v1090_v18 = vpop.f32.mrf.mxu3  ;;  %v860_v22 = vpop.f32.mrf.mxu1  ;;  %v7215_v34 = vadd.f32 %v1001_v14, %v771_v19  ;;  %v522_v14 = vld [vmem:[%s6993_s26 + $0xd0] sm:$0xff] }
  0xd5   : > { %v7217_v35 = vadd.f32 %v1090_v18, %v860_v22  ;;  %v523_v18 = vld [vmem:[%s6993_s26 + $0xd8] sm:$0xff] }
  0xd6   : > { %v7236_v51 = vpack.c.bf16 %v523_v18, %v522_v14 }
  0xd8   : > { %5324 = vmatmul.msk.bf16.gmra.mxu2 %vm701_vm0, %v7186_v28  ;;  %v9655_v42 = vshll.u32 %v7236_v51, 16  ;;  %v9663_v38 = vshrl.u32 %v7236_v51, 16 }
  0xd9   : > { %5340 = vmatmul.msk.bf16.gmra.mxu3 %vm701_vm0, %v7186_v28 }
  0xdb   : > { %v1004_v54 = vpop.f32.mrf.mxu2  ;;  %v774_v60 = vpop.f32.mrf.mxu0 }
  0xdc   : > { %v1093_v58 = vpop.f32.mrf.mxu3  ;;  %v863_v61 = vpop.f32.mrf.mxu1  ;;  %v7228_v12 = vadd.f32 %v1004_v54, %v774_v60  ;;  %v656_v60 = vor.u32 %v9656_v26, %v652_v50  ;;  %v5359_v50 = vld [vmem:[%s9696_s1 + $0x50] sm:$0xf] }
  0xdd   : > { %v7230_v13 = vadd.f32 %v1093_v58, %v863_v61  ;;  %v660_v61 = vrot.slane %v9655_v42, 1  ;;  %v6199_v42 = vld [vmem:[%s9696_s1 + $0x54] sm:$0xf0] }
  0xde   : > { %5276 = vmatmul.msk.bf16.gmra.mxu0 %vm701_vm0, %v653_v62  ;;  %5292 = vmatmul.msk.bf16.gmra.mxu1 %vm701_vm0, %v653_v62 }
  0xe3   : > { %v1006_v19 = vpop.f32.mrf.mxu2  ;;  %v776_v33 = vpop.f32.mrf.mxu0 }
  0xe4   : > { %v1095_v22 = vpop.f32.mrf.mxu3  ;;  %v865_v44 = vpop.f32.mrf.mxu1  ;;  %v7240_v54 = vadd.f32 %v1006_v19, %v776_v33  ;;  %v661_v33 = vsel %vm553_vm1, %v656_v60, %v660_v61  ;;  %v5360_v60 = vor.u32 %v6199_v42, %v5359_v50 }
  0xe5   : > { %v7242_v58 = vadd.f32 %v1095_v22, %v865_v44  ;;  %v524_v22 = vld [vmem:[%s6993_s26 + $0xe0] sm:$0xff] }
  0xe6   : > { %v7267_v26 = vpack.c.bf16 %v525_v43, %v524_v22  ;;  %1285 = vmatpush.bf16.msrb.mxu0 %v5360_v60  ;;  %v664_v43 = vor.u32 %v9663_v38, %v660_v61  ;;  %v1531_v61 = vrot.slane %v562_v32, 2  ;;  %v5413_v32 = vld [vmem:[%s9696_s1 + $0x78] sm:$0xf0] }
  0xe8   : > { %5325 = vmatmul.msk.bf16.gmra.mxu2 %vm701_vm0, %v7211_v11  ;;  %v9670_v9 = vshrl.u32 %v7267_v26, 16 }
  0xe9   : > { %5341 = vmatmul.msk.bf16.gmra.mxu3 %vm701_vm0, %v7211_v11 }
  0xeb   : > { %v1009_v62 = vpop.f32.mrf.mxu2  ;;  %v779_v18 = vpop.f32.mrf.mxu0 }
  0xec   : > { %v1098_v14 = vpop.f32.mrf.mxu3  ;;  %v868_v4 = vpop.f32.mrf.mxu1  ;;  %v7253_v44 = vadd.f32 %v1009_v62, %v779_v18 }
  0xed   : > { %v7255_v19 = vadd.f32 %v1098_v14, %v868_v4 }
  0xee   : > { %5277 = vmatmul.msk.bf16.gmra.mxu0 %vm701_vm0, %v661_v33  ;;  %5293 = vmatmul.msk.bf16.gmra.mxu1 %vm701_vm0, %v661_v33  ;;  %v9662_v33 = vshll.u32 %v7267_v26, 16 }
  0xf0   : > { %v668_v42 = vrot.slane %v9662_v33, 1  ;;  %v1530_v33 = vrot.slane %v566_v40, 1 }
  0xf3   : > { %v1011_v4 = vpop.f32.mrf.mxu2  ;;  %v781_v14 = vpop.f32.mrf.mxu0 }
  0xf4   : > { %v1100_v62 = vpop.f32.mrf.mxu3  ;;  %v870_v18 = vpop.f32.mrf.mxu1  ;;  %v7271_v3 = vadd.f32 %v1011_v4, %v781_v14  ;;  %v669_v4 = vsel %vm553_vm1, %v664_v43, %v668_v42  ;;  %v5411_v43 = vld [vmem:[%s9696_s1 + $0x70] sm:$0xf] }
  0xf5   : > { %v7273_v25 = vadd.f32 %v1100_v62, %v870_v18  ;;  %v526_v18 = vld [vmem:[%s6993_s26 + $0xf0] sm:$0xff]  ;;  %s5242_s26 = sshll.u32 %s486_s18, 3 }
  0xf6   : > { %v7296_v38 = vpack.c.bf16 %v527_v17, %v526_v18  ;;  %s488_s30 = scalar_lea.vmem [#allocation2], %s5242_s26 }
  0xf7   : > { %s5176_s16 = sshll.u32 %s488_s30, 4  ;;  %s5177_s16 = int_to_ptr.vmem [resolvable:$true] %s5176_s16 }
  0xf8   : > { %5326 = vmatmul.msk.bf16.gmra.mxu2 %vm701_vm0, %v7236_v51  ;;  %9708 = vst [vmem:[#allocation20_spill] sm:$0xff] %v7296_v38  ;;  %v9669_v16 = vshll.u32 %v7296_v38, 16 }
  0xf9   : > { %5342 = vmatmul.msk.bf16.gmra.mxu3 %vm701_vm0, %v7236_v51 }
  0xfb   : > { %v1014_v22 = vpop.f32.mrf.mxu2  ;;  %v784_v60 = vpop.f32.mrf.mxu0 }
  0xfc   : > { %v1103_v50 = vpop.f32.mrf.mxu3  ;;  %v873_v37 = vpop.f32.mrf.mxu1  ;;  %v7284_v62 = vadd.f32 %v1014_v22, %v784_v60  ;;  %v6202_v22 = vld [vmem:[%s9696_s1 + $0x74] sm:$0xf] }
  0xfd   : > { %v7286_v14 = vadd.f32 %v1103_v50, %v873_v37  ;;  %v6203_v37 = vld [vmem:[%s9696_s1 + $0x74] sm:$0xf0]  ;;  %v5416_v60 = vor.u32 %v6202_v22, %v5413_v32  ;;  %v5403_v22 = vld [vmem:[%s9696_s1 + $0x60] sm:$0xf]  ;;  %v7327_v32 = vor.u32 %v1531_v61, %v1530_v33  ;;  %v672_v33 = vor.u32 %v9670_v9, %v668_v42 }
  0xfe   : > { %5278 = vmatmul.msk.bf16.gmra.mxu0 %vm701_vm0, %v669_v4  ;;  %5294 = vmatmul.msk.bf16.gmra.mxu1 %vm701_vm0, %v669_v4  ;;  %v5412_v50 = vor.u32 %v6203_v37, %v5411_v43  ;;  %v1527_v4 = vrot.slane %v555_v30, 1  ;;  %v6198_v37 = vld [vmem:[%s9696_s1 + $0x54] sm:$0xf]  ;;  %v5361_v30 = vld [vmem:[%s9696_s1 + $0x58] sm:$0xf0]  ;;  %v676_v61 = vrot.slane %v9669_v16, 1 }
  0xff   : > { %1753 = vmatpush.bf16.msrb.mxu3 %v5416_v60 }
 0x100   : > { %1664 = vmatpush.bf16.msrb.mxu2 %v5412_v50  ;;  %v5364_v50 = vor.u32 %v6198_v37, %v5361_v30  ;;  %v1529_v37 = vor.u32 %v1528_v8, %v1527_v4  ;;  %v6197_v30 = vld [vmem:[%s9696_s1 + $0x44] sm:$0xf0]  ;;  %v677_v16 = vsel %vm553_vm1, %v672_v33, %v676_v61  ;;  %v9674_v33 = vshrl.u32 %v7296_v38, 16 }
 0x101   : > { %v5352_v42 = vor.u32 %v6197_v30, %v5351_v31 }
 0x102   : > { %1374 = vmatpush.bf16.msrb.mxu1 %v5364_v50  ;;  %v5353_v50 = vld [vmem:[%s9696_s1 + $0x48] sm:$0xf0]  ;;  %v1533_v4 = vsel %vm1526_vm2, %v1529_v37, %v7327_v32 }
 0x103   : > { %v1016_v40 = vpop.f32.mrf.mxu2  ;;  %v786_v18 = vpop.f32.mrf.mxu0  ;;  %1286 = vmatpush.bf16.msrb.mxu0 %v5352_v42 }
 0x104   : > { %v1105_v17 = vpop.f32.mrf.mxu3  ;;  %v875_v24 = vpop.f32.mrf.mxu1  ;;  %v7314_v1 = vadd.f32 %v1016_v40, %v786_v18  ;;  %v6200_v40 = vld [vmem:[%s9696_s1 + $0x64] sm:$0xf] }
 0x105   : > { %v7316_v43 = vadd.f32 %v1105_v17, %v875_v24  ;;  %v6201_v24 = vld [vmem:[%s9696_s1 + $0x64] sm:$0xf0]  ;;  %v5405_v17 = vld [vmem:[%s9696_s1 + $0x68] sm:$0xf0] }
 0x106   : > { %v5404_v60 = vor.u32 %v6201_v24, %v5403_v22  ;;  %v5408_v18 = vor.u32 %v6200_v40, %v5405_v17  ;;  %v6196_v22 = vld [vmem:[%s9696_s1 + $0x44] sm:$0xf] }
 0x107   : > { %v5356_v40 = vor.u32 %v6196_v22, %v5353_v50 }
 0x108   : > { %5327 = vmatmul.msk.bf16.gmra.mxu2 %vm701_vm0, %v7267_v26  ;;  %1754 = vmatpush.bf16.msrb.mxu3 %v5408_v18 }
 0x109   : > { %5343 = vmatmul.msk.bf16.gmra.mxu3 %vm701_vm0, %v7267_v26  ;;  %1665 = vmatpush.bf16.msrb.mxu2 %v5404_v60 }
 0x10a   : > { %1375 = vmatpush.bf16.msrb.mxu1 %v5356_v40 }
 0x10b   : > { %v1019_v24 = vpop.f32.mrf.mxu2  ;;  %v789_v17 = vpop.f32.mrf.mxu0 }
 0x10c   : > { %v1108_v8 = vpop.f32.mrf.mxu3  ;;  %v878_v60 = vpop.f32.mrf.mxu1  ;;  %v7363_v9 = vadd.f32 %v1019_v24, %v789_v17 }
 0x10d   : > { %v7365_v57 = vadd.f32 %v1108_v8, %v878_v60 }
 0x10e   : > { %5279 = vmatmul.msk.bf16.gmra.mxu0 %vm701_vm0, %v677_v16  ;;  %5295 = vmatmul.msk.bf16.gmra.mxu1 %vm701_vm0, %v677_v16  ;;  %v680_v16 = vor.u32 %v9674_v33, %v676_v61  ;;  %v1180_v61 = vrot.slane %v6998_v27, 1 }
 0x113   : > { %v1021_v18 = vpop.f32.mrf.mxu2  ;;  %v791_v30 = vpop.f32.mrf.mxu0 }
 0x114   : > { %v1110_v31 = vpop.f32.mrf.mxu3  ;;  %v880_v0 = vpop.f32.mrf.mxu1  ;;  %v7369_v37 = vadd.f32 %v1021_v18, %v791_v30 }
 0x115   : > { %v7371_v22 = vadd.f32 %v1110_v31, %v880_v0 }
 0x118   : > { %5328 = vmatmul.msk.bf16.gmra.mxu2 %vm701_vm0, %v7296_v38 }
 0x119   : > { %5344 = vmatmul.msk.bf16.gmra.mxu3 %vm701_vm0, %v7296_v38 }
 0x11b   : > { %v1024_v42 = vpop.f32.mrf.mxu2  ;;  %v794_v24 = vpop.f32.mrf.mxu0 }
 0x11c   : > { %v1113_v50 = vpop.f32.mrf.mxu3  ;;  %v883_v8 = vpop.f32.mrf.mxu1  ;;  %v7380_v40 = vadd.f32 %v1024_v42, %v794_v24  ;;  %v1181_v42 = vrot.slane %v7001_v29, 1 }
 0x11d   : > { %v7382_v17 = vadd.f32 %v1113_v50, %v883_v8 }
 0x11e   : > { %5280 = vmatmul.msk.bf16.gmra.mxu0 %vm701_vm0, %v680_v16  ;;  %5296 = vmatmul.msk.bf16.gmra.mxu1 %vm701_vm0, %v680_v16  ;;  %v1182_v33 = vsel %vm1179_vm3, %v1180_v61, %v1181_v42 }
 0x123   : > { %v1026_v0 = vpop.f32.mrf.mxu2  ;;  %v796_v18 = vpop.f32.mrf.mxu0 }
 0x124   : > { %v1115_v60 = vpop.f32.mrf.mxu3  ;;  %v885_v31 = vpop.f32.mrf.mxu1  ;;  %v7386_v30 = vadd.f32 %v1026_v0, %v796_v18 }
 0x125   : > { %v7388_v49 = vadd.f32 %v1115_v60, %v885_v31  ;;  %v1534_v60 = vrot.slane %v574_v48, 1 }
 0x127   : > { %9709 = vst [vmem:[#allocation21_spill] sm:$0xff] %v7388_v49 }
 0x128   : > { %5417 = vmatmul.msk.bf16.vlgmr.msrb.gmra.mxu2 %vm701_vm0, %v1533_v4 }
 0x129   : > { %5433 = vmatmul.msk.bf16.vlgmr.msrb.gmra.mxu3 %vm701_vm0, %v1533_v4  ;;  %v1535_v4 = vrot.slane %v570_v41, 2  ;;  %v1183_v41 = vrot.slane %v7021_v39, 1 }
 0x12b   : > { %v1029_v50 = vpop.f32.mrf.mxu2  ;;  %v799_v16 = vpop.f32.mrf.mxu0  ;;  %v1536_v18 = vor.u32 %v1535_v4, %v1534_v60  ;;  %v1184_v60 = vsel %vm1179_vm3, %v1181_v42, %v1183_v41 }
 0x12c   : > { %v1118_v24 = vpop.f32.mrf.mxu3  ;;  %v888_v8 = vpop.f32.mrf.mxu1  ;;  %v7395_v56 = vadd.f32 %v1029_v50, %v799_v16 }
 0x12d   : > { %v7397_v0 = vadd.f32 %v1118_v24, %v888_v8  ;;  %v1537_v24 = vsel %vm1526_vm2, %v7327_v32, %v1536_v18  ;;  %v9715_v32 = vshll.u32 %v7038_v47, 16 }
 0x12e   : > { %5365 = vmatmul.msk.bf16.vlgmr.msrb.gmra.mxu0 %vm701_vm0, %v1182_v33  ;;  %5381 = vmatmul.msk.bf16.vlgmr.msrb.gmra.mxu1 %vm701_vm0, %v1182_v33 }
 0x12f   : > { %9710 = vst [vmem:[#allocation22_spill] sm:$0xff] %v7397_v0 }
 0x133   : > { %v1031_v31 = vpop.f32.mrf.mxu2  ;;  %v801_v27 = vpop.f32.mrf.mxu0 }
 0x134   : > { %v1120_v29 = vpop.f32.mrf.mxu3  ;;  %v890_v49 = vpop.f32.mrf.mxu1  ;;  %v7405_v61 = vadd.f32 %v1031_v31, %v801_v27  ;;  %v1539_v31 = vrot.slane %v9715_v32, 2 }
 0x135   : > { %v7407_v50 = vadd.f32 %v1120_v29, %v890_v49  ;;  %v9714_v29 = vshrl.u32 %v7038_v47, 16 }
 0x136   : > { %9711 = vst [vmem:[#allocation23_spill] sm:$0xff] %v7405_v61 }
 0x137   : > { %9712 = vst [vmem:[#allocation24_spill] sm:$0xff] %v7407_v50  ;;  %v1538_v49 = vrot.slane %v9714_v29, 1 }
 0x138   : > { %5418 = vmatmul.msk.bf16.gmra.mxu2 %vm701_vm0, %v1537_v24 }
 0x139   : > { %5434 = vmatmul.msk.bf16.gmra.mxu3 %vm701_vm0, %v1537_v24  ;;  %v1540_v24 = vor.u32 %v1539_v31, %v1538_v49 }
 0x13b   : > { %v1034_v48 = vpop.f32.mrf.mxu2  ;;  %v804_v16 = vpop.f32.mrf.mxu0 }
 0x13c   : > { %v1123_v33 = vpop.f32.mrf.mxu3  ;;  %v893_v8 = vpop.f32.mrf.mxu1  ;;  %v7415_v4 = vadd.f32 %v1034_v48, %v804_v16  ;;  %v1185_v16 = vrot.slane %v7038_v47, 1 }
 0x13d   : > { %v7417_v27 = vadd.f32 %v1123_v33, %v893_v8  ;;  %v1541_v33 = vsel %vm1526_vm2, %v1536_v18, %v1540_v24  ;;  %v9720_v18 = vshll.u32 %v7055_v55, 16 }
 0x13e   : > { %5366 = vmatmul.msk.bf16.gmra.mxu0 %vm701_vm0, %v1184_v60  ;;  %5382 = vmatmul.msk.bf16.gmra.mxu1 %vm701_vm0, %v1184_v60  ;;  %v1186_v32 = vsel %vm1179_vm3, %v1183_v41, %v1185_v16 }
 0x13f   : > { %9713 = vst [vmem:[#allocation25_spill] sm:$0xff] %v7417_v27 }
 0x143   : > { %v1036_v39 = vpop.f32.mrf.mxu2  ;;  %v806_v61 = vpop.f32.mrf.mxu0 }
 0x144   : > { %v1125_v50 = vpop.f32.mrf.mxu3  ;;  %v895_v0 = vpop.f32.mrf.mxu1  ;;  %v7425_v42 = vadd.f32 %v1036_v39, %v806_v61 }
 0x145   : > { %v7427_v48 = vadd.f32 %v1125_v50, %v895_v0  ;;  %v9719_v0 = vshrl.u32 %v7055_v55, 16  ;;  %v1543_v50 = vrot.slane %v9720_v18, 2 }
 0x146   : > { %9716 = vst [vmem:[#allocation26_spill] sm:$0xff] %v7425_v42 }
 0x147   : > { %9717 = vst [vmem:[#allocation27_spill] sm:$0xff] %v7427_v48  ;;  %v1542_v61 = vrot.slane %v9719_v0, 1 }
 0x148   : > { %5419 = vmatmul.msk.bf16.gmra.mxu2 %vm701_vm0, %v1541_v33 }
 0x149   : > { %5435 = vmatmul.msk.bf16.gmra.mxu3 %vm701_vm0, %v1541_v33  ;;  %v1544_v33 = vor.u32 %v1543_v50, %v1542_v61 }
 0x14b   : > { %v1039_v8 = vpop.f32.mrf.mxu2  ;;  %v809_v60 = vpop.f32.mrf.mxu0 }
 0x14c   : > { %v1128_v29 = vpop.f32.mrf.mxu3  ;;  %v898_v49 = vpop.f32.mrf.mxu1  ;;  %v7434_v31 = vadd.f32 %v1039_v8, %v809_v60  ;;  %v1187_v60 = vrot.slane %v7055_v55, 1 }
 0x14d   : > { %v7436_v39 = vadd.f32 %v1128_v29, %v898_v49  ;;  %v1545_v29 = vsel %vm1526_vm2, %v1540_v24, %v1544_v33  ;;  %v9725_v24 = vshll.u32 %v7072_v63, 16 }
 0x14e   : > { %5367 = vmatmul.msk.bf16.gmra.mxu0 %vm701_vm0, %v1186_v32  ;;  %5383 = vmatmul.msk.bf16.gmra.mxu1 %vm701_vm0, %v1186_v32  ;;  %v1188_v18 = vsel %vm1179_vm3, %v1185_v16, %v1187_v60 }
 0x14f   : > { %9718 = vst [vmem:[#allocation28_spill] sm:$0xff] %v7436_v39 }
 0x153   : > { %v1041_v47 = vpop.f32.mrf.mxu2  ;;  %v811_v42 = vpop.f32.mrf.mxu0 }
 0x154   : > { %v1130_v48 = vpop.f32.mrf.mxu3  ;;  %v900_v27 = vpop.f32.mrf.mxu1  ;;  %v7444_v41 = vadd.f32 %v1041_v47, %v811_v42 }
 0x155   : > { %v7446_v8 = vadd.f32 %v1130_v48, %v900_v27  ;;  %v9724_v27 = vshrl.u32 %v7072_v63, 16  ;;  %v1547_v48 = vrot.slane %v9725_v24, 2 }
 0x156   : > { %9721 = vst [vmem:[#allocation29_spill] sm:$0xff] %v7444_v41 }
 0x157   : > { %9722 = vst [vmem:[#allocation30_spill] sm:$0xff] %v7446_v8  ;;  %v1546_v42 = vrot.slane %v9724_v27, 1 }
 0x158   : > { %5420 = vmatmul.msk.bf16.gmra.mxu2 %vm701_vm0, %v1545_v29 }
 0x159   : > { %5436 = vmatmul.msk.bf16.gmra.mxu3 %vm701_vm0, %v1545_v29  ;;  %v1548_v29 = vor.u32 %v1547_v48, %v1546_v42 }
 0x15b   : > { %v1044_v49 = vpop.f32.mrf.mxu2  ;;  %v814_v32 = vpop.f32.mrf.mxu0 }
 0x15c   : > { %v1133_v0 = vpop.f32.mrf.mxu3  ;;  %v903_v61 = vpop.f32.mrf.mxu1  ;;  %v7453_v50 = vadd.f32 %v1044_v49, %v814_v32  ;;  %v1189_v32 = vrot.slane %v7072_v63, 1 }
 0x15d   : > { %v7455_v47 = vadd.f32 %v1133_v0, %v903_v61  ;;  %v1549_v0 = vsel %vm1526_vm2, %v1544_v33, %v1548_v29  ;;  %v9730_v33 = vshll.u32 %v7089_v7, 16 }
 0x15e   : > { %5368 = vmatmul.msk.bf16.gmra.mxu0 %vm701_vm0, %v1188_v18  ;;  %5384 = vmatmul.msk.bf16.gmra.mxu1 %vm701_vm0, %v1188_v18  ;;  %v1190_v24 = vsel %vm1179_vm3, %v1187_v60, %v1189_v32 }
 0x15f   : > { %9723 = vst [vmem:[#allocation31_spill] sm:$0xff] %v7455_v47 }
 0x163   : > { %v1046_v55 = vpop.f32.mrf.mxu2  ;;  %v816_v41 = vpop.f32.mrf.mxu0 }
 0x164   : > { %v1135_v8 = vpop.f32.mrf.mxu3  ;;  %v905_v39 = vpop.f32.mrf.mxu1  ;;  %v7463_v16 = vadd.f32 %v1046_v55, %v816_v41 }
 0x165   : > { %v7465_v49 = vadd.f32 %v1135_v8, %v905_v39  ;;  %v9729_v39 = vshrl.u32 %v7089_v7, 16  ;;  %v1551_v8 = vrot.slane %v9730_v33, 2 }
 0x166   : > { %9726 = vst [vmem:[#allocation32_spill] sm:$0xff] %v7463_v16 }
 0x167   : > { %9727 = vst [vmem:[#allocation33_spill] sm:$0xff] %v7465_v49  ;;  %v1550_v41 = vrot.slane %v9729_v39, 1 }
 0x168   : > { %5421 = vmatmul.msk.bf16.gmra.mxu2 %vm701_vm0, %v1549_v0 }
 0x169   : > { %5437 = vmatmul.msk.bf16.gmra.mxu3 %vm701_vm0, %v1549_v0  ;;  %v1552_v0 = vor.u32 %v1551_v8, %v1550_v41 }
 0x16b   : > { %v1049_v61 = vpop.f32.mrf.mxu2  ;;  %v819_v18 = vpop.f32.mrf.mxu0 }
 0x16c   : > { %v1138_v27 = vpop.f32.mrf.mxu3  ;;  %v908_v42 = vpop.f32.mrf.mxu1  ;;  %v7472_v48 = vadd.f32 %v1049_v61, %v819_v18  ;;  %v1191_v18 = vrot.slane %v7089_v7, 1 }
 0x16d   : > { %v7474_v55 = vadd.f32 %v1138_v27, %v908_v42  ;;  %v1553_v27 = vsel %vm1526_vm2, %v1548_v29, %v1552_v0  ;;  %v9735_v29 = vshll.u32 %v7106_v15, 16 }
 0x16e   : > { %5369 = vmatmul.msk.bf16.gmra.mxu0 %vm701_vm0, %v1190_v24  ;;  %5385 = vmatmul.msk.bf16.gmra.mxu1 %vm701_vm0, %v1190_v24  ;;  %v1192_v33 = vsel %vm1179_vm3, %v1189_v32, %v1191_v18 }
 0x16f   : > { %9728 = vst [vmem:[#allocation34_spill] sm:$0xff] %v7474_v55 }
 0x173   : > { %v1051_v63 = vpop.f32.mrf.mxu2  ;;  %v821_v16 = vpop.f32.mrf.mxu0 }
 0x174   : > { %v1140_v49 = vpop.f32.mrf.mxu3  ;;  %v910_v47 = vpop.f32.mrf.mxu1  ;;  %v7482_v60 = vadd.f32 %v1051_v63, %v821_v16 }
 0x175   : > { %v7484_v61 = vadd.f32 %v1140_v49, %v910_v47  ;;  %v9734_v47 = vshrl.u32 %v7106_v15, 16  ;;  %v1555_v49 = vrot.slane %v9735_v29, 2 }
 0x176   : > { %9731 = vst [vmem:[#allocation35_spill] sm:$0xff] %v7482_v60 }
 0x177   : > { %9732 = vst [vmem:[#allocation36_spill] sm:$0xff] %v7484_v61  ;;  %v1554_v16 = vrot.slane %v9734_v47, 1 }
 0x178   : > { %5422 = vmatmul.msk.bf16.gmra.mxu2 %vm701_vm0, %v1553_v27 }
 0x179   : > { %5438 = vmatmul.msk.bf16.gmra.mxu3 %vm701_vm0, %v1553_v27  ;;  %v1556_v27 = vor.u32 %v1555_v49, %v1554_v16 }
 0x17b   : > { %v1054_v42 = vpop.f32.mrf.mxu2  ;;  %v824_v24 = vpop.f32.mrf.mxu0 }
 0x17c   : > { %v1143_v39 = vpop.f32.mrf.mxu3  ;;  %v913_v41 = vpop.f32.mrf.mxu1  ;;  %v7491_v8 = vadd.f32 %v1054_v42, %v824_v24  ;;  %v1193_v24 = vrot.slane %v7106_v15, 1 }
 0x17d   : > { %v7493_v63 = vadd.f32 %v1143_v39, %v913_v41  ;;  %v1557_v39 = vsel %vm1526_vm2, %v1552_v0, %v1556_v27  ;;  %v9740_v0 = vshll.u32 %v7123_v23, 16 }
 0x17e   : > { %5370 = vmatmul.msk.bf16.gmra.mxu0 %vm701_vm0, %v1192_v33  ;;  %5386 = vmatmul.msk.bf16.gmra.mxu1 %vm701_vm0, %v1192_v33  ;;  %v1194_v29 = vsel %vm1179_vm3, %v1191_v18, %v1193_v24 }
 0x17f   : > { %9733 = vst [vmem:[#allocation37_spill] sm:$0xff] %v7493_v63 }
 0x183   : > { %v1056_v7 = vpop.f32.mrf.mxu2  ;;  %v826_v60 = vpop.f32.mrf.mxu0 }
 0x184   : > { %v1145_v61 = vpop.f32.mrf.mxu3  ;;  %v915_v55 = vpop.f32.mrf.mxu1  ;;  %v7501_v32 = vadd.f32 %v1056_v7, %v826_v60 }
 0x185   : > { %v7503_v42 = vadd.f32 %v1145_v61, %v915_v55  ;;  %v9739_v55 = vshrl.u32 %v7123_v23, 16  ;;  %v1559_v61 = vrot.slane %v9740_v0, 2 }
 0x186   : > { %9736 = vst [vmem:[#allocation38_spill] sm:$0xff] %v7501_v32 }
 0x187   : > { %9737 = vst [vmem:[#allocation39_spill] sm:$0xff] %v7503_v42  ;;  %v1558_v60 = vrot.slane %v9739_v55, 1 }
 0x188   : > { %5423 = vmatmul.msk.bf16.gmra.mxu2 %vm701_vm0, %v1557_v39 }
 0x189   : > { %5439 = vmatmul.msk.bf16.gmra.mxu3 %vm701_vm0, %v1557_v39  ;;  %v1560_v39 = vor.u32 %v1559_v61, %v1558_v60 }
 0x18b   : > { %v1059_v41 = vpop.f32.mrf.mxu2  ;;  %v829_v33 = vpop.f32.mrf.mxu0 }
 0x18c   : > { %v1148_v47 = vpop.f32.mrf.mxu3  ;;  %v918_v16 = vpop.f32.mrf.mxu1  ;;  %v7510_v49 = vadd.f32 %v1059_v41, %v829_v33  ;;  %v1195_v33 = vrot.slane %v7123_v23, 1 }
 0x18d   : > { %v7512_v7 = vadd.f32 %v1148_v47, %v918_v16  ;;  %v1561_v47 = vsel %vm1526_vm2, %v1556_v27, %v1560_v39  ;;  %v9744_v27 = vshll.u32 %v7140_v36, 16 }
 0x18e   : > { %5371 = vmatmul.msk.bf16.gmra.mxu0 %vm701_vm0, %v1194_v29  ;;  %5387 = vmatmul.msk.bf16.gmra.mxu1 %vm701_vm0, %v1194_v29  ;;  %v1196_v0 = vsel %vm1179_vm3, %v1193_v24, %v1195_v33 }
 0x18f   : > { %9738 = vst [vmem:[#allocation40_spill] sm:$0xff] %v7512_v7 }
 0x193   : > { %v1061_v15 = vpop.f32.mrf.mxu2  ;;  %v831_v32 = vpop.f32.mrf.mxu0 }
 0x194   : > { %v1150_v42 = vpop.f32.mrf.mxu3  ;;  %v920_v63 = vpop.f32.mrf.mxu1  ;;  %v7520_v18 = vadd.f32 %v1061_v15, %v831_v32 }
 0x195   : > { %v7522_v41 = vadd.f32 %v1150_v42, %v920_v63  ;;  %v9743_v63 = vshrl.u32 %v7140_v36, 16  ;;  %v1563_v42 = vrot.slane %v9744_v27, 2 }
 0x196   : > { %9741 = vst [vmem:[#allocation41_spill] sm:$0xff] %v7520_v18 }
 0x197   : > { %9742 = vst [vmem:[#allocation42_spill] sm:$0xff] %v7522_v41  ;;  %v1562_v32 = vrot.slane %v9743_v63, 1 }
 0x198   : > { %5424 = vmatmul.msk.bf16.gmra.mxu2 %vm701_vm0, %v1561_v47 }
 0x199   : > { %5440 = vmatmul.msk.bf16.gmra.mxu3 %vm701_vm0, %v1561_v47  ;;  %v1564_v47 = vor.u32 %v1563_v42, %v1562_v32 }
 0x19b   : > { %v1064_v16 = vpop.f32.mrf.mxu2  ;;  %v834_v29 = vpop.f32.mrf.mxu0 }
 0x19c   : > { %v1153_v55 = vpop.f32.mrf.mxu3  ;;  %v923_v60 = vpop.f32.mrf.mxu1  ;;  %v7529_v61 = vadd.f32 %v1064_v16, %v834_v29  ;;  %v1197_v29 = vrot.slane %v7140_v36, 1 }
 0x19d   : > { %v7531_v15 = vadd.f32 %v1153_v55, %v923_v60  ;;  %v1565_v55 = vsel %vm1526_vm2, %v1560_v39, %v1564_v47  ;;  %v9748_v39 = vshll.u32 %v7161_v59, 16 }
 0x19e   : > { %5372 = vmatmul.msk.bf16.gmra.mxu0 %vm701_vm0, %v1196_v0  ;;  %5388 = vmatmul.msk.bf16.gmra.mxu1 %vm701_vm0, %v1196_v0  ;;  %v1198_v27 = vsel %vm1179_vm3, %v1195_v33, %v1197_v29 }
 0x1a3   : > { %v1066_v23 = vpop.f32.mrf.mxu2  ;;  %v836_v18 = vpop.f32.mrf.mxu0 }
 0x1a4   : > { %v1155_v41 = vpop.f32.mrf.mxu3  ;;  %v925_v7 = vpop.f32.mrf.mxu1  ;;  %v7539_v24 = vadd.f32 %v1066_v23, %v836_v18 }
 0x1a5   : > { %v7541_v16 = vadd.f32 %v1155_v41, %v925_v7  ;;  %v9747_v7 = vshrl.u32 %v7161_v59, 16  ;;  %v1567_v41 = vrot.slane %v9748_v39, 2 }
 0x1a6   : > { %9745 = vst [vmem:[#allocation43_spill] sm:$0xff] %v7539_v24 }
 0x1a7   : > { %9746 = vst [vmem:[#allocation44_spill] sm:$0xff] %v7541_v16  ;;  %v1566_v18 = vrot.slane %v9747_v7, 1 }
 0x1a8   : > { %5425 = vmatmul.msk.bf16.gmra.mxu2 %vm701_vm0, %v1565_v55 }
 0x1a9   : > { %5441 = vmatmul.msk.bf16.gmra.mxu3 %vm701_vm0, %v1565_v55  ;;  %v1568_v36 = vor.u32 %v1567_v41, %v1566_v18  ;;  %v9749_v41 = vshrl.u32 %v7186_v28, 16 }
 0x1ab   : > { %v1667_v60 = vpop.f32.mrf.mxu2  ;;  %v1288_v0 = vpop.f32.mrf.mxu0  ;;  %v1569_v7 = vsel %vm1526_vm2, %v1564_v47, %v1568_v36 }
 0x1ac   : > { %v1756_v63 = vpop.f32.mrf.mxu3  ;;  %v1377_v32 = vpop.f32.mrf.mxu1  ;;  %v1457_v42 = vadd.f32 %v1288_v0, %v7153_v52 }
 0x1ad   : > { %v1458_v23 = vadd.f32 %v1377_v32, %v7155_v53 }
 0x1ae   : > { %v7554_v16 = vadd.f32 %v1667_v60, %v1457_v42  ;;  %5373 = vmatmul.msk.bf16.gmra.mxu0 %vm701_vm0, %v1198_v27  ;;  %5389 = vmatmul.msk.bf16.gmra.mxu1 %vm701_vm0, %v1198_v27 }
 0x1af   : > { %v7556_v55 = vadd.f32 %v1756_v63, %v1458_v23  ;;  %v1199_v63 = vrot.slane %v7161_v59, 1 }
 0x1b3   : > { %v1669_v33 = vpop.f32.mrf.mxu2  ;;  %v1290_v52 = vpop.f32.mrf.mxu0 }
 0x1b4   : > { %v1758_v24 = vpop.f32.mrf.mxu3  ;;  %v1379_v0 = vpop.f32.mrf.mxu1  ;;  %v1459_v53 = vadd.f32 %v1290_v52, %v7165_v5  ;;  %v1200_v5 = vsel %vm1179_vm3, %v1197_v29, %v1199_v63 }
 0x1b5   : > { %v1460_v32 = vadd.f32 %v1379_v0, %v7167_v6 }
 0x1b6   : > { %v7563_v39 = vadd.f32 %v1669_v33, %v1459_v53  ;;  %v9750_v33 = vshll.u32 %v7186_v28, 16 }
 0x1b7   : > { %v7565_v60 = vadd.f32 %v1758_v24, %v1460_v32  ;;  %v1570_v24 = vrot.slane %v9749_v41, 1 }
 0x1b8   : > { %5426 = vmatmul.msk.bf16.gmra.mxu2 %vm701_vm0, %v1569_v7  ;;  %v1571_v52 = vrot.slane %v9750_v33, 2 }
 0x1b9   : > { %5442 = vmatmul.msk.bf16.gmra.mxu3 %vm701_vm0, %v1569_v7 }
 0x1ba   : > { %v1572_v32 = vor.u32 %v1571_v52, %v1570_v24  ;;  %v9751_v52 = vshrl.u32 %v7211_v11, 16 }
 0x1bb   : > { %v1672_v27 = vpop.f32.mrf.mxu2  ;;  %v1293_v23 = vpop.f32.mrf.mxu0 }
 0x1bc   : > { %v1761_v42 = vpop.f32.mrf.mxu3  ;;  %v1382_v18 = vpop.f32.mrf.mxu1  ;;  %v1461_v6 = vadd.f32 %v1293_v23, %v7178_v20  ;;  %v1573_v41 = vsel %vm1526_vm2, %v1568_v36, %v1572_v32 }
 0x1bd   : > { %v1462_v47 = vadd.f32 %v1382_v18, %v7180_v21 }
 0x1be   : > { %v7577_v0 = vadd.f32 %v1672_v27, %v1461_v6  ;;  %5374 = vmatmul.msk.bf16.gmra.mxu0 %vm701_vm0, %v1200_v5  ;;  %5390 = vmatmul.msk.bf16.gmra.mxu1 %vm701_vm0, %v1200_v5 }
 0x1bf   : > { %v7579_v53 = vadd.f32 %v1761_v42, %v1462_v47  ;;  %v1201_v42 = vrot.slane %v7186_v28, 1 }
 0x1c3   : > { %v1674_v29 = vpop.f32.mrf.mxu2  ;;  %v1295_v20 = vpop.f32.mrf.mxu0 }
 0x1c4   : > { %v1763_v7 = vpop.f32.mrf.mxu3  ;;  %v1384_v23 = vpop.f32.mrf.mxu1  ;;  %v1463_v21 = vadd.f32 %v1295_v20, %v7190_v45  ;;  %v1202_v45 = vsel %vm1179_vm3, %v1199_v63, %v1201_v42 }
 0x1c5   : > { %v1464_v18 = vadd.f32 %v1384_v23, %v7192_v46 }
 0x1c6   : > { %v7586_v33 = vadd.f32 %v1674_v29, %v1463_v21  ;;  %v1574_v29 = vrot.slane %v9751_v52, 1 }
 0x1c7   : > { %v7588_v27 = vadd.f32 %v1763_v7, %v1464_v18  ;;  %v9752_v7 = vshll.u32 %v7211_v11, 16 }
 0x1c8   : > { %5427 = vmatmul.msk.bf16.gmra.mxu2 %vm701_vm0, %v1573_v41 }
 0x1c9   : > { %5443 = vmatmul.msk.bf16.gmra.mxu3 %vm701_vm0, %v1573_v41  ;;  %v1575_v20 = vrot.slane %v9752_v7, 2 }
 0x1cb   : > { %v1677_v5 = vpop.f32.mrf.mxu2  ;;  %v1298_v47 = vpop.f32.mrf.mxu0  ;;  %v1576_v18 = vor.u32 %v1575_v20, %v1574_v29  ;;  %v9753_v20 = vshrl.u32 %v7236_v51, 16 }
 0x1cc   : > { %v1766_v6 = vpop.f32.mrf.mxu3  ;;  %v1387_v24 = vpop.f32.mrf.mxu1  ;;  %v1465_v46 = vadd.f32 %v1298_v47, %v7203_v2 }
 0x1cd   : > { %v1466_v36 = vadd.f32 %v1387_v24, %v7205_v10  ;;  %v1577_v52 = vsel %vm1526_vm2, %v1572_v32, %v1576_v18 }
 0x1ce   : > { %v7600_v23 = vadd.f32 %v1677_v5, %v1465_v46  ;;  %5375 = vmatmul.msk.bf16.gmra.mxu0 %vm701_vm0, %v1202_v45  ;;  %5391 = vmatmul.msk.bf16.gmra.mxu1 %vm701_vm0, %v1202_v45 }
 0x1cf   : > { %v7602_v21 = vadd.f32 %v1766_v6, %v1466_v36  ;;  %v1203_v6 = vrot.slane %v7211_v11, 1 }
 0x1d3   : > { %v1679_v63 = vpop.f32.mrf.mxu2  ;;  %v1300_v2 = vpop.f32.mrf.mxu0 }
 0x1d4   : > { %v1768_v41 = vpop.f32.mrf.mxu3  ;;  %v1389_v47 = vpop.f32.mrf.mxu1  ;;  %v1467_v10 = vadd.f32 %v1300_v2, %v7215_v34  ;;  %v1204_v34 = vsel %vm1179_vm3, %v1201_v42, %v1203_v6 }
 0x1d5   : > { %v1468_v24 = vadd.f32 %v1389_v47, %v7217_v35 }
 0x1d6   : > { %v7609_v7 = vadd.f32 %v1679_v63, %v1467_v10  ;;  %v1578_v63 = vrot.slane %v9753_v20, 1 }
 0x1d7   : > { %v7611_v5 = vadd.f32 %v1768_v41, %v1468_v24  ;;  %v9754_v41 = vshll.u32 %v7236_v51, 16 }
 0x1d8   : > { %5428 = vmatmul.msk.bf16.gmra.mxu2 %vm701_vm0, %v1577_v52 }
 0x1d9   : > { %5444 = vmatmul.msk.bf16.gmra.mxu3 %vm701_vm0, %v1577_v52  ;;  %v1579_v2 = vrot.slane %v9754_v41, 2 }
 0x1db   : > { %v1682_v45 = vpop.f32.mrf.mxu2  ;;  %v1303_v36 = vpop.f32.mrf.mxu0  ;;  %v1580_v24 = vor.u32 %v1579_v2, %v1578_v63  ;;  %v9755_v2 = vshrl.u32 %v7267_v26, 16 }
 0x1dc   : > { %v1771_v46 = vpop.f32.mrf.mxu3  ;;  %v1392_v29 = vpop.f32.mrf.mxu1  ;;  %v1469_v35 = vadd.f32 %v1303_v36, %v7228_v12 }
 0x1dd   : > { %v1470_v32 = vadd.f32 %v1392_v29, %v7230_v13  ;;  %v1581_v20 = vsel %vm1526_vm2, %v1576_v18, %v1580_v24 }
 0x1de   : > { %v7623_v47 = vadd.f32 %v1682_v45, %v1469_v35  ;;  %5376 = vmatmul.msk.bf16.gmra.mxu0 %vm701_vm0, %v1204_v34  ;;  %5392 = vmatmul.msk.bf16.gmra.mxu1 %vm701_vm0, %v1204_v34 }
 0x1df   : > { %v7625_v10 = vadd.f32 %v1771_v46, %v1470_v32  ;;  %v1205_v46 = vrot.slane %v7236_v51, 1 }
 0x1e3   : > { %v1684_v42 = vpop.f32.mrf.mxu2  ;;  %v1305_v12 = vpop.f32.mrf.mxu0 }
 0x1e4   : > { %v1773_v52 = vpop.f32.mrf.mxu3  ;;  %v1394_v36 = vpop.f32.mrf.mxu1  ;;  %v1471_v13 = vadd.f32 %v1305_v12, %v7240_v54  ;;  %v1206_v54 = vsel %vm1179_vm3, %v1203_v6, %v1205_v46 }
 0x1e5   : > { %v1472_v29 = vadd.f32 %v1394_v36, %v7242_v58 }
 0x1e6   : > { %v7632_v41 = vadd.f32 %v1684_v42, %v1471_v13  ;;  %v1582_v42 = vrot.slane %v9755_v2, 1 }
 0x1e7   : > { %v7634_v45 = vadd.f32 %v1773_v52, %v1472_v29  ;;  %v9756_v52 = vshll.u32 %v7267_v26, 16 }
 0x1e8   : > { %5429 = vmatmul.msk.bf16.gmra.mxu2 %vm701_vm0, %v1581_v20 }
 0x1e9   : > { %5445 = vmatmul.msk.bf16.gmra.mxu3 %vm701_vm0, %v1581_v20  ;;  %v1583_v12 = vrot.slane %v9756_v52, 2 }
 0x1eb   : > { %v1687_v34 = vpop.f32.mrf.mxu2  ;;  %v1308_v32 = vpop.f32.mrf.mxu0  ;;  %v1584_v29 = vor.u32 %v1583_v12, %v1582_v42 }
 0x1ec   : > { %v1776_v35 = vpop.f32.mrf.mxu3  ;;  %v1397_v63 = vpop.f32.mrf.mxu1  ;;  %v1473_v58 = vadd.f32 %v1308_v32, %v7253_v44  ;;  %v5463_v44 = vld [vmem:[%s9696_s1 + $0x90] sm:$0xf] }
 0x1ed   : > { %v1474_v18 = vadd.f32 %v1397_v63, %v7255_v19  ;;  %v6207_v19 = vld [vmem:[%s9696_s1 + $0x94] sm:$0xf0] }
 0x1ee   : > { %v7646_v36 = vadd.f32 %v1687_v34, %v1473_v58  ;;  %5377 = vmatmul.msk.bf16.gmra.mxu0 %vm701_vm0, %v1206_v54  ;;  %5393 = vmatmul.msk.bf16.gmra.mxu1 %vm701_vm0, %v1206_v54  ;;  %v5464_v6 = vor.u32 %v6207_v19, %v5463_v44  ;;  %v1585_v58 = vsel %vm1526_vm2, %v1580_v24, %v1584_v29  ;;  %v9757_v24 = vshrl.u32 %v7296_v38, 16 }
 0x1ef   : > { %v7648_v13 = vadd.f32 %v1776_v35, %v1474_v18  ;;  %v1207_v18 = vrot.slane %v7267_v26, 1 }
 0x1f0   : > { %2011 = vmatpush.bf16.msra.mxu0 %v5464_v6  ;;  %v1586_v19 = vrot.slane %v9757_v24, 1  ;;  %v9758_v6 = vshll.u32 %v7296_v38, 16 }
 0x1f3   : > { %v7658_v20 = vpop.f32.mrf.mxu2  ;;  %v1310_v35 = vpop.f32.mrf.mxu0 }
 0x1f4   : > { %v7660_v34 = vpop.f32.mrf.mxu3  ;;  %v1399_v32 = vpop.f32.mrf.mxu1  ;;  %v7663_v63 = vadd.f32 %v1310_v35, %v7271_v3  ;;  %v1208_v3 = vsel %vm1179_vm3, %v1205_v46, %v1207_v18  ;;  %v1587_v35 = vrot.slane %v9758_v6, 2  ;;  %v6206_v6 = vld [vmem:[%s9696_s1 + $0x94] sm:$0xf] }
 0x1f5   : > { %v7666_v54 = vadd.f32 %v1399_v32, %v7273_v25 }
 0x1f6   : > { %v1588_v32 = vor.u32 %v1587_v35, %v1586_v19  ;;  %v6204_v35 = vld [vmem:[%s9696_s1 + $0x84] sm:$0xf] }
 0x1f8   : > { %5430 = vmatmul.msk.bf16.gmra.mxu2 %vm701_vm0, %v1585_v58  ;;  %v1589_v24 = vsel %vm1526_vm2, %v1584_v29, %v1588_v32  ;;  %v6205_v29 = vld [vmem:[%s9696_s1 + $0x84] sm:$0xf0] }
 0x1f9   : > { %5446 = vmatmul.msk.bf16.gmra.mxu3 %vm701_vm0, %v1585_v58 }
 0x1fb   : > { %v7672_v2 = vpop.f32.mrf.mxu2  ;;  %v1313_v52 = vpop.f32.mrf.mxu0 }
 0x1fc   : > { %v7674_v42 = vpop.f32.mrf.mxu3  ;;  %v1402_v12 = vpop.f32.mrf.mxu1  ;;  %v7678_v44 = vadd.f32 %v1313_v52, %v7284_v62 }
 0x1fd   : > { %v7681_v25 = vadd.f32 %v1402_v12, %v7286_v14 }
 0x1fe   : > { %5378 = vmatmul.msk.bf16.gmra.mxu0 %vm701_vm0, %v1208_v3  ;;  %5394 = vmatmul.msk.bf16.gmra.mxu1 %vm701_vm0, %v1208_v3  ;;  %v5465_v3 = vld [vmem:[%s9696_s1 + $0x98] sm:$0xf0] }
 0x1ff   : > { %v5468_v19 = vor.u32 %v6206_v6, %v5465_v3 }
 0x201   : > { %2100 = vmatpush.bf16.msra.mxu1 %v5468_v19 }
 0x203   : > { %v7689_v58 = vpop.f32.mrf.mxu2  ;;  %v1315_v62 = vpop.f32.mrf.mxu0 }
 0x204   : > { %9759 = vst [vmem:[#allocation45_spill] sm:$0xff] %v7689_v58  ;;  %v7691_v46 = vpop.f32.mrf.mxu3  ;;  %v1404_v52 = vpop.f32.mrf.mxu1  ;;  %v7694_v14 = vadd.f32 %v1315_v62, %v7314_v1  ;;  %v1209_v1 = vrot.slane %v7296_v38, 1 }
 0x205   : > { %9760 = vst [vmem:[#allocation46_spill] sm:$0xff] %v7691_v46  ;;  %v7697_v12 = vadd.f32 %v1404_v52, %v7316_v43  ;;  %v5455_v43 = vld [vmem:[%s9696_s1 + $0x80] sm:$0xf]  ;;  %v5457_v52 = vld [vmem:[%s9696_s1 + $0x88] sm:$0xf0]  ;;  %s6765_s1 = scalar_lea.hbm %s6764_s22, 8 }
 0x206   : > { %v5456_v62 = vor.u32 %v6205_v29, %v5455_v43  ;;  %v5460_v3 = vor.u32 %v6204_v35, %v5457_v52  ;;  %v1210_v46 = vsel %vm1179_vm3, %v1207_v18, %v1209_v1  ;;  %p6766_p11 = scmp.ne.s32.totalorder %s6764_s22, %s6765_s1  ;;  %p6771_p1 = scmp.lt.s32.totalorder %s6769_s20, %s6765_s1 }
 0x207   : > { %9761 = vst [vmem:[#allocation47_spill] sm:$0xff] %v7697_v12 }
 0x208   : > { %5431 = vmatmul.msk.bf16.gmra.mxu2 %vm701_vm0, %v1589_v24  ;;  %2012 = vmatpush.bf16.msra.mxu0 %v5456_v62  ;;  %p6767_p12 = pnand %p6766_p11, %p6931_p5  ;;  %p6772_p2 = por %p6771_p1, %p6770_p0 }
 0x209   : > { %5447 = vmatmul.msk.bf16.gmra.mxu3 %vm701_vm0, %v1589_v24  ;;  %2101 = vmatpush.bf16.msra.mxu1 %v5460_v3 }
 0x20a   : > { %p6768_p13 = pneg %p6767_p12 }
 0x20b   : > { %v7721_v24 = vpop.f32.mrf.mxu2  ;;  %v1318_v19 = vpop.f32.mrf.mxu0 }
 0x20c   : > { %v7723_v6 = vpop.f32.mrf.mxu3  ;;  %v1407_v38 = vpop.f32.mrf.mxu1  ;;  %v7727_v12 = vadd.f32 %v1318_v19, %v7363_v9  ;;  %p6773_p3 = pnand %p6772_p2, %p6768_p13 }
 0x20d   : > { %v7730_v58 = vadd.f32 %v1407_v38, %v7365_v57 }
 0x20e   : > { %5379 = vmatmul.msk.bf16.gmra.mxu0 %vm701_vm0, %v1210_v46  ;;  %5395 = vmatmul.msk.bf16.gmra.mxu1 %vm701_vm0, %v1210_v46 }
 0x213   : > { %v7734_v43 = vpop.f32.mrf.mxu2  ;;  %v1320_v35 = vpop.f32.mrf.mxu0 }
 0x214   : > { %9762 = vst [vmem:[#allocation48_spill] sm:$0xff] %v7734_v43  ;;  %v7736_v29 = vpop.f32.mrf.mxu3  ;;  %v1409_v52 = vpop.f32.mrf.mxu1  ;;  %v7739_v18 = vadd.f32 %v1320_v35, %v7369_v37 }
 0x215   : > { %9763 = vst [vmem:[#allocation49_spill] sm:$0xff] %v7736_v29  ;;  %v7742_v9 = vadd.f32 %v1409_v52, %v7371_v22 }
 0x217   : > { %9764 = vst [vmem:[#allocation50_spill] sm:$0xff] %v7742_v9  ;;  %v9776_v9 = vld [vmem:[#allocation22_spill] sm:$0xff] }
 0x218   : > { %5432 = vmatmul.msk.bf16.gmra.mxu2 %vm701_vm0, %v1588_v32 }
 0x219   : > { %5448 = vmatmul.msk.bf16.gmra.mxu3 %vm701_vm0, %v1588_v32 }
 0x21b   : > { %v7746_v57 = vpop.f32.mrf.mxu2  ;;  %v1323_v46 = vpop.f32.mrf.mxu0 }
 0x21c   : > { %9765 = vst [vmem:[#allocation51_spill] sm:$0xff] %v7746_v57  ;;  %v7748_v38 = vpop.f32.mrf.mxu3  ;;  %v1412_v62 = vpop.f32.mrf.mxu1  ;;  %v7751_v3 = vadd.f32 %v1323_v46, %v7380_v40  ;;  %v9774_v40 = vld [vmem:[#allocation10_spill] sm:$0xff] }
 0x21d   : > { %9766 = vst [vmem:[#allocation52_spill] sm:$0xff] %v7748_v38  ;;  %v7754_v19 = vadd.f32 %v1412_v62, %v7382_v17  ;;  %v9772_v38 = vld [vmem:[#allocation21_spill] sm:$0xff]  ;;  %v1906_v46 = vrot.slane %v9774_v40, 2  ;;  %v9775_v17 = vld [vmem:[#allocation11_spill] sm:$0xff] }
 0x21e   : > { %9767 = vst [vmem:[#allocation53_spill] sm:$0xff] %v7751_v3  ;;  %5380 = vmatmul.msk.bf16.gmra.mxu0 %vm701_vm0, %v1209_v1  ;;  %5396 = vmatmul.msk.bf16.gmra.mxu1 %vm701_vm0, %v1209_v1  ;;  %v1907_v62 = vrot.slane %v9775_v17, 2 }
 0x21f   : > { %9768 = vst [vmem:[#allocation54_spill] sm:$0xff] %v7754_v19 }
 0x223   : > { %v7758_v37 = vpop.f32.mrf.mxu2  ;;  %v1325_v32 = vpop.f32.mrf.mxu0 }
 0x224   : > { %9769 = vst [vmem:[#allocation55_spill] sm:$0xff] %v7758_v37  ;;  %v7760_v22 = vpop.f32.mrf.mxu3  ;;  %v1414_v35 = vpop.f32.mrf.mxu1  ;;  %v7763_v52 = vadd.f32 %v1325_v32, %v7386_v30  ;;  %v1908_v37 = vsel %vm1905_vm4, %v1906_v46, %v1907_v62 }
 0x225   : > { %9770 = vst [vmem:[#allocation56_spill] sm:$0xff] %v7760_v22  ;;  %v7766_v57 = vadd.f32 %v1414_v35, %v9772_v38 }
 0x226   : > { %9771 = vst [vmem:[#allocation57_spill] sm:$0xff] %v7763_v52 }
 0x227   : > { %9773 = vst [vmem:[#allocation21_spill] sm:$0xff] %v7766_v57  ;;  %v9781_v57 = vld [vmem:[#allocation23_spill] sm:$0xff] }
 0x22b   : > { %v1707_v19 = vpop.f32.mrf.mxu2  ;;  %v1328_v1 = vpop.f32.mrf.mxu0 }
 0x22c   : > { %v1796_v3 = vpop.f32.mrf.mxu3  ;;  %v1417_v29 = vpop.f32.mrf.mxu1  ;;  %v1489_v22 = vadd.f32 %v1328_v1, %v7395_v56  ;;  %v9782_v56 = vld [vmem:[#allocation24_spill] sm:$0xff] }
 0x22d   : > { %v1490_v43 = vadd.f32 %v1417_v29, %v9776_v9  ;;  %v9784_v29 = vld [vmem:[#allocation12_spill] sm:$0xff] }
 0x22e   : > { %v7773_v30 = vadd.f32 %v1707_v19, %v1489_v22  ;;  %5469 = vmatmul.msk.bf16.vlgmr.msra.gmra.mxu0 %vm701_vm0, %v1908_v37  ;;  %5485 = vmatmul.msk.bf16.vlgmr.msra.gmra.mxu1 %vm701_vm0, %v1908_v37  ;;  %v1909_v9 = vrot.slane %v9784_v29, 2  ;;  %v9790_v29 = vld [vmem:[#allocation26_spill] sm:$0xff] }
 0x22f   : > { %v7775_v32 = vadd.f32 %v1796_v3, %v1490_v43 }
 0x230   : > { %9777 = vst [vmem:[#allocation10_spill] sm:$0xff] %v7773_v30  ;;  %v1910_v37 = vsel %vm1905_vm4, %v1907_v62, %v1909_v9 }
 0x231   : > { %9778 = vst [vmem:[#allocation11_spill] sm:$0xff] %v7775_v32  ;;  %v9785_v32 = vld [vmem:[#allocation25_spill] sm:$0xff] }
 0x233   : > { %v7779_v38 = vpop.f32.mrf.mxu2  ;;  %v1330_v40 = vpop.f32.mrf.mxu0 }
 0x234   : > { %9779 = vst [vmem:[#allocation22_spill] sm:$0xff] %v7779_v38  ;;  %v7781_v35 = vpop.f32.mrf.mxu3  ;;  %v1419_v17 = vpop.f32.mrf.mxu1  ;;  %v7784_v46 = vadd.f32 %v1330_v40, %v9781_v57 }
 0x235   : > { %9780 = vst [vmem:[#allocation58_spill] sm:$0xff] %v7781_v35  ;;  %v7787_v1 = vadd.f32 %v1419_v17, %v9782_v56 }
 0x237   : > { %9783 = vst [vmem:[#allocation23_spill] sm:$0xff] %v7787_v1 }
 0x23b   : > { %v1712_v43 = vpop.f32.mrf.mxu2  ;;  %v1333_v19 = vpop.f32.mrf.mxu0 }
 0x23c   : > { %v1801_v3 = vpop.f32.mrf.mxu3  ;;  %v1422_v22 = vpop.f32.mrf.mxu1  ;;  %v1493_v38 = vadd.f32 %v1333_v19, %v7415_v4  ;;  %v9791_v4 = vld [vmem:[#allocation27_spill] sm:$0xff] }
 0x23d   : > { %v1494_v35 = vadd.f32 %v1422_v22, %v9785_v32  ;;  %v9793_v32 = vld [vmem:[#allocation13_spill] sm:$0xff] }
 0x23e   : > { %v7793_v30 = vadd.f32 %v1712_v43, %v1493_v38  ;;  %5470 = vmatmul.msk.bf16.gmra.mxu0 %vm701_vm0, %v1910_v37  ;;  %5486 = vmatmul.msk.bf16.gmra.mxu1 %vm701_vm0, %v1910_v37  ;;  %v1911_v38 = vrot.slane %v9793_v32, 2  ;;  %v9799_v32 = vld [vmem:[#allocation29_spill] sm:$0xff] }
 0x23f   : > { %v7795_v52 = vadd.f32 %v1801_v3, %v1494_v35 }
 0x240   : > { %9786 = vst [vmem:[#allocation24_spill] sm:$0xff] %v7793_v30  ;;  %v1912_v37 = vsel %vm1905_vm4, %v1909_v9, %v1911_v38 }
 0x241   : > { %9787 = vst [vmem:[#allocation12_spill] sm:$0xff] %v7795_v52  ;;  %v9794_v52 = vld [vmem:[#allocation28_spill] sm:$0xff] }
 0x243   : > { %v7799_v57 = vpop.f32.mrf.mxu2  ;;  %v1335_v17 = vpop.f32.mrf.mxu0 }
 0x244   : > { %9788 = vst [vmem:[#allocation25_spill] sm:$0xff] %v7799_v57  ;;  %v7801_v40 = vpop.f32.mrf.mxu3  ;;  %v1424_v56 = vpop.f32.mrf.mxu1  ;;  %v7804_v62 = vadd.f32 %v1335_v17, %v9790_v29 }
 0x245   : > { %9789 = vst [vmem:[#allocation59_spill] sm:$0xff] %v7801_v40  ;;  %v7807_v19 = vadd.f32 %v1424_v56, %v9791_v4 }
 0x247   : > { %9792 = vst [vmem:[#allocation26_spill] sm:$0xff] %v7807_v19 }
 0x24b   : > { %v1717_v35 = vpop.f32.mrf.mxu2  ;;  %v1338_v3 = vpop.f32.mrf.mxu0 }
 0x24c   : > { %v1806_v43 = vpop.f32.mrf.mxu3  ;;  %v1427_v22 = vpop.f32.mrf.mxu1  ;;  %v1497_v57 = vadd.f32 %v1338_v3, %v7434_v31  ;;  %v9800_v31 = vld [vmem:[#allocation30_spill] sm:$0xff] }
 0x24d   : > { %v1498_v40 = vadd.f32 %v1427_v22, %v9794_v52  ;;  %v9802_v52 = vld [vmem:[#allocation14_spill] sm:$0xff] }
 0x24e   : > { %v7813_v30 = vadd.f32 %v1717_v35, %v1497_v57  ;;  %5471 = vmatmul.msk.bf16.gmra.mxu0 %vm701_vm0, %v1912_v37  ;;  %5487 = vmatmul.msk.bf16.gmra.mxu1 %vm701_vm0, %v1912_v37  ;;  %v1913_v57 = vrot.slane %v9802_v52, 2  ;;  %v9808_v52 = vld [vmem:[#allocation32_spill] sm:$0xff] }
 0x24f   : > { %v7815_v1 = vadd.f32 %v1806_v43, %v1498_v40 }
 0x250   : > { %9795 = vst [vmem:[#allocation27_spill] sm:$0xff] %v7813_v30  ;;  %v1914_v37 = vsel %vm1905_vm4, %v1911_v38, %v1913_v57 }
 0x251   : > { %9796 = vst [vmem:[#allocation13_spill] sm:$0xff] %v7815_v1  ;;  %v9803_v1 = vld [vmem:[#allocation31_spill] sm:$0xff] }
 0x253   : > { %v7819_v17 = vpop.f32.mrf.mxu2  ;;  %v1340_v29 = vpop.f32.mrf.mxu0 }
 0x254   : > { %9797 = vst [vmem:[#allocation28_spill] sm:$0xff] %v7819_v17  ;;  %v7821_v56 = vpop.f32.mrf.mxu3  ;;  %v1429_v4 = vpop.f32.mrf.mxu1  ;;  %v7824_v9 = vadd.f32 %v1340_v29, %v9799_v32 }
 0x255   : > { %9798 = vst [vmem:[#allocation60_spill] sm:$0xff] %v7821_v56  ;;  %v7827_v3 = vadd.f32 %v1429_v4, %v9800_v31 }
 0x257   : > { %9801 = vst [vmem:[#allocation29_spill] sm:$0xff] %v7827_v3 }
 0x25b   : > { %v1722_v40 = vpop.f32.mrf.mxu2  ;;  %v1343_v43 = vpop.f32.mrf.mxu0 }
 0x25c   : > { %v1811_v35 = vpop.f32.mrf.mxu3  ;;  %v1432_v22 = vpop.f32.mrf.mxu1  ;;  %v1501_v17 = vadd.f32 %v1343_v43, %v7453_v50  ;;  %v9809_v50 = vld [vmem:[#allocation33_spill] sm:$0xff] }
 0x25d   : > { %v1502_v56 = vadd.f32 %v1432_v22, %v9803_v1  ;;  %v9811_v1 = vld [vmem:[#allocation15_spill] sm:$0xff] }
 0x25e   : > { %v7833_v30 = vadd.f32 %v1722_v40, %v1501_v17  ;;  %5472 = vmatmul.msk.bf16.gmra.mxu0 %vm701_vm0, %v1914_v37  ;;  %5488 = vmatmul.msk.bf16.gmra.mxu1 %vm701_vm0, %v1914_v37  ;;  %v1915_v17 = vrot.slane %v9811_v1, 2  ;;  %v9814_v1 = vld [vmem:[#allocation36_spill] sm:$0xff] }
 0x25f   : > { %v7835_v19 = vadd.f32 %v1811_v35, %v1502_v56 }
 0x260   : > { %9804 = vst [vmem:[#allocation30_spill] sm:$0xff] %v7833_v30  ;;  %v1916_v37 = vsel %vm1905_vm4, %v1913_v57, %v1915_v17  ;;  %v9816_v57 = vld [vmem:[#allocation16_spill] sm:$0xff] }
 0x261   : > { %9805 = vst [vmem:[#allocation14_spill] sm:$0xff] %v7835_v19  ;;  %v9812_v19 = vld [vmem:[#allocation34_spill] sm:$0xff] }
 0x263   : > { %v7839_v29 = vpop.f32.mrf.mxu2  ;;  %v1345_v32 = vpop.f32.mrf.mxu0 }
 0x264   : > { %9806 = vst [vmem:[#allocation31_spill] sm:$0xff] %v7839_v29  ;;  %v7841_v4 = vpop.f32.mrf.mxu3  ;;  %v1434_v31 = vpop.f32.mrf.mxu1  ;;  %v7844_v38 = vadd.f32 %v1345_v32, %v9808_v52  ;;  %v9813_v52 = vld [vmem:[#allocation35_spill] sm:$0xff] }
 0x265   : > { %9807 = vst [vmem:[#allocation61_spill] sm:$0xff] %v7841_v4  ;;  %v7847_v43 = vadd.f32 %v1434_v31, %v9809_v50 }
 0x267   : > { %9810 = vst [vmem:[#allocation32_spill] sm:$0xff] %v7847_v43 }
 0x26b   : > { %v1727_v56 = vpop.f32.mrf.mxu2  ;;  %v1348_v35 = vpop.f32.mrf.mxu0 }
 0x26c   : > { %v1816_v40 = vpop.f32.mrf.mxu3  ;;  %v1437_v22 = vpop.f32.mrf.mxu1  ;;  %v1505_v29 = vadd.f32 %v1348_v35, %v7472_v48  ;;  %v1917_v48 = vrot.slane %v9816_v57, 2  ;;  %v9823_v57 = vld [vmem:[#allocation17_spill] sm:$0xff] }
 0x26d   : > { %v1506_v4 = vadd.f32 %v1437_v22, %v9812_v19 }
 0x26e   : > { %v7853_v30 = vadd.f32 %v1727_v56, %v1505_v29  ;;  %5473 = vmatmul.msk.bf16.gmra.mxu0 %vm701_vm0, %v1916_v37  ;;  %5489 = vmatmul.msk.bf16.gmra.mxu1 %vm701_vm0, %v1916_v37  ;;  %v1918_v29 = vsel %vm1905_vm4, %v1915_v17, %v1917_v48  ;;  %v9817_v56 = vld [vmem:[#allocation37_spill] sm:$0xff]  ;;  %v1919_v17 = vrot.slane %v9823_v57, 2 }
 0x26f   : > { %v7855_v3 = vadd.f32 %v1816_v40, %v1506_v4 }
 0x273   : > { %v1350_v32 = vpop.f32.mrf.mxu0 }
 0x274   : > { %v1439_v31 = vpop.f32.mrf.mxu1  ;;  %v7860_v50 = vadd.f32 %v1350_v32, %v9813_v52  ;;  %v9819_v32 = vld [vmem:[#allocation38_spill] sm:$0xff]  ;;  %v9821_v52 = vld [vmem:[#allocation39_spill] sm:$0xff] }
 0x275   : > { %v7863_v43 = vadd.f32 %v1439_v31, %v9814_v1 }
 0x277   : > { %9815 = vst [vmem:[#allocation33_spill] sm:$0xff] %v7863_v43 }
 0x27b   : > { %v1353_v35 = vpop.f32.mrf.mxu0 }
 0x27c   : > { %v1442_v19 = vpop.f32.mrf.mxu1  ;;  %v7868_v4 = vadd.f32 %v1353_v35, %v7491_v8  ;;  %v1920_v35 = vsel %vm1905_vm4, %v1917_v48, %v1919_v17 }
 0x27d   : > { %v7871_v40 = vadd.f32 %v1442_v19, %v9817_v56  ;;  %v9824_v56 = vld [vmem:[#allocation40_spill] sm:$0xff] }
 0x27e   : > { %5474 = vmatmul.msk.bf16.gmra.mxu0 %vm701_vm0, %v1918_v29  ;;  %5490 = vmatmul.msk.bf16.gmra.mxu1 %vm701_vm0, %v1918_v29 }
 0x27f   : > { %9818 = vst [vmem:[#allocation15_spill] sm:$0xff] %v7871_v40 }
 0x283   : > { %v1355_v22 = vpop.f32.mrf.mxu0 }
 0x284   : > { %v1444_v37 = vpop.f32.mrf.mxu1  ;;  %v7876_v31 = vadd.f32 %v1355_v22, %v9819_v32 }
 0x285   : > { %v7879_v1 = vadd.f32 %v1444_v37, %v9821_v52  ;;  %v9826_v37 = vld [vmem:[#allocation41_spill] sm:$0xff]  ;;  %v9828_v52 = vld [vmem:[#allocation42_spill] sm:$0xff] }
 0x286   : > { %9820 = vst [vmem:[#allocation34_spill] sm:$0xff] %v7876_v31 }
 0x287   : > { %9822 = vst [vmem:[#allocation35_spill] sm:$0xff] %v7879_v1  ;;  %v9830_v1 = vld [vmem:[#allocation18_spill] sm:$0xff] }
 0x288   : > { %v1921_v48 = vrot.slane %v9830_v1, 2  ;;  %v9835_v1 = vld [vmem:[#allocation44_spill] sm:$0xff] }
 0x28b   : > { %v1358_v43 = vpop.f32.mrf.mxu0 }
 0x28c   : > { %v1447_v8 = vpop.f32.mrf.mxu1  ;;  %v7884_v19 = vadd.f32 %v1358_v43, %v7510_v49  ;;  %v1922_v43 = vsel %vm1905_vm4, %v1919_v17, %v1921_v48 }
 0x28d   : > { %v7887_v40 = vadd.f32 %v1447_v8, %v9824_v56 }
 0x28e   : > { %5475 = vmatmul.msk.bf16.gmra.mxu0 %vm701_vm0, %v1920_v35  ;;  %5491 = vmatmul.msk.bf16.gmra.mxu1 %vm701_vm0, %v1920_v35 }
 0x28f   : > { %9825 = vst [vmem:[#allocation36_spill] sm:$0xff] %v7887_v40 }
 0x293   : > { %v1360_v29 = vpop.f32.mrf.mxu0 }
 0x294   : > { %v1449_v22 = vpop.f32.mrf.mxu1  ;;  %v7892_v32 = vadd.f32 %v1360_v29, %v9826_v37 }
 0x295   : > { %v7895_v57 = vadd.f32 %v1449_v22, %v9828_v52  ;;  %v9833_v22 = vld [vmem:[#allocation43_spill] sm:$0xff] }
 0x296   : > { %9827 = vst [vmem:[#allocation16_spill] sm:$0xff] %v7892_v32 }
 0x297   : > { %9829 = vst [vmem:[#allocation37_spill] sm:$0xff] %v7895_v57 }
 0x29b   : > { %v1363_v31 = vpop.f32.mrf.mxu0 }
 0x29c   : > { %v1452_v49 = vpop.f32.mrf.mxu1  ;;  %v7900_v8 = vadd.f32 %v1363_v31, %v7529_v61  ;;  %v2247_v61 = vld [vmem:[%s9631_s2] sm:$0x3]  ;;  %v9837_v31 = vld [vmem:[#allocation19_spill] sm:$0xff] }
 0x29d   : > { %v7903_v56 = vadd.f32 %v1452_v49, %v7531_v15  ;;  %v1923_v17 = vrot.slane %v9837_v31, 2  ;;  %v7917_v15 = vperm.slane %v2247_v61, 0  ;;  %v7919_v49 = vperm.slane %v2247_v61, 1 }
 0x29e   : > { %9831 = vst [vmem:[#allocation38_spill] sm:$0xff] %v7900_v8  ;;  %5476 = vmatmul.msk.bf16.gmra.mxu0 %vm701_vm0, %v1922_v43  ;;  %5492 = vmatmul.msk.bf16.gmra.mxu1 %vm701_vm0, %v1922_v43 }
 0x29f   : > { %9832 = vst [vmem:[#allocation39_spill] sm:$0xff] %v7903_v56  ;;  %v1924_v8 = vsel %vm1905_vm4, %v1921_v48, %v1923_v17 }
 0x2a3   : > { %v1365_v35 = vpop.f32.mrf.mxu0 }
 0x2a4   : > { %v1454_v29 = vpop.f32.mrf.mxu1  ;;  %v7908_v37 = vadd.f32 %v1365_v35, %v9833_v22 }
 0x2a5   : > { %v7911_v52 = vadd.f32 %v1454_v29, %v9835_v1 }
 0x2a6   : > { %9834 = vst [vmem:[#allocation17_spill] sm:$0xff] %v7908_v37 }
 0x2a7   : > { %9836 = vst [vmem:[#allocation40_spill] sm:$0xff] %v7911_v52 }
 0x2ab   : > { %v2014_v56 = vpop.f32.mrf.mxu0 }
 0x2ac   : > { %v2103_v43 = vpop.f32.mrf.mxu1  ;;  %v2183_v35 = vadd.f32 %v2014_v56, %v7554_v16 }
 0x2ad   : > { %v2184_v22 = vadd.f32 %v2103_v43, %v7556_v55  ;;  %v1925_v43 = vrot.slane %v7161_v59, 2 }
 0x2ae   : > { %v2253_v29 = vadd.f32 %v7917_v15, %v2183_v35  ;;  %5477 = vmatmul.msk.bf16.gmra.mxu0 %vm701_vm0, %v1924_v8  ;;  %5493 = vmatmul.msk.bf16.gmra.mxu1 %vm701_vm0, %v1924_v8 }
 0x2af   : > { %v2254_v1 = vadd.f32 %v7919_v49, %v2184_v22  ;;  %v1926_v40 = vsel %vm1905_vm4, %v1923_v17, %v1925_v43 }
 0x2b0   : > { %v2317_v31 = vsub.f32 0.0, %v2253_v29 }
 0x2b1   : > { %v2318_v52 = vsub.f32 0.0, %v2254_v1 }
 0x2b2   : > { %v2381_v61 = vmul.f32 1.442695, %v2317_v31 }
 0x2b3   : > { %v2016_v37 = vpop.f32.mrf.mxu0  ;;  %v2383_v16 = vmul.f32 1.442695, %v2318_v52 }
 0x2b4   : > { %v2105_v57 = vpop.f32.mrf.mxu1  ;;  %v2185_v32 = vadd.f32 %v2016_v37, %v7563_v39  ;;  %6373 = vpow2.f32 %v2381_v61 }
 0x2b5   : > { %v2186_v48 = vadd.f32 %v2105_v57, %v7565_v60  ;;  %6375 = vpow2.f32 %v2383_v16 }
 0x2b6   : > { %v2255_v55 = vadd.f32 %v7917_v15, %v2185_v32 }
 0x2b7   : > { %v2256_v56 = vadd.f32 %v7919_v49, %v2186_v48 }
 0x2b8   : > { %v2319_v35 = vsub.f32 0.0, %v2255_v55 }
 0x2b9   : > { %v2320_v22 = vsub.f32 0.0, %v2256_v56 }
 0x2ba   : > { %v2385_v8 = vmul.f32 1.442695, %v2319_v35  ;;  %v6374_v32 = vpop.eup %6373 }
 0x2bb   : > { %v2387_v29 = vmul.f32 1.442695, %v2320_v22  ;;  %v2019_v1 = vpop.f32.mrf.mxu0  ;;  %v6376_v59 = vpop.eup %6375  ;;  %v2509_v52 = vadd.f32 1.0, %v6374_v32 }
 0x2bc   : > { %v2108_v31 = vpop.f32.mrf.mxu1  ;;  %6377 = vpow2.f32 %v2385_v8  ;;  %v2187_v39 = vadd.f32 %v2019_v1, %v7577_v0  ;;  %v2510_v17 = vadd.f32 1.0, %v6376_v59 }
 0x2bd   : > { %v2188_v60 = vadd.f32 %v2108_v31, %v7579_v53  ;;  %6379 = vpow2.f32 %v2387_v29 }
 0x2be   : > { %v2257_v57 = vadd.f32 %v7917_v15, %v2187_v39  ;;  %5478 = vmatmul.msk.bf16.gmra.mxu0 %vm701_vm0, %v1926_v40  ;;  %5494 = vmatmul.msk.bf16.gmra.mxu1 %vm701_vm0, %v1926_v40  ;;  %6381 = vrcp.f32 %v2509_v52  ;;  %v1927_v39 = vrot.slane %v7186_v28, 2 }
 0x2bf   : > { %v2258_v37 = vadd.f32 %v7919_v49, %v2188_v60 }
 0x2c0   : > { %v2321_v61 = vsub.f32 0.0, %v2257_v57 }
 0x2c1   : > { %v2322_v0 = vsub.f32 0.0, %v2258_v37 }
 0x2c2   : > { %v6378_v48 = vpop.eup %6377  ;;  %v2389_v55 = vmul.f32 1.442695, %v2321_v61  ;;  %v1928_v61 = vsel %vm1905_vm4, %v1925_v43, %v1927_v39 }
 0x2c3   : > { %v2511_v16 = vadd.f32 1.0, %v6378_v48  ;;  %v2021_v56 = vpop.f32.mrf.mxu0  ;;  %v6380_v8 = vpop.eup %6379  ;;  %v2391_v31 = vmul.f32 1.442695, %v2322_v0 }
 0x2c4   : > { %v2110_v53 = vpop.f32.mrf.mxu1  ;;  %v2189_v35 = vadd.f32 %v2021_v56, %v7586_v33  ;;  %v2512_v40 = vadd.f32 1.0, %v6380_v8  ;;  %v7945_v57 = vpop.eup %6381 }
 0x2c5   : > { %v2190_v22 = vadd.f32 %v2110_v53, %v7588_v27  ;;  %6383 = vrcp.f32 %v2511_v16 }
 0x2c6   : > { %6385 = vrcp.f32 %v2510_v17  ;;  %v2259_v29 = vadd.f32 %v7917_v15, %v2189_v35 }
 0x2c7   : > { %v2260_v1 = vadd.f32 %v7919_v49, %v2190_v22  ;;  %6387 = vpow2.f32 %v2389_v55 }
 0x2c8   : > { %6389 = vrcp.f32 %v2512_v40  ;;  %v2323_v60 = vsub.f32 0.0, %v2259_v29 }
 0x2c9   : > { %v2324_v32 = vsub.f32 0.0, %v2260_v1  ;;  %6391 = vpow2.f32 %v2391_v31 }
 0x2ca   : > { %v2393_v33 = vmul.f32 1.442695, %v2323_v60 }
 0x2cb   : > { %v2395_v59 = vmul.f32 1.442695, %v2324_v32  ;;  %v7947_v27 = vpop.eup %6383  ;;  %v2024_v37 = vpop.f32.mrf.mxu0 }
 0x2cc   : > { %v2113_v52 = vpop.f32.mrf.mxu1  ;;  %v7950_v48 = vpop.eup %6385  ;;  %6393 = vpow2.f32 %v2393_v33  ;;  %v2191_v17 = vadd.f32 %v2024_v37, %v7600_v23 }
 0x2cd   : > { %v2192_v28 = vadd.f32 %v2113_v52, %v7602_v21  ;;  %v6388_v55 = vpop.eup %6387  ;;  %6395 = vpow2.f32 %v2395_v59 }
 0x2ce   : > { %v7956_v0 = vpop.eup %6389  ;;  %v2261_v56 = vadd.f32 %v7917_v15, %v2191_v17  ;;  %5479 = vmatmul.msk.bf16.gmra.mxu0 %vm701_vm0, %v1928_v61  ;;  %5495 = vmatmul.msk.bf16.gmra.mxu1 %vm701_vm0, %v1928_v61  ;;  %v2513_v53 = vadd.f32 1.0, %v6388_v55 }
 0x2cf   : > { %v2262_v43 = vadd.f32 %v7919_v49, %v2192_v28  ;;  %v6392_v35 = vpop.eup %6391  ;;  %v1929_v28 = vrot.slane %v7211_v11, 2 }
 0x2d0   : > { %v2325_v21 = vsub.f32 0.0, %v2261_v56  ;;  %6397 = vrcp.f32 %v2513_v53  ;;  %v2514_v32 = vadd.f32 1.0, %v6392_v35 }
 0x2d1   : > { %v2326_v29 = vsub.f32 0.0, %v2262_v43 }
 0x2d2   : > { %v6394_v22 = vpop.eup %6393  ;;  %v2397_v8 = vmul.f32 1.442695, %v2325_v21 }
 0x2d3   : > { %v2515_v40 = vadd.f32 1.0, %v6394_v22  ;;  %v2026_v1 = vpop.f32.mrf.mxu0  ;;  %v6396_v60 = vpop.eup %6395  ;;  %v2399_v17 = vmul.f32 1.442695, %v2326_v29  ;;  %v1930_v22 = vsel %vm1905_vm4, %v1927_v39, %v1929_v28 }
 0x2d4   : > { %v2115_v31 = vpop.f32.mrf.mxu1  ;;  %v2193_v33 = vadd.f32 %v2026_v1, %v7609_v7  ;;  %v2516_v37 = vadd.f32 1.0, %v6396_v60 }
 0x2d5   : > { %v2194_v59 = vadd.f32 %v2115_v31, %v7611_v5  ;;  %6399 = vrcp.f32 %v2515_v40 }
 0x2d6   : > { %6401 = vpow2.f32 %v2397_v8  ;;  %v2263_v52 = vadd.f32 %v7917_v15, %v2193_v33  ;;  %v7969_v43 = vpop.eup %6397 }
 0x2d7   : > { %v2264_v61 = vadd.f32 %v7919_v49, %v2194_v59  ;;  %6403 = vrcp.f32 %v2516_v37 }
 0x2d8   : > { %6405 = vrcp.f32 %v2514_v32  ;;  %v2327_v55 = vsub.f32 0.0, %v2263_v52 }
 0x2d9   : > { %v2328_v56 = vsub.f32 0.0, %v2264_v61  ;;  %6407 = vpow2.f32 %v2399_v17 }
 0x2da   : > { %v2401_v53 = vmul.f32 1.442695, %v2327_v55 }
 0x2db   : > { %v2403_v7 = vmul.f32 1.442695, %v2328_v56  ;;  %v7971_v21 = vpop.eup %6399  ;;  %v2029_v5 = vpop.f32.mrf.mxu0 }
 0x2dc   : > { %v2118_v35 = vpop.f32.mrf.mxu1  ;;  %v6402_v8 = vpop.eup %6401  ;;  %6409 = vpow2.f32 %v2401_v53  ;;  %v2195_v40 = vadd.f32 %v2029_v5, %v7623_v47  ;;  %v2653_v29 = vpack.c.bf16 %v7971_v21, %v7969_v43  ;;  %v9869_v21 = vld [vmem:[#allocation30_spill] sm:$0xff] }
 0x2dd   : > { %v2196_v11 = vadd.f32 %v2118_v35, %v7625_v10  ;;  %v7978_v1 = vpop.eup %6403  ;;  %6411 = vpow2.f32 %v2403_v7  ;;  %v2517_v39 = vadd.f32 1.0, %v6402_v8 }
 0x2de   : > { %v7980_v31 = vpop.eup %6405  ;;  %v2265_v60 = vadd.f32 %v7917_v15, %v2195_v40  ;;  %5480 = vmatmul.msk.bf16.gmra.mxu0 %vm701_vm0, %v1930_v22  ;;  %5496 = vmatmul.msk.bf16.gmra.mxu1 %vm701_vm0, %v1930_v22 }
 0x2df   : > { %v2266_v32 = vadd.f32 %v7919_v49, %v2196_v11  ;;  %v6408_v59 = vpop.eup %6407  ;;  %6413 = vrcp.f32 %v2517_v39  ;;  %v1931_v11 = vrot.slane %v7236_v51, 2 }
 0x2e0   : > { %v2329_v10 = vsub.f32 0.0, %v2265_v60  ;;  %v2518_v7 = vadd.f32 1.0, %v6408_v59 }
 0x2e1   : > { %v2330_v33 = vsub.f32 0.0, %v2266_v32 }
 0x2e2   : > { %v6410_v37 = vpop.eup %6409  ;;  %v2405_v52 = vmul.f32 1.442695, %v2329_v10 }
 0x2e3   : > { %v2407_v61 = vmul.f32 1.442695, %v2330_v33  ;;  %v2519_v17 = vadd.f32 1.0, %v6410_v37  ;;  %v2031_v55 = vpop.f32.mrf.mxu0  ;;  %v6412_v53 = vpop.eup %6411 }
 0x2e4   : > { %v2120_v56 = vpop.f32.mrf.mxu1  ;;  %6415 = vpow2.f32 %v2405_v52  ;;  %v2197_v5 = vadd.f32 %v2031_v55, %v7632_v41  ;;  %v2520_v22 = vadd.f32 1.0, %v6412_v53  ;;  %v1932_v52 = vsel %vm1905_vm4, %v1929_v28, %v1931_v11 }
 0x2e5   : > { %v2198_v35 = vadd.f32 %v2120_v56, %v7634_v45  ;;  %6417 = vrcp.f32 %v2519_v17  ;;  %v7993_v39 = vpop.eup %6413 }
 0x2e6   : > { %6419 = vpow2.f32 %v2407_v61  ;;  %v2267_v8 = vadd.f32 %v7917_v15, %v2197_v5 }
 0x2e7   : > { %v2268_v40 = vadd.f32 %v7919_v49, %v2198_v35  ;;  %6421 = vrcp.f32 %v2520_v22 }
 0x2e8   : > { %6423 = vrcp.f32 %v2518_v7  ;;  %v2331_v60 = vsub.f32 0.0, %v2267_v8 }
 0x2e9   : > { %v2332_v32 = vsub.f32 0.0, %v2268_v40  ;;  %v1854_v40 = vadd.f32 %v7658_v20, %v7663_v63 }
 0x2ea   : > { %v6416_v10 = vpop.eup %6415  ;;  %v2409_v33 = vmul.f32 1.442695, %v2331_v60 }
 0x2eb   : > { %v2411_v41 = vmul.f32 1.442695, %v2332_v32  ;;  %v7995_v59 = vpop.eup %6417  ;;  %v2034_v45 = vpop.f32.mrf.mxu0  ;;  %v2521_v5 = vadd.f32 1.0, %v6416_v10  ;;  %v1855_v32 = vadd.f32 %v7660_v34, %v7666_v54  ;;  %v1933_v34 = vrot.slane %v7267_v26, 2 }
 0x2ec   : > { %v2123_v37 = vpop.f32.mrf.mxu1  ;;  %v6420_v61 = vpop.eup %6419  ;;  %6425 = vpow2.f32 %v2409_v33  ;;  %v2199_v17 = vadd.f32 %v2034_v45, %v7646_v36  ;;  %v2655_v56 = vpack.c.bf16 %v7995_v59, %v7993_v39 }
 0x2ed   : > { %v2200_v55 = vadd.f32 %v2123_v37, %v7648_v13  ;;  %v8004_v53 = vpop.eup %6421  ;;  %6427 = vpow2.f32 %v2411_v41  ;;  %v2522_v36 = vadd.f32 1.0, %v6420_v61 }
 0x2ee   : > { %v8006_v7 = vpop.eup %6423  ;;  %v2269_v35 = vadd.f32 %v7917_v15, %v2199_v17  ;;  %5481 = vmatmul.msk.bf16.gmra.mxu0 %vm701_vm0, %v1932_v52  ;;  %5497 = vmatmul.msk.bf16.gmra.mxu1 %vm701_vm0, %v1932_v52  ;;  %6429 = vrcp.f32 %v2521_v5 }
 0x2ef   : > { %v2270_v22 = vadd.f32 %v7919_v49, %v2200_v55  ;;  %6431 = vrcp.f32 %v2522_v36 }
 0x2f0   : > { %v2333_v28 = vsub.f32 0.0, %v2269_v35 }
 0x2f1   : > { %v2334_v8 = vsub.f32 0.0, %v2270_v22 }
 0x2f2   : > { %v6426_v60 = vpop.eup %6425  ;;  %v2413_v10 = vmul.f32 1.442695, %v2333_v28  ;;  %v1856_v28 = vadd.f32 %v7672_v2, %v7678_v44 }
 0x2f3   : > { %v2415_v33 = vmul.f32 1.442695, %v2334_v8  ;;  %v2523_v41 = vadd.f32 1.0, %v6426_v60  ;;  %v2036_v45 = vpop.f32.mrf.mxu0  ;;  %v6428_v52 = vpop.eup %6427  ;;  %v1857_v8 = vadd.f32 %v7674_v42, %v7681_v25 }
 0x2f4   : > { %v2125_v37 = vpop.f32.mrf.mxu1  ;;  %6433 = vpow2.f32 %v2413_v10  ;;  %v2201_v61 = vadd.f32 %v2036_v45, %v1854_v40  ;;  %v2524_v55 = vadd.f32 1.0, %v6428_v52  ;;  %v8021_v54 = vpop.eup %6429 }
 0x2f5   : > { %v2202_v17 = vadd.f32 %v2125_v37, %v1855_v32  ;;  %6435 = vrcp.f32 %v2523_v41  ;;  %v8023_v22 = vpop.eup %6431  ;;  %v1934_v41 = vsel %vm1905_vm4, %v1931_v11, %v1933_v34 }
 0x2f6   : > { %6437 = vpow2.f32 %v2415_v33  ;;  %v2271_v20 = vadd.f32 %v7917_v15, %v2201_v61 }
 0x2f7   : > { %v2272_v63 = vadd.f32 %v7919_v49, %v2202_v17  ;;  %6439 = vrcp.f32 %v2524_v55 }
 0x2f8   : > { %v2335_v5 = vsub.f32 0.0, %v2271_v20  ;;  %v9838_v20 = vld [vmem:[#allocation45_spill] sm:$0xff] }
 0x2f9   : > { %v2336_v35 = vsub.f32 0.0, %v2272_v63  ;;  %v1858_v63 = vadd.f32 %v9838_v20, %v7694_v14 }
 0x2fa   : > { %v6434_v36 = vpop.eup %6433  ;;  %v2417_v40 = vmul.f32 1.442695, %v2335_v5 }
 0x2fb   : > { %v2419_v60 = vmul.f32 1.442695, %v2336_v35  ;;  %v8029_v32 = vpop.eup %6435  ;;  %v2039_v10 = vpop.f32.mrf.mxu0  ;;  %v2525_v44 = vadd.f32 1.0, %v6434_v36  ;;  %v9839_v35 = vld [vmem:[#allocation47_spill] sm:$0xff]  ;;  %v9840_v36 = vld [vmem:[#allocation46_spill] sm:$0xff] }
 0x2fc   : > { %v2128_v33 = vpop.f32.mrf.mxu1  ;;  %v6438_v45 = vpop.eup %6437  ;;  %6441 = vpow2.f32 %v2417_v40  ;;  %v2203_v37 = vadd.f32 %v2039_v10, %v1856_v28  ;;  %v2657_v2 = vpack.c.bf16 %v8029_v32, %v8021_v54  ;;  %v1859_v28 = vadd.f32 %v9840_v36, %v9839_v35 }
 0x2fd   : > { %v2204_v52 = vadd.f32 %v2128_v33, %v1857_v8  ;;  %v8038_v42 = vpop.eup %6439  ;;  %6443 = vpow2.f32 %v2419_v60  ;;  %v2526_v11 = vadd.f32 1.0, %v6438_v45  ;;  %v1861_v35 = vadd.f32 %v7723_v6, %v7730_v58 }
 0x2fe   : > { %v2273_v25 = vadd.f32 %v7917_v15, %v2203_v37  ;;  %5482 = vmatmul.msk.bf16.gmra.mxu0 %vm701_vm0, %v1934_v41  ;;  %5498 = vmatmul.msk.bf16.gmra.mxu1 %vm701_vm0, %v1934_v41  ;;  %6445 = vrcp.f32 %v2525_v44 }
 0x2ff   : > { %v2274_v61 = vadd.f32 %v7919_v49, %v2204_v52  ;;  %6447 = vrcp.f32 %v2526_v11 }
 0x300   : > { %v2337_v17 = vsub.f32 0.0, %v2273_v25 }
 0x301   : > { %v2338_v55 = vsub.f32 0.0, %v2274_v61  ;;  %v9841_v61 = vld [vmem:[#allocation20_spill] sm:$0xff] }
 0x302   : > { %v6442_v5 = vpop.eup %6441  ;;  %v2421_v8 = vmul.f32 1.442695, %v2337_v17  ;;  %v8053_v44 = vrot.slane %v9841_v61, 2 }
 0x303   : > { %v2423_v40 = vmul.f32 1.442695, %v2338_v55  ;;  %v2527_v60 = vadd.f32 1.0, %v6442_v5  ;;  %v2041_v10 = vpop.f32.mrf.mxu0  ;;  %v6444_v41 = vpop.eup %6443 }
 0x304   : > { %v2130_v33 = vpop.f32.mrf.mxu1  ;;  %6449 = vpow2.f32 %v2421_v8  ;;  %v2205_v37 = vadd.f32 %v2041_v10, %v1858_v63  ;;  %v2528_v52 = vadd.f32 1.0, %v6444_v41  ;;  %v8055_v17 = vpop.eup %6445  ;;  %v1860_v63 = vadd.f32 %v7721_v24, %v7727_v12 }
 0x305   : > { %v2206_v45 = vadd.f32 %v2130_v33, %v1859_v28  ;;  %6451 = vrcp.f32 %v2527_v60  ;;  %v8057_v20 = vpop.eup %6447  ;;  %v1936_v10 = vsel %vm1905_vm4, %v1933_v34, %v8053_v44 }
 0x306   : > { %6453 = vpow2.f32 %v2423_v40  ;;  %v2275_v14 = vadd.f32 %v7917_v15, %v2205_v37 }
 0x307   : > { %v2276_v25 = vadd.f32 %v7919_v49, %v2206_v45  ;;  %6455 = vrcp.f32 %v2528_v52 }
 0x308   : > { %v2339_v11 = vsub.f32 0.0, %v2275_v14 }
 0x309   : > { %v2340_v55 = vsub.f32 0.0, %v2276_v25  ;;  %v9842_v25 = vld [vmem:[#allocation48_spill] sm:$0xff] }
 0x30a   : > { %v6450_v5 = vpop.eup %6449  ;;  %v2425_v36 = vmul.f32 1.442695, %v2339_v11  ;;  %v1862_v61 = vadd.f32 %v9842_v25, %v7739_v18  ;;  %v9845_v25 = vld [vmem:[#allocation53_spill] sm:$0xff] }
 0x30b   : > { %v2427_v28 = vmul.f32 1.442695, %v2340_v55  ;;  %v8063_v8 = vpop.eup %6451  ;;  %v2044_v40 = vpop.f32.mrf.mxu0  ;;  %v2529_v58 = vadd.f32 1.0, %v6450_v5  ;;  %v9843_v55 = vld [vmem:[#allocation50_spill] sm:$0xff]  ;;  %v9844_v5 = vld [vmem:[#allocation49_spill] sm:$0xff] }
 0x30c   : > { %v2133_v60 = vpop.f32.mrf.mxu1  ;;  %v6454_v33 = vpop.eup %6453  ;;  %6457 = vpow2.f32 %v2425_v36  ;;  %v2207_v41 = vadd.f32 %v2044_v40, %v1860_v63  ;;  %v2659_v12 = vpack.c.bf16 %v8063_v8, %v8055_v17  ;;  %v1863_v63 = vadd.f32 %v9844_v5, %v9843_v55  ;;  %v9848_v5 = vld [vmem:[#allocation52_spill] sm:$0xff] }
 0x30d   : > { %v2208_v37 = vadd.f32 %v2133_v60, %v1861_v35  ;;  %v8071_v24 = vpop.eup %6455  ;;  %6459 = vpow2.f32 %v2427_v28  ;;  %v2530_v34 = vadd.f32 1.0, %v6454_v33 }
 0x30e   : > { %v2277_v6 = vadd.f32 %v7917_v15, %v2207_v41  ;;  %5483 = vmatmul.msk.bf16.gmra.mxu0 %vm701_vm0, %v1936_v10  ;;  %5499 = vmatmul.msk.bf16.gmra.mxu1 %vm701_vm0, %v1936_v10  ;;  %6461 = vrcp.f32 %v2529_v58 }
 0x30f   : > { %v2278_v45 = vadd.f32 %v7919_v49, %v2208_v37  ;;  %6463 = vrcp.f32 %v2530_v34 }
 0x310   : > { %v2341_v52 = vsub.f32 0.0, %v2277_v6 }
 0x311   : > { %v2342_v14 = vsub.f32 0.0, %v2278_v45 }
 0x312   : > { %v6458_v11 = vpop.eup %6457  ;;  %v2429_v35 = vmul.f32 1.442695, %v2341_v52 }
 0x313   : > { %v2431_v36 = vmul.f32 1.442695, %v2342_v14  ;;  %v2531_v28 = vadd.f32 1.0, %v6458_v11  ;;  %v2046_v40 = vpop.f32.mrf.mxu0  ;;  %v6460_v10 = vpop.eup %6459  ;;  %v9846_v11 = vld [vmem:[#allocation51_spill] sm:$0xff] }
 0x314   : > { %v2135_v60 = vpop.f32.mrf.mxu1  ;;  %6465 = vpow2.f32 %v2429_v35  ;;  %v2209_v41 = vadd.f32 %v2046_v40, %v1862_v61  ;;  %v2532_v37 = vadd.f32 1.0, %v6460_v10  ;;  %v8085_v45 = vpop.eup %6461  ;;  %v1864_v55 = vadd.f32 %v9846_v11, %v9845_v25  ;;  %v9847_v61 = vld [vmem:[#allocation54_spill] sm:$0xff] }
 0x315   : > { %v2210_v33 = vadd.f32 %v2135_v60, %v1863_v63  ;;  %6467 = vrcp.f32 %v2531_v28  ;;  %v8087_v34 = vpop.eup %6463  ;;  %v1865_v63 = vadd.f32 %v9848_v5, %v9847_v61  ;;  %v9849_v5 = vld [vmem:[#allocation57_spill] sm:$0xff] }
 0x316   : > { %6469 = vpow2.f32 %v2431_v36  ;;  %v2279_v18 = vadd.f32 %v7917_v15, %v2209_v41 }
 0x317   : > { %v2280_v6 = vadd.f32 %v7919_v49, %v2210_v33  ;;  %6471 = vrcp.f32 %v2532_v37 }
 0x318   : > { %v2343_v58 = vsub.f32 0.0, %v2279_v18 }
 0x319   : > { %v2344_v52 = vsub.f32 0.0, %v2280_v6 }
 0x31a   : > { %v6466_v14 = vpop.eup %6465  ;;  %v2433_v35 = vmul.f32 1.442695, %v2343_v58 }
 0x31b   : > { %v2435_v36 = vmul.f32 1.442695, %v2344_v52  ;;  %v8093_v28 = vpop.eup %6467  ;;  %v2049_v40 = vpop.f32.mrf.mxu0  ;;  %v2533_v6 = vadd.f32 1.0, %v6466_v14 }
 0x31c   : > { %v2138_v60 = vpop.f32.mrf.mxu1  ;;  %v6470_v10 = vpop.eup %6469  ;;  %6473 = vpow2.f32 %v2433_v35  ;;  %v2211_v41 = vadd.f32 %v2049_v40, %v1864_v55  ;;  %v2661_v37 = vpack.c.bf16 %v8093_v28, %v8085_v45  ;;  %v9852_v40 = vld [vmem:[#allocation56_spill] sm:$0xff]  ;;  %v9863_v28 = vld [vmem:[#allocation27_spill] sm:$0xff] }
 0x31d   : > { %v2212_v33 = vadd.f32 %v2138_v60, %v1865_v63  ;;  %v8097_v18 = vpop.eup %6471  ;;  %6475 = vpow2.f32 %v2435_v36  ;;  %v2534_v11 = vadd.f32 1.0, %v6470_v10  ;;  %v9850_v63 = vld [vmem:[#allocation55_spill] sm:$0xff]  ;;  %v9851_v36 = vld [vmem:[#allocation21_spill] sm:$0xff] }
 0x31e   : > { %v2281_v25 = vadd.f32 %v7917_v15, %v2211_v41  ;;  %5484 = vmatmul.msk.bf16.gmra.mxu0 %vm701_vm0, %v8053_v44  ;;  %5500 = vmatmul.msk.bf16.gmra.mxu1 %vm701_vm0, %v8053_v44  ;;  %v1866_v14 = vadd.f32 %v9850_v63, %v9849_v5  ;;  %v1867_v60 = vadd.f32 %v9852_v40, %v9851_v36  ;;  %6477 = vrcp.f32 %v2533_v6 }
 0x31f   : > { %v2282_v58 = vadd.f32 %v7919_v49, %v2212_v33  ;;  %6479 = vrcp.f32 %v2534_v11 }
 0x320   : > { %v2345_v55 = vsub.f32 0.0, %v2281_v25 }
 0x321   : > { %v2346_v61 = vsub.f32 0.0, %v2282_v58 }
 0x322   : > { %v6474_v35 = vpop.eup %6473  ;;  %v2437_v41 = vmul.f32 1.442695, %v2345_v55 }
 0x323   : > { %v2439_v33 = vmul.f32 1.442695, %v2346_v61  ;;  %v2535_v23 = vadd.f32 1.0, %v6474_v35  ;;  %v2051_v47 = vpop.f32.mrf.mxu0  ;;  %v6476_v13 = vpop.eup %6475 }
 0x324   : > { %v2140_v44 = vpop.f32.mrf.mxu1  ;;  %6481 = vpow2.f32 %v2437_v41  ;;  %v2213_v51 = vadd.f32 %v2051_v47, %v1866_v14  ;;  %v2536_v25 = vadd.f32 1.0, %v6476_v13  ;;  %v8113_v63 = vpop.eup %6477  ;;  %v9853_v14 = vld [vmem:[#allocation10_spill] sm:$0xff] }
 0x325   : > { %v2214_v10 = vadd.f32 %v2140_v44, %v1867_v60  ;;  %6483 = vrcp.f32 %v2535_v23  ;;  %v8115_v11 = vpop.eup %6479  ;;  %v9854_v60 = vld [vmem:[#allocation11_spill] sm:$0xff] }
 0x326   : > { %6485 = vpow2.f32 %v2439_v33  ;;  %v2283_v58 = vadd.f32 %v7917_v15, %v2213_v51 }
 0x327   : > { %v2284_v5 = vadd.f32 %v7919_v49, %v2214_v10  ;;  %6487 = vrcp.f32 %v2536_v25 }
 0x328   : > { %v2347_v6 = vsub.f32 0.0, %v2283_v58 }
 0x329   : > { %v2348_v55 = vsub.f32 0.0, %v2284_v5 }
 0x32a   : > { %v6482_v61 = vpop.eup %6481  ;;  %v2441_v35 = vmul.f32 1.442695, %v2347_v6 }
 0x32b   : > { %v2443_v36 = vmul.f32 1.442695, %v2348_v55  ;;  %v8117_v40 = vpop.eup %6483  ;;  %v2054_v47 = vpop.f32.mrf.mxu0  ;;  %v2537_v10 = vadd.f32 1.0, %v6482_v61 }
 0x32c   : > { %v2143_v23 = vpop.f32.mrf.mxu1  ;;  %v6486_v13 = vpop.eup %6485  ;;  %6489 = vpow2.f32 %v2441_v35  ;;  %v2215_v51 = vadd.f32 %v2054_v47, %v9853_v14  ;;  %v2663_v33 = vpack.c.bf16 %v8117_v40, %v8113_v63  ;;  %v9855_v47 = vld [vmem:[#allocation22_spill] sm:$0xff] }
 0x32d   : > { %v2216_v41 = vadd.f32 %v2143_v23, %v9854_v60  ;;  %v8123_v44 = vpop.eup %6487  ;;  %6491 = vpow2.f32 %v2443_v36  ;;  %v2538_v6 = vadd.f32 1.0, %v6486_v13  ;;  %v1870_v23 = vadd.f32 %v9855_v47, %v7784_v46  ;;  %v9856_v60 = vld [vmem:[#allocation23_spill] sm:$0xff]  ;;  %v9857_v63 = vld [vmem:[#allocation58_spill] sm:$0xff] }
 0x32e   : > { %v2285_v25 = vadd.f32 %v7917_v15, %v2215_v51  ;;  %v1871_v40 = vadd.f32 %v9857_v63, %v9856_v60  ;;  %6493 = vrcp.f32 %v2537_v10 }
 0x32f   : > { %v2286_v58 = vadd.f32 %v7919_v49, %v2216_v41  ;;  %6495 = vrcp.f32 %v2538_v6 }
 0x330   : > { %v2349_v55 = vsub.f32 0.0, %v2285_v25 }
 0x331   : > { %v2350_v35 = vsub.f32 0.0, %v2286_v58 }
 0x332   : > { %v6490_v14 = vpop.eup %6489  ;;  %v2445_v61 = vmul.f32 1.442695, %v2349_v55 }
 0x333   : > { %v2447_v36 = vmul.f32 1.442695, %v2350_v35  ;;  %v2539_v51 = vadd.f32 1.0, %v6490_v14  ;;  %v2056_v26 = vpop.f32.mrf.mxu0  ;;  %v6492_v52 = vpop.eup %6491 }
 0x334   : > { %v2145_v41 = vpop.f32.mrf.mxu1  ;;  %6497 = vpow2.f32 %v2445_v61  ;;  %v2217_v5 = vadd.f32 %v2056_v26, %v1870_v23  ;;  %v2540_v25 = vadd.f32 1.0, %v6492_v52  ;;  %v6494_v47 = vpop.eup %6493  ;;  %v9858_v52 = vld [vmem:[#allocation24_spill] sm:$0xff] }
 0x335   : > { %v2218_v13 = vadd.f32 %v2145_v41, %v1871_v40  ;;  %6499 = vrcp.f32 %v2539_v51  ;;  %v8135_v35 = vpop.eup %6495 }
 0x336   : > { %6501 = vpow2.f32 %v2447_v36  ;;  %v2287_v46 = vadd.f32 %v7917_v15, %v2217_v5  ;;  %v9859_v36 = vld [vmem:[#allocation12_spill] sm:$0xff] }
 0x337   : > { %v2288_v58 = vadd.f32 %v7919_v49, %v2218_v13  ;;  %6503 = vrcp.f32 %v2540_v25 }
 0x338   : > { %v2351_v10 = vsub.f32 0.0, %v2287_v46 }
 0x339   : > { %v2352_v55 = vsub.f32 0.0, %v2288_v58 }
 0x33a   : > { %v6498_v6 = vpop.eup %6497  ;;  %v2449_v14 = vmul.f32 1.442695, %v2351_v10 }
 0x33b   : > { %v2451_v60 = vmul.f32 1.442695, %v2352_v55  ;;  %v6500_v63 = vpop.eup %6499  ;;  %v2059_v61 = vpop.f32.mrf.mxu0  ;;  %v2541_v13 = vadd.f32 1.0, %v6498_v6 }
 0x33c   : > { %v2148_v26 = vpop.f32.mrf.mxu1  ;;  %v6502_v23 = vpop.eup %6501  ;;  %6505 = vpow2.f32 %v2449_v14  ;;  %v2219_v40 = vadd.f32 %v2059_v61, %v9858_v52  ;;  %v2665_v51 = vpack.c.bf16 %v6500_v63, %v6494_v47  ;;  %v9860_v61 = vld [vmem:[#allocation25_spill] sm:$0xff]  ;;  %v9861_v47 = vld [vmem:[#allocation26_spill] sm:$0xff]  ;;  %v9862_v63 = vld [vmem:[#allocation59_spill] sm:$0xff] }
 0x33d   : > { %v2220_v5 = vadd.f32 %v2148_v26, %v9859_v36  ;;  %v8139_v41 = vpop.eup %6503  ;;  %6507 = vpow2.f32 %v2451_v60  ;;  %v2542_v10 = vadd.f32 1.0, %v6502_v23  ;;  %v1874_v52 = vadd.f32 %v9860_v61, %v7804_v62 }
 0x33e   : > { %v2289_v25 = vadd.f32 %v7917_v15, %v2219_v40  ;;  %2775 = vmatpush.bf16.msra.mxu2 %v2665_v51  ;;  %v2666_v58 = vpack.c.bf16 %v8139_v41, %v8135_v35  ;;  %v1875_v36 = vadd.f32 %v9862_v63, %v9861_v47  ;;  %6509 = vrcp.f32 %v2541_v13 }
 0x33f   : > { %v2290_v46 = vadd.f32 %v7919_v49, %v2220_v5  ;;  %6511 = vrcp.f32 %v2542_v10 }
 0x340   : > { %v2353_v55 = vsub.f32 0.0, %v2289_v25 }
 0x341   : > { %v2354_v14 = vsub.f32 0.0, %v2290_v46 }
 0x342   : > { %v6506_v26 = vpop.eup %6505  ;;  %v2453_v6 = vmul.f32 1.442695, %v2353_v55  ;;  %2776 = vmatpush.bf16.msra.mxu2 %v2663_v33 }
 0x343   : > { %v2455_v60 = vmul.f32 1.442695, %v2354_v14  ;;  %v2543_v40 = vadd.f32 1.0, %v6506_v26  ;;  %v2061_v5 = vpop.f32.mrf.mxu0  ;;  %v6508_v16 = vpop.eup %6507 }
 0x344   : > { %v2150_v51 = vpop.f32.mrf.mxu1  ;;  %6513 = vpow2.f32 %v2453_v6  ;;  %v2221_v23 = vadd.f32 %v2061_v5, %v1874_v52  ;;  %v2544_v46 = vadd.f32 1.0, %v6508_v16  ;;  %v8154_v33 = vpop.eup %6509 }
 0x345   : > { %v2222_v25 = vadd.f32 %v2150_v51, %v1875_v36  ;;  %6515 = vrcp.f32 %v2543_v40  ;;  %v8156_v55 = vpop.eup %6511  ;;  %v9864_v36 = vld [vmem:[#allocation13_spill] sm:$0xff] }
 0x346   : > { %6517 = vpow2.f32 %v2455_v60  ;;  %v2291_v62 = vadd.f32 %v7917_v15, %v2221_v23  ;;  %2777 = vmatpush.bf16.msra.mxu2 %v2661_v37 }
 0x347   : > { %v2292_v61 = vadd.f32 %v7919_v49, %v2222_v25  ;;  %6519 = vrcp.f32 %v2544_v46  ;;  %v9865_v46 = vld [vmem:[#allocation28_spill] sm:$0xff] }
 0x348   : > { %v2355_v13 = vsub.f32 0.0, %v2291_v62  ;;  %v1878_v62 = vadd.f32 %v9865_v46, %v7824_v9  ;;  %v9870_v46 = vld [vmem:[#allocation14_spill] sm:$0xff] }
 0x349   : > { %v2356_v10 = vsub.f32 0.0, %v2292_v61 }
 0x34a   : > { %v6514_v14 = vpop.eup %6513  ;;  %v2457_v52 = vmul.f32 1.442695, %v2355_v13  ;;  %2778 = vmatpush.bf16.msra.mxu2 %v2659_v12  ;;  %v9866_v13 = vld [vmem:[#allocation29_spill] sm:$0xff] }
 0x34b   : > { %v2459_v26 = vmul.f32 1.442695, %v2356_v10  ;;  %v8161_v16 = vpop.eup %6515  ;;  %v2064_v47 = vpop.f32.mrf.mxu0  ;;  %v2545_v5 = vadd.f32 1.0, %v6514_v14  ;;  %v9867_v10 = vld [vmem:[#allocation60_spill] sm:$0xff] }
 0x34c   : > { %v2153_v63 = vpop.f32.mrf.mxu1  ;;  %v6518_v45 = vpop.eup %6517  ;;  %6521 = vpow2.f32 %v2457_v52  ;;  %v2223_v37 = vadd.f32 %v2064_v47, %v9863_v28  ;;  %v2667_v60 = vpack.c.bf16 %v8161_v16, %v8154_v33  ;;  %v1879_v14 = vadd.f32 %v9867_v10, %v9866_v13  ;;  %v5513_v33 = vld [vmem:[%s9632_s3 + $0x18] sm:$0xf0] }
 0x34d   : > { %v2224_v6 = vadd.f32 %v2153_v63, %v9864_v36  ;;  %v8167_v40 = vpop.eup %6519  ;;  %6523 = vpow2.f32 %v2459_v26  ;;  %v2546_v51 = vadd.f32 1.0, %v6518_v45 }
 0x34e   : > { %v2293_v17 = vadd.f32 %v7917_v15, %v2223_v37  ;;  %2779 = vmatpush.bf16.msra.mxu2 %v2657_v2  ;;  %v2668_v12 = vpack.c.bf16 %v8167_v40, %v8156_v55  ;;  %6525 = vrcp.f32 %v2545_v5  ;;  %v6216_v55 = vld [vmem:[%s9632_s3 + $0x44] sm:$0xf]  ;;  %v5537_v40 = vld [vmem:[%s9632_s3 + $0x48] sm:$0xf0] }
 0x34f   : > { %v2294_v8 = vadd.f32 %v7919_v49, %v2224_v6  ;;  %6527 = vrcp.f32 %v2546_v51 }
 0x350   : > { %v2357_v23 = vsub.f32 0.0, %v2293_v17 }
 0x351   : > { %v2358_v25 = vsub.f32 0.0, %v2294_v8  ;;  %v9868_v8 = vpack.c.bf16 %v7947_v27, %v7945_v57 }
 0x352   : > { %v6522_v61 = vpop.eup %6521  ;;  %v2461_v52 = vmul.f32 1.442695, %v2357_v23  ;;  %2780 = vmatpush.bf16.msra.mxu2 %v2655_v56 }
 0x353   : > { %v2463_v26 = vmul.f32 1.442695, %v2358_v25  ;;  %v2547_v54 = vadd.f32 1.0, %v6522_v61  ;;  %v2066_v32 = vpop.f32.mrf.mxu0  ;;  %v6524_v47 = vpop.eup %6523 }
 0x354   : > { %v2155_v2 = vpop.f32.mrf.mxu1  ;;  %6529 = vpow2.f32 %v2461_v52  ;;  %v2225_v63 = vadd.f32 %v2066_v32, %v1878_v62  ;;  %v2548_v9 = vadd.f32 1.0, %v6524_v47  ;;  %v8188_v39 = vpop.eup %6525  ;;  %v9874_v47 = vld [vmem:[#allocation61_spill] sm:$0xff] }
 0x355   : > { %v2226_v45 = vadd.f32 %v2155_v2, %v1879_v14  ;;  %6531 = vrcp.f32 %v2547_v54  ;;  %v8190_v36 = vpop.eup %6527  ;;  %v9873_v2 = vld [vmem:[#allocation32_spill] sm:$0xff] }
 0x356   : > { %6533 = vpow2.f32 %v2463_v26  ;;  %v2295_v28 = vadd.f32 %v7917_v15, %v2225_v63  ;;  %2781 = vmatpush.bf16.msra.mxu2 %v2653_v29  ;;  %v9872_v26 = vld [vmem:[#allocation31_spill] sm:$0xff]  ;;  %v1883_v63 = vadd.f32 %v9874_v47, %v9873_v2 }
 0x357   : > { %v2296_v37 = vadd.f32 %v7919_v49, %v2226_v45  ;;  %6535 = vrcp.f32 %v2548_v9  ;;  %v1882_v54 = vadd.f32 %v9872_v26, %v7844_v38  ;;  %v1729_v45 = vpop.f32.mrf.mxu2  ;;  %v1818_v9 = vpop.f32.mrf.mxu3 }
 0x358   : > { %v2359_v59 = vsub.f32 0.0, %v2295_v28 }
 0x359   : > { %v2360_v56 = vsub.f32 0.0, %v2296_v37 }
 0x35a   : > { %v6530_v6 = vpop.eup %6529  ;;  %v2465_v5 = vmul.f32 1.442695, %v2359_v59  ;;  %2782 = vmatpush.bf16.msra.mxu2 %v9868_v8 }
 0x35b   : > { %v2467_v17 = vmul.f32 1.442695, %v2360_v56  ;;  %v8195_v51 = vpop.eup %6531  ;;  %v2069_v23 = vpop.f32.mrf.mxu0  ;;  %v2549_v57 = vadd.f32 1.0, %v6530_v6 }
 0x35c   : > { %v2158_v25 = vpop.f32.mrf.mxu1  ;;  %v6534_v43 = vpop.eup %6533  ;;  %6537 = vpow2.f32 %v2465_v5  ;;  %v2227_v29 = vadd.f32 %v2069_v23, %v9869_v21  ;;  %v2669_v61 = vpack.c.bf16 %v8195_v51, %v8188_v39  ;;  %v6210_v39 = vld [vmem:[%s9632_s3 + $0x14] sm:$0xf]  ;;  %v5521_v51 = vld [vmem:[%s9632_s3 + $0x28] sm:$0xf0] }
 0x35d   : > { %v2228_v62 = vadd.f32 %v2158_v25, %v9870_v46  ;;  %v8204_v13 = vpop.eup %6535  ;;  %6539 = vpow2.f32 %v2467_v17  ;;  %v2550_v41 = vadd.f32 1.0, %v6534_v43  ;;  %v9876_v25 = vpack.c.bf16 %v8071_v24, %v8057_v20 }
 0x35e   : > { %2863 = vmatpush.bf16.msrb.mxu2 %v2666_v58  ;;  %v2297_v27 = vadd.f32 %v7917_v15, %v2227_v29  ;;  %v2670_v35 = vpack.c.bf16 %v8204_v13, %v8190_v36  ;;  %v9871_v58 = vpack.c.bf16 %v8123_v44, %v8115_v11  ;;  %6541 = vrcp.f32 %v2549_v57  ;;  %v6214_v36 = vld [vmem:[%s9632_s3 + $0x34] sm:$0xf]  ;;  %v5529_v13 = vld [vmem:[%s9632_s3 + $0x38] sm:$0xf0] }
 0x35f   : > { %v2298_v10 = vadd.f32 %v7919_v49, %v2228_v62  ;;  %6543 = vrcp.f32 %v2550_v41  ;;  %v9875_v11 = vpack.c.bf16 %v8097_v18, %v8087_v34  ;;  %v9877_v41 = vpack.c.bf16 %v8038_v42, %v8023_v22  ;;  %v1732_v20 = vpop.f32.mrf.mxu2  ;;  %v1821_v24 = vpop.f32.mrf.mxu3  ;;  %v5503_v42 = vld [vmem:[%s9632_s3] sm:$0xf] }
 0x360   : > { %v2361_v14 = vsub.f32 0.0, %v2297_v27  ;;  %v5516_v16 = vor.u32 %v6210_v39, %v5513_v33 }
 0x361   : > { %v2362_v52 = vsub.f32 0.0, %v2298_v10 }
 0x362   : > { %2864 = vmatpush.bf16.msrb.mxu2 %v9871_v58  ;;  %v6538_v32 = vpop.eup %6537  ;;  %v2469_v28 = vmul.f32 1.442695, %v2361_v14 }
 0x363   : > { %v2471_v37 = vmul.f32 1.442695, %v2362_v52  ;;  %v2551_v59 = vadd.f32 1.0, %v6538_v32  ;;  %v2071_v56 = vpop.f32.mrf.mxu0  ;;  %v6540_v44 = vpop.eup %6539 }
 0x364   : > { %v2160_v6 = vpop.f32.mrf.mxu1  ;;  %6545 = vpow2.f32 %v2469_v28  ;;  %v2229_v38 = vadd.f32 %v2071_v56, %v1882_v54  ;;  %v2552_v17 = vadd.f32 1.0, %v6540_v44  ;;  %v8225_v43 = vpop.eup %6541  ;;  %v1886_v56 = vadd.f32 %v1729_v45, %v7860_v50 }
 0x365   : > { %v2230_v5 = vadd.f32 %v2160_v6, %v1883_v63  ;;  %6547 = vrcp.f32 %v2551_v59  ;;  %v8227_v21 = vpop.eup %6543  ;;  %v9878_v63 = vpack.c.bf16 %v8004_v53, %v8006_v7  ;;  %v9880_v53 = vpack.c.bf16 %v7978_v1, %v7980_v31 }
 0x366   : > { %2865 = vmatpush.bf16.msrb.mxu2 %v9875_v11  ;;  %6549 = vpow2.f32 %v2471_v37  ;;  %v2299_v8 = vadd.f32 %v7917_v15, %v2229_v38  ;;  %v9879_v11 = vld [vmem:[#allocation33_spill] sm:$0xff] }
 0x367   : > { %v2300_v23 = vadd.f32 %v7919_v49, %v2230_v5  ;;  %6551 = vrcp.f32 %v2552_v17  ;;  %v1887_v44 = vadd.f32 %v1818_v9, %v9879_v11 }
 0x368   : > { %v2363_v34 = vsub.f32 0.0, %v2299_v8 }
 0x369   : > { %v2364_v18 = vsub.f32 0.0, %v2300_v23 }
 0x36a   : > { %2866 = vmatpush.bf16.msrb.mxu2 %v9876_v25  ;;  %v6546_v29 = vpop.eup %6545  ;;  %v2473_v46 = vmul.f32 1.442695, %v2363_v34  ;;  %v1734_v34 = vpop.f32.mrf.mxu2 }
 0x36b   : > { %v2475_v62 = vmul.f32 1.442695, %v2364_v18  ;;  %v8229_v57 = vpop.eup %6547  ;;  %v2074_v27 = vpop.f32.mrf.mxu0  ;;  %v2553_v32 = vadd.f32 1.0, %v6546_v29 }
 0x36c   : > { %v2163_v10 = vpop.f32.mrf.mxu1  ;;  %v6550_v58 = vpop.eup %6549  ;;  %6553 = vpow2.f32 %v2473_v46  ;;  %v2231_v14 = vadd.f32 %v2074_v27, %v7853_v30  ;;  %v2671_v26 = vpack.c.bf16 %v8229_v57, %v8225_v43  ;;  %v6209_v30 = vld [vmem:[%s9632_s3 + $0x4] sm:$0xf0]  ;;  %v9881_v46 = vpack.c.bf16 %v7956_v0, %v7950_v48  ;;  %v6218_v57 = vld [vmem:[%s9632_s3 + $0x54] sm:$0xf] }
 0x36d   : > { %v2232_v52 = vadd.f32 %v2163_v10, %v7855_v3  ;;  %v8238_v54 = vpop.eup %6551  ;;  %6555 = vpow2.f32 %v2475_v62  ;;  %v2554_v47 = vadd.f32 1.0, %v6550_v58  ;;  %v8253_v28 = vor.u32 %v6209_v30, %v5503_v42  ;;  %v1823_v18 = vpop.f32.mrf.mxu3  ;;  %v9882_v58 = vld [vmem:[#allocation15_spill] sm:$0xff] }
 0x36e   : > { %2867 = vmatpush.bf16.msrb.mxu2 %v9877_v41  ;;  %v2301_v2 = vadd.f32 %v7917_v15, %v2231_v14  ;;  %v2672_v3 = vpack.c.bf16 %v8238_v54, %v8227_v21  ;;  %6557 = vrcp.f32 %v2553_v32  ;;  %v1888_v41 = vadd.f32 %v1732_v20, %v7868_v4 }
 0x36f   : > { %v2302_v22 = vadd.f32 %v7919_v49, %v2232_v52  ;;  %2783 = vmatmul.bf16.vlgmr.msra.gmra.mxu2 %v8253_v28  ;;  %6559 = vrcp.f32 %v2554_v47  ;;  %v1889_v14 = vadd.f32 %v1821_v24, %v9882_v58 }
 0x370   : > { %v2365_v37 = vsub.f32 0.0, %v2301_v2 }
 0x371   : > { %v2366_v59 = vsub.f32 0.0, %v2302_v22 }
 0x372   : > { %2868 = vmatpush.bf16.msrb.mxu2 %v9878_v63  ;;  %v6554_v6 = vpop.eup %6553  ;;  %v2477_v38 = vmul.f32 1.442695, %v2365_v37 }
 0x373   : > { %v2479_v5 = vmul.f32 1.442695, %v2366_v59  ;;  %v2555_v17 = vadd.f32 1.0, %v6554_v6  ;;  %v2076_v8 = vpop.f32.mrf.mxu0  ;;  %v6556_v7 = vpop.eup %6555  ;;  %v5511_v59 = vld [vmem:[%s9632_s3 + $0x10] sm:$0xf] }
 0x374   : > { %v2165_v23 = vpop.f32.mrf.mxu1  ;;  %6561 = vpow2.f32 %v2477_v38  ;;  %v2233_v25 = vadd.f32 %v2076_v8, %v1886_v56  ;;  %v2556_v45 = vadd.f32 1.0, %v6556_v7  ;;  %v8266_v1 = vpop.eup %6557  ;;  %v6211_v56 = vld [vmem:[%s9632_s3 + $0x14] sm:$0xf0]  ;;  %v9883_v8 = vld [vmem:[#allocation34_spill] sm:$0xff] }
 0x375   : > { %v2234_v50 = vadd.f32 %v2165_v23, %v1887_v44  ;;  %6563 = vrcp.f32 %v2555_v17  ;;  %v8268_v27 = vpop.eup %6559  ;;  %v8288_v11 = vor.u32 %v6211_v56, %v5511_v59  ;;  %v1737_v44 = vpop.f32.mrf.mxu2  ;;  %v1890_v23 = vadd.f32 %v1734_v34, %v9883_v8  ;;  %v9884_v7 = vld [vmem:[#allocation35_spill] sm:$0xff] }
 0x376   : > { %2869 = vmatpush.bf16.msrb.mxu2 %v9880_v53  ;;  %6565 = vpow2.f32 %v2479_v5  ;;  %v2303_v9 = vadd.f32 %v7917_v15, %v2233_v25  ;;  %v1826_v38 = vpop.f32.mrf.mxu3  ;;  %v1891_v25 = vadd.f32 %v1823_v18, %v9884_v7 }
 0x377   : > { %v2304_v29 = vadd.f32 %v7919_v49, %v2234_v50  ;;  %6567 = vrcp.f32 %v2556_v45 }
 0x378   : > { %v2367_v31 = vsub.f32 0.0, %v2303_v9 }
 0x379   : > { %v2368_v62 = vsub.f32 0.0, %v2304_v29 }
 0x37a   : > { %2870 = vmatpush.bf16.msrb.mxu2 %v9881_v46  ;;  %v6562_v10 = vpop.eup %6561  ;;  %v2481_v52 = vmul.f32 1.442695, %v2367_v31 }
 0x37b   : > { %v2483_v32 = vmul.f32 1.442695, %v2368_v62  ;;  %v8272_v2 = vpop.eup %6563  ;;  %v2079_v22 = vpop.f32.mrf.mxu0  ;;  %v2557_v37 = vadd.f32 1.0, %v6562_v10 }
 0x37c   : > { %v2168_v42 = vpop.f32.mrf.mxu1  ;;  %v6566_v30 = vpop.eup %6565  ;;  %6569 = vpow2.f32 %v2481_v52  ;;  %v2235_v48 = vadd.f32 %v2079_v22, %v1888_v41  ;;  %v2673_v47 = vpack.c.bf16 %v8272_v2, %v8266_v1  ;;  %v6220_v2 = vld [vmem:[%s9632_s3 + $0x64] sm:$0xf] }
 0x37d   : > { %v2236_v0 = vadd.f32 %v2168_v42, %v1889_v14  ;;  %v8276_v63 = vpop.eup %6567  ;;  %6571 = vpow2.f32 %v2483_v32  ;;  %v2558_v6 = vadd.f32 1.0, %v6566_v30  ;;  %v1892_v42 = vadd.f32 %v1737_v44, %v7884_v19  ;;  %v9885_v30 = vld [vmem:[#allocation36_spill] sm:$0xff] }
 0x37e   : > { %v2305_v4 = vadd.f32 %v7917_v15, %v2235_v48  ;;  %v2674_v24 = vpack.c.bf16 %v8276_v63, %v8268_v27  ;;  %6573 = vrcp.f32 %v2557_v37  ;;  %v1893_v48 = vadd.f32 %v1826_v38, %v9885_v30  ;;  %v1828_v37 = vpop.f32.mrf.mxu3  ;;  %v6228_v27 = vld [vmem:[%s9633_s4 + $0x30] sm:$0xff] }
 0x37f   : > { %v2306_v20 = vadd.f32 %v7919_v49, %v2236_v0  ;;  %2788 = vmatmul.bf16.gmra.mxu2 %v8288_v11  ;;  %6575 = vrcp.f32 %v2558_v6  ;;  %v1739_v0 = vpop.f32.mrf.mxu2 }
 0x380   : > { %v2369_v5 = vsub.f32 0.0, %v2305_v4 }
 0x381   : > { %v2370_v17 = vsub.f32 0.0, %v2306_v20 }
 0x382   : > { %v6570_v53 = vpop.eup %6569  ;;  %v2485_v50 = vmul.f32 1.442695, %v2369_v5 }
 0x383   : > { %v2487_v45 = vmul.f32 1.442695, %v2370_v17  ;;  %v2559_v9 = vadd.f32 1.0, %v6570_v53  ;;  %v2081_v29 = vpop.f32.mrf.mxu0  ;;  %v6572_v31 = vpop.eup %6571 }
 0x384   : > { %v2170_v46 = vpop.f32.mrf.mxu1  ;;  %6577 = vpow2.f32 %v2485_v50  ;;  %v2237_v62 = vadd.f32 %v2081_v29, %v1890_v23  ;;  %v2560_v41 = vadd.f32 1.0, %v6572_v31  ;;  %v8295_v18 = vpop.eup %6573  ;;  %v6213_v50 = vld [vmem:[%s9632_s3 + $0x24] sm:$0xf0]  ;;  %v9886_v31 = vld [vmem:[#allocation16_spill] sm:$0xff] }
 0x385   : > { %v2238_v10 = vadd.f32 %v2170_v46, %v1891_v25  ;;  %6579 = vrcp.f32 %v2559_v9  ;;  %v8297_v32 = vpop.eup %6575  ;;  %v5519_v25 = vld [vmem:[%s9632_s3 + $0x20] sm:$0xf] }
 0x386   : > { %6581 = vpow2.f32 %v2487_v45  ;;  %v2307_v34 = vadd.f32 %v7917_v15, %v2237_v62  ;;  %v8317_v9 = vor.u32 %v6213_v50, %v5519_v25  ;;  %v1894_v62 = vadd.f32 %v1739_v0, %v9886_v31  ;;  %v9889_v50 = vld [vmem:[#allocation39_spill] sm:$0xff] }
 0x387   : > { %v2308_v58 = vadd.f32 %v7919_v49, %v2238_v10  ;;  %6583 = vrcp.f32 %v2560_v41  ;;  %v9887_v41 = vld [vmem:[#allocation37_spill] sm:$0xff] }
 0x388   : > { %v2371_v14 = vsub.f32 0.0, %v2307_v34  ;;  %v1895_v34 = vadd.f32 %v1828_v37, %v9887_v41 }
 0x389   : > { %v2372_v52 = vsub.f32 0.0, %v2308_v58 }
 0x38a   : > { %v6578_v22 = vpop.eup %6577  ;;  %v2489_v4 = vmul.f32 1.442695, %v2371_v14 }
 0x38b   : > { %v2491_v20 = vmul.f32 1.442695, %v2372_v52  ;;  %v8301_v59 = vpop.eup %6579  ;;  %v2084_v56 = vpop.f32.mrf.mxu0  ;;  %v2561_v19 = vadd.f32 1.0, %v6578_v22 }
 0x38c   : > { %v2173_v6 = vpop.f32.mrf.mxu1  ;;  %v6582_v5 = vpop.eup %6581  ;;  %6585 = vpow2.f32 %v2489_v4  ;;  %v2239_v17 = vadd.f32 %v2084_v56, %v1892_v42  ;;  %v2675_v23 = vpack.c.bf16 %v8301_v59, %v8295_v18  ;;  %v6208_v18 = vld [vmem:[%s9632_s3 + $0x4] sm:$0xf]  ;;  %v5505_v59 = vld [vmem:[%s9632_s3 + $0x8] sm:$0xf0] }
 0x38d   : > { %v2240_v8 = vadd.f32 %v2173_v6, %v1893_v48  ;;  %v8305_v53 = vpop.eup %6583  ;;  %6587 = vpow2.f32 %v2491_v20  ;;  %v2562_v45 = vadd.f32 1.0, %v6582_v5  ;;  %v1742_v20 = vpop.f32.mrf.mxu2  ;;  %v8396_v1 = vor.u32 %v6208_v18, %v5505_v59 }
 0x38e   : > { %v2309_v44 = vadd.f32 %v7917_v15, %v2239_v17  ;;  %v2676_v7 = vpack.c.bf16 %v8305_v53, %v8297_v32  ;;  %6589 = vrcp.f32 %v2561_v19  ;;  %v1831_v56 = vpop.f32.mrf.mxu3  ;;  %v6226_v32 = vld [vmem:[%s9633_s4 + $0x20] sm:$0xff] }
 0x38f   : > { %v2310_v38 = vadd.f32 %v7919_v49, %v2240_v8  ;;  %2793 = vmatmul.bf16.gmra.mxu2 %v8317_v9  ;;  %6591 = vrcp.f32 %v2562_v45  ;;  %v1897_v45 = vadd.f32 %v1831_v56, %v9889_v50 }
 0x390   : > { %v2373_v29 = vsub.f32 0.0, %v2309_v44 }
 0x391   : > { %v2374_v46 = vsub.f32 0.0, %v2310_v38  ;;  %v9888_v38 = vld [vmem:[#allocation38_spill] sm:$0xff] }
 0x392   : > { %v6586_v10 = vpop.eup %6585  ;;  %v2493_v58 = vmul.f32 1.442695, %v2373_v29  ;;  %v1896_v25 = vadd.f32 %v1742_v20, %v9888_v38 }
 0x393   : > { %v2495_v14 = vmul.f32 1.442695, %v2374_v46  ;;  %v2563_v52 = vadd.f32 1.0, %v6586_v10  ;;  %v2086_v22 = vpop.f32.mrf.mxu0  ;;  %v6588_v30 = vpop.eup %6587 }
 0x394   : > { %v2175_v42 = vpop.f32.mrf.mxu1  ;;  %6593 = vpow2.f32 %v2493_v58  ;;  %v2241_v48 = vadd.f32 %v2086_v22, %v1894_v62  ;;  %v2564_v0 = vadd.f32 1.0, %v6588_v30  ;;  %v8324_v5 = vpop.eup %6589 }
 0x395   : > { %v2242_v4 = vadd.f32 %v2175_v42, %v1895_v34  ;;  %6595 = vrcp.f32 %v2563_v52  ;;  %v8326_v19 = vpop.eup %6591  ;;  %v1744_v20 = vpop.f32.mrf.mxu2 }
 0x396   : > { %6597 = vpow2.f32 %v2495_v14  ;;  %v2311_v6 = vadd.f32 %v7917_v15, %v2241_v48  ;;  %v5527_v48 = vld [vmem:[%s9632_s3 + $0x30] sm:$0xf]  ;;  %v1833_v56 = vpop.f32.mrf.mxu3 }
 0x397   : > { %v2312_v37 = vadd.f32 %v7919_v49, %v2242_v4  ;;  %6599 = vrcp.f32 %v2564_v0  ;;  %v6215_v4 = vld [vmem:[%s9632_s3 + $0x34] sm:$0xf0] }
 0x398   : > { %v2375_v17 = vsub.f32 0.0, %v2311_v6  ;;  %v8346_v6 = vor.u32 %v6215_v4, %v5527_v48 }
 0x399   : > { %v2376_v8 = vsub.f32 0.0, %v2312_v37 }
 0x39a   : > { %v6594_v44 = vpop.eup %6593  ;;  %v2497_v29 = vmul.f32 1.442695, %v2375_v17 }
 0x39b   : > { %v2499_v46 = vmul.f32 1.442695, %v2376_v8  ;;  %v8330_v31 = vpop.eup %6595  ;;  %v2089_v62 = vpop.f32.mrf.mxu0  ;;  %v2565_v0 = vadd.f32 1.0, %v6594_v44 }
 0x39c   : > { %v2178_v10 = vpop.f32.mrf.mxu1  ;;  %v6598_v41 = vpop.eup %6597  ;;  %6601 = vpow2.f32 %v2497_v29  ;;  %v2243_v34 = vadd.f32 %v2089_v62, %v1896_v25  ;;  %v2677_v14 = vpack.c.bf16 %v8330_v31, %v8324_v5  ;;  %v9890_v25 = vld [vmem:[#allocation17_spill] sm:$0xff] }
 0x39d   : > { %v2244_v58 = vadd.f32 %v2178_v10, %v1897_v45  ;;  %v8334_v52 = vpop.eup %6599  ;;  %6603 = vpow2.f32 %v2499_v46  ;;  %v2566_v37 = vadd.f32 1.0, %v6598_v41  ;;  %v1898_v50 = vadd.f32 %v1744_v20, %v9890_v25  ;;  %v9891_v45 = vld [vmem:[#allocation40_spill] sm:$0xff] }
 0x39e   : > { %v2313_v22 = vadd.f32 %v7917_v15, %v2243_v34  ;;  %v2678_v30 = vpack.c.bf16 %v8334_v52, %v8326_v19  ;;  %v1899_v29 = vadd.f32 %v1833_v56, %v9891_v45  ;;  %6605 = vrcp.f32 %v2565_v0  ;;  %v6222_v19 = vld [vmem:[%s9633_s4] sm:$0xff] }
 0x39f   : > { %v2314_v42 = vadd.f32 %v7919_v49, %v2244_v58  ;;  %2798 = vmatmul.bf16.gmra.mxu2 %v8346_v6  ;;  %6607 = vrcp.f32 %v2566_v37 }
 0x3a0   : > { %v2377_v17 = vsub.f32 0.0, %v2313_v22 }
 0x3a1   : > { %v2378_v8 = vsub.f32 0.0, %v2314_v42 }
 0x3a2   : > { %v6602_v38 = vpop.eup %6601  ;;  %v2501_v46 = vmul.f32 1.442695, %v2377_v17 }
 0x3a3   : > { %v2567_v62 = vadd.f32 1.0, %v6602_v38  ;;  %v2091_v10 = vpop.f32.mrf.mxu0  ;;  %v6604_v58 = vpop.eup %6603  ;;  %v2503_v22 = vmul.f32 1.442695, %v2378_v8 }
 0x3a4   : > { %v2180_v34 = vpop.f32.mrf.mxu1  ;;  %v2245_v44 = vadd.f32 %v2091_v10, %v1898_v50  ;;  %v2568_v41 = vadd.f32 1.0, %v6604_v58  ;;  %v6606_v17 = vpop.eup %6605 }
 0x3a5   : > { %v2246_v48 = vadd.f32 %v2180_v34, %v1899_v29  ;;  %6609 = vrcp.f32 %v2567_v62  ;;  %v6608_v0 = vpop.eup %6607 }
 0x3a6   : > { %6611 = vpow2.f32 %v2501_v46  ;;  %v2315_v42 = vadd.f32 %v7917_v15, %v2245_v44  ;;  %v5535_v15 = vld [vmem:[%s9632_s3 + $0x40] sm:$0xf] }
 0x3a7   : > { %v2316_v4 = vadd.f32 %v7919_v49, %v2246_v48  ;;  %6613 = vrcp.f32 %v2568_v41  ;;  %v6217_v49 = vld [vmem:[%s9632_s3 + $0x44] sm:$0xf0] }
 0x3a8   : > { %v2379_v20 = vsub.f32 0.0, %v2315_v42  ;;  %6615 = vpow2.f32 %v2503_v22  ;;  %v8359_v62 = vor.u32 %v6217_v49, %v5535_v15 }
 0x3a9   : > { %v2380_v56 = vsub.f32 0.0, %v2316_v4 }
 0x3aa   : > { %v2505_v38 = vmul.f32 1.442695, %v2379_v20 }
 0x3ab   : > { %v2507_v25 = vmul.f32 1.442695, %v2380_v56  ;;  %v6610_v45 = vpop.eup %6609 }
 0x3ac   : > { %v6612_v37 = vpop.eup %6611  ;;  %6617 = vpow2.f32 %v2505_v38  ;;  %v2679_v50 = vpack.c.bf16 %v6610_v45, %v6606_v17  ;;  %v5543_v38 = vld [vmem:[%s9632_s3 + $0x50] sm:$0xf] }
 0x3ad   : > { %v6614_v29 = vpop.eup %6613  ;;  %6619 = vpow2.f32 %v2507_v25  ;;  %v2569_v10 = vadd.f32 1.0, %v6612_v37  ;;  %v6219_v25 = vld [vmem:[%s9632_s3 + $0x54] sm:$0xf0]  ;;  %v5551_v37 = vld [vmem:[%s9632_s3 + $0x60] sm:$0xf] }
 0x3ae   : > { %v2680_v8 = vpack.c.bf16 %v6614_v29, %v6608_v0  ;;  %v6616_v46 = vpop.eup %6615  ;;  %v5544_v45 = vor.u32 %v6219_v25, %v5543_v38  ;;  %v6221_v29 = vld [vmem:[%s9632_s3 + $0x64] sm:$0xf0] }
 0x3af   : > { %2803 = vmatmul.bf16.gmra.mxu2 %v8359_v62  ;;  %v2570_v58 = vadd.f32 1.0, %v6616_v46  ;;  %6621 = vrcp.f32 %v2569_v10 }
 0x3b2   : > { %v6618_v34 = vpop.eup %6617 }
 0x3b3   : > { %v2571_v44 = vadd.f32 1.0, %v6618_v34  ;;  %v6620_v48 = vpop.eup %6619 }
 0x3b4   : > { %v2572_v41 = vadd.f32 1.0, %v6620_v48 }
 0x3b5   : > { %6623 = vrcp.f32 %v2571_v44  ;;  %v6622_v22 = vpop.eup %6621 }
 0x3b6   : > { %6625 = vrcp.f32 %v2570_v58 }
 0x3b7   : > { %6627 = vrcp.f32 %v2572_v41 }
 0x3bb   : > { %v6624_v42 = vpop.eup %6623 }
 0x3bc   : > { %v6626_v4 = vpop.eup %6625  ;;  %v2681_v20 = vpack.c.bf16 %v6624_v42, %v6622_v22 }
 0x3bd   : > { %v6628_v56 = vpop.eup %6627 }
 0x3be   : > { %v2770_v17 = vsel %vm1905_vm4, %v2681_v20, 0  ;;  %v2682_v0 = vpack.c.bf16 %v6628_v56, %v6626_v4 }
 0x3bf   : > { %2819 = vmatpush.bf16.msra.mxu3 %v2770_v17  ;;  %2808 = vmatmul.bf16.gmra.mxu2 %v5544_v45 }
 0x3c0   : > { %v2773_v43 = vsel %vm1905_vm4, %v2682_v0, 0 }
 0x3c3   : > { %2820 = vmatpush.bf16.msra.mxu3 %v2679_v50  ;;  %v5552_v50 = vor.u32 %v6221_v29, %v5551_v37 }
 0x3c7   : > { %2821 = vmatpush.bf16.msra.mxu3 %v2677_v14 }
 0x3cb   : > { %2822 = vmatpush.bf16.msra.mxu3 %v2675_v23  ;;  %v6225_v23 = vld [vmem:[%s9633_s4 + $0x18] sm:$0xff] }
 0x3cf   : > { %2823 = vmatpush.bf16.msra.mxu3 %v2673_v47  ;;  %2813 = vmatmul.bf16.gmra.mxu2 %v5552_v50  ;;  %v5553_v47 = vld [vmem:[%s9632_s3 + $0x68] sm:$0xf0] }
 0x3d3   : > { %2824 = vmatpush.bf16.msra.mxu3 %v2671_v26  ;;  %v5545_v26 = vld [vmem:[%s9632_s3 + $0x58] sm:$0xf0] }
 0x3d4   : > { %v8461_v54 = vor.u32 %v6218_v57, %v5545_v26  ;;  %v6230_v57 = vld [vmem:[%s9633_s4 + $0x40] sm:$0xff] }
 0x3d7   : > { %2825 = vmatpush.bf16.msra.mxu3 %v2669_v61 }
 0x3db   : > { %2826 = vmatpush.bf16.msra.mxu3 %v2667_v60  ;;  %v6212_v60 = vld [vmem:[%s9632_s3 + $0x24] sm:$0xf] }
 0x3dc   : > { %v5524_v61 = vor.u32 %v6212_v60, %v5521_v51 }
 0x3de   : > { %5557 = vmatmul.msk.bf16.vlgmr.msra.gmra.mxu3 %vm2746_vm5, %v8396_v1 }
 0x3df   : > { %2907 = vmatpush.bf16.msrb.mxu3 %v2773_v43  ;;  %2871 = vmatmul.bf16.vlgmr.msrb.gmra.mxu2 %v8253_v28  ;;  %v6229_v28 = vld [vmem:[%s9633_s4 + $0x38] sm:$0xff] }
 0x3e0   : > { %3075 = vmatpush.bf16.msra.mxu2 %v6229_v28 }
 0x3e3   : > { %2908 = vmatpush.bf16.msrb.mxu3 %v2680_v8 }
 0x3e4   : > { %3076 = vmatpush.bf16.msra.mxu2 %v6228_v27 }
 0x3e7   : > { %2909 = vmatpush.bf16.msrb.mxu3 %v2678_v30 }
 0x3eb   : > { %2910 = vmatpush.bf16.msrb.mxu3 %v2676_v7  ;;  %v6224_v7 = vld [vmem:[%s9633_s4 + $0x10] sm:$0xff] }
 0x3ee   : > { %5558 = vmatmul.msk.bf16.gmra.mxu3 %vm2746_vm5, %v5516_v16 }
 0x3ef   : > { %2911 = vmatpush.bf16.msrb.mxu3 %v2674_v24  ;;  %2876 = vmatmul.bf16.gmra.mxu2 %v8288_v11  ;;  %v6227_v24 = vld [vmem:[%s9633_s4 + $0x28] sm:$0xff]  ;;  %v5556_v11 = vor.u32 %v6220_v2, %v5553_v47 }
 0x3f0   : > { %3077 = vmatpush.bf16.msra.mxu2 %v6227_v24 }
 0x3f2   : > { %v2784_v21 = vpop.f32.mrf.mxu2 }
 0x3f3   : > { %2912 = vmatpush.bf16.msrb.mxu3 %v2672_v3 }
 0x3f4   : > { %3078 = vmatpush.bf16.msra.mxu2 %v6226_v32 }
 0x3f7   : > { %2913 = vmatpush.bf16.msrb.mxu3 %v2670_v35  ;;  %v5532_v35 = vor.u32 %v6214_v36, %v5529_v13  ;;  %v6231_v13 = vld [vmem:[%s9633_s4 + $0x48] sm:$0xff] }
 0x3f8   : > { %3079 = vmatpush.bf16.msra.mxu2 %v6225_v23 }
 0x3fa   : > { %v2786_v3 = vpop.f32.mrf.mxu2 }
 0x3fb   : > { %2914 = vmatpush.bf16.msrb.mxu3 %v2668_v12  ;;  %v5540_v12 = vor.u32 %v6216_v55, %v5537_v40 }
 0x3fc   : > { %3080 = vmatpush.bf16.msra.mxu2 %v6224_v7 }
 0x3fe   : > { %5559 = vmatmul.msk.bf16.gmra.mxu3 %vm2746_vm5, %v5524_v61 }
 0x3ff   : > { %2881 = vmatmul.bf16.gmra.mxu2 %v8317_v9  ;;  %v6223_v9 = vld [vmem:[%s9633_s4 + $0x8] sm:$0xff] }
 0x400   : > { %3081 = vmatpush.bf16.msra.mxu2 %v6223_v9 }
 0x402   : > { %v2789_v63 = vpop.f32.mrf.mxu2 }
 0x404   : > { %3082 = vmatpush.bf16.msra.mxu2 %v6222_v19 }
 0x40a   : > { %v2791_v53 = vpop.f32.mrf.mxu2 }
 0x40e   : > { %5560 = vmatmul.msk.bf16.gmra.mxu3 %vm2746_vm5, %v5532_v35 }
 0x40f   : > { %2886 = vmatmul.bf16.gmra.mxu2 %v8346_v6 }
 0x412   : > { %v2794_v5 = vpop.f32.mrf.mxu2 }
 0x41a   : > { %v2796_v31 = vpop.f32.mrf.mxu2 }
 0x41e   : > { %5561 = vmatmul.msk.bf16.gmra.mxu3 %vm2746_vm5, %v5540_v12 }
 0x41f   : > { %2891 = vmatmul.bf16.gmra.mxu2 %v8359_v62 }
 0x422   : > { %v2799_v14 = vpop.f32.mrf.mxu2 }
 0x42a   : > { %v2801_v15 = vpop.f32.mrf.mxu2 }
 0x42e   : > { %5562 = vmatmul.msk.bf16.gmra.mxu3 %vm2746_vm5, %v8461_v54 }
 0x42f   : > { %2896 = vmatmul.bf16.gmra.mxu2 %v5544_v45 }
 0x432   : > { %v2804_v62 = vpop.f32.mrf.mxu2 }
 0x43a   : > { %v2806_v48 = vpop.f32.mrf.mxu2 }
 0x43e   : > { %5563 = vmatmul.msk.bf16.gmra.mxu3 %vm2746_vm5, %v5556_v11 }
 0x43f   : > { %2901 = vmatmul.bf16.gmra.mxu2 %v5552_v50 }
 0x442   : > { %v2809_v22 = vpop.f32.mrf.mxu2 }
 0x44a   : > { %v2811_v0 = vpop.f32.mrf.mxu2 }
 0x44e   : > { %5564 = vmatmul.msk.bf16.vlgmr.msrb.gmra.mxu3 %vm2746_vm5, %v8396_v1 }
 0x452   : > { %v2814_v29 = vpop.f32.mrf.mxu2 }
 0x45a   : > { %v2816_v18 = vpop.f32.mrf.mxu2 }
 0x45e   : > { %5565 = vmatmul.msk.bf16.gmra.mxu3 %vm2746_vm5, %v5516_v16  ;;  %v2985_v16 = vld [vmem:[%s9633_s4 + $0x50] sm:$0xf] }
 0x45f   : > { %v3027_v51 = vunpack.c.l.b16 %v2985_v16 }
 0x461   : > { %v2828_v52 = vpop.f32.mrf.mxu3 }
 0x462   : > { %v2829_v6 = vadd.f32 %v2828_v52, %v2784_v21  ;;  %v2872_v33 = vpop.f32.mrf.mxu2 }
 0x469   : > { %v2830_v30 = vpop.f32.mrf.mxu3 }
 0x46a   : > { %v2831_v8 = vadd.f32 %v2830_v30, %v2786_v3 }
 0x46c   : > { %v2951_v49 = vpack.c.bf16 %v2831_v8, %v2829_v6 }
 0x46e   : > { %5566 = vmatmul.msk.bf16.gmra.mxu3 %vm2746_vm5, %v5524_v61  ;;  %3083 = vmatmul.bf16.vlgmr.msra.gmra.mxu2 %v2951_v49  ;;  %v3038_v61 = vpack.c.b16 %v3027_v51, %v3027_v51 }
 0x470   : > { %v3073_v36 = vsel %vm3071_vm6, %v3038_v61, 0 }
 0x471   : > { %v2833_v46 = vpop.f32.mrf.mxu3  ;;  %3124 = vmatpush.bf16.msra.mxu3 %v3073_v36 }
 0x472   : > { %v2834_v34 = vadd.f32 %v2833_v46, %v2789_v63 }
 0x475   : > { %3125 = vmatpush.bf16.msra.mxu3 %v6231_v13 }
 0x479   : > { %v2835_v10 = vpop.f32.mrf.mxu3  ;;  %3126 = vmatpush.bf16.msra.mxu3 %v6230_v57 }
 0x47a   : > { %v2836_v58 = vadd.f32 %v2835_v10, %v2791_v53 }
 0x47c   : > { %v2953_v44 = vpack.c.bf16 %v2836_v58, %v2834_v34 }
 0x47e   : > { %5567 = vmatmul.msk.bf16.gmra.mxu3 %vm2746_vm5, %v5532_v35  ;;  %3088 = vmatmul.bf16.gmra.mxu2 %v2953_v44 }
 0x481   : > { %v2838_v41 = vpop.f32.mrf.mxu3 }
 0x482   : > { %v2839_v4 = vadd.f32 %v2838_v41, %v2794_v5 }
 0x489   : > { %v2840_v42 = vpop.f32.mrf.mxu3 }
 0x48a   : > { %v2841_v20 = vadd.f32 %v2840_v42, %v2796_v31 }
 0x48c   : > { %v2955_v56 = vpack.c.bf16 %v2841_v20, %v2839_v4 }
 0x48e   : > { %5568 = vmatmul.msk.bf16.gmra.mxu3 %vm2746_vm5, %v5540_v12  ;;  %3093 = vmatmul.bf16.gmra.mxu2 %v2955_v56  ;;  %v2874_v12 = vpop.f32.mrf.mxu2 }
 0x491   : > { %v2843_v17 = vpop.f32.mrf.mxu3 }
 0x492   : > { %v2844_v25 = vadd.f32 %v2843_v17, %v2799_v14 }
 0x499   : > { %v2845_v38 = vpop.f32.mrf.mxu3 }
 0x49a   : > { %v2846_v45 = vadd.f32 %v2845_v38, %v2801_v15 }
 0x49c   : > { %v2957_v37 = vpack.c.bf16 %v2846_v45, %v2844_v25  ;;  %v5717_v45 = vld [vmem:[%s9634_s5 + $0x40] sm:$0xf] }
 0x49e   : > { %5569 = vmatmul.msk.bf16.gmra.mxu3 %vm2746_vm5, %v8461_v54  ;;  %3098 = vmatmul.bf16.gmra.mxu2 %v2957_v37  ;;  %v2877_v54 = vpop.f32.mrf.mxu2 }
 0x4a1   : > { %v2848_v50 = vpop.f32.mrf.mxu3 }
 0x4a2   : > { %v2849_v1 = vadd.f32 %v2848_v50, %v2804_v62 }
 0x4a6   : > { %v2879_v47 = vpop.f32.mrf.mxu2 }
 0x4a9   : > { %v2850_v59 = vpop.f32.mrf.mxu3 }
 0x4aa   : > { %v2851_v43 = vadd.f32 %v2850_v59, %v2806_v48  ;;  %v6240_v59 = vld [vmem:[%s9634_s5 + $0x44] sm:$0xf] }
 0x4ac   : > { %v2959_v39 = vpack.c.bf16 %v2851_v43, %v2849_v1  ;;  %v5719_v1 = vld [vmem:[%s9634_s5 + $0x48] sm:$0xf0] }
 0x4ad   : > { %v5722_v16 = vor.u32 %v6240_v59, %v5719_v1  ;;  %v6247_v59 = vld [vmem:[%s9634_s5 + $0x7c] sm:$0xf0]  ;;  %v6246_v1 = vld [vmem:[%s9634_s5 + $0x7c] sm:$0xf] }
 0x4ae   : > { %5570 = vmatmul.msk.bf16.gmra.mxu3 %vm2746_vm5, %v5556_v11  ;;  %3103 = vmatmul.bf16.gmra.mxu2 %v2959_v39  ;;  %v2882_v53 = vpop.f32.mrf.mxu2 }
 0x4b1   : > { %v2853_v60 = vpop.f32.mrf.mxu3 }
 0x4b2   : > { %v2854_v55 = vadd.f32 %v2853_v60, %v2809_v22 }
 0x4b6   : > { %v2884_v5 = vpop.f32.mrf.mxu2 }
 0x4b9   : > { %v2855_v35 = vpop.f32.mrf.mxu3 }
 0x4ba   : > { %v2856_v40 = vadd.f32 %v2855_v35, %v2811_v0  ;;  %v3194_v0 = vld [vmem:[%s9634_s5 + $0x50] sm:$0x33] }
 0x4bb   : > { %v3465_v38 = vunpack.c.l.b16 %v3194_v0  ;;  %v3466_v25 = vunpack.c.h.b16 %v3194_v0 }
 0x4bc   : > { %v2961_v21 = vpack.c.bf16 %v2856_v40, %v2854_v55 }
 0x4bd   : > { %v3478_v50 = vpack.c.b16 %v3466_v25, %v3466_v25  ;;  %v6249_v25 = vld [vmem:[%s9634_s5 + $0x8c] sm:$0xf0] }
 0x4be   : > { %3108 = vmatmul.bf16.gmra.mxu2 %v2961_v21  ;;  %v2887_v30 = vpop.f32.mrf.mxu2 }
 0x4bf   : > { %v3507_v39 = vsel %vm3339_vm8, %v3478_v50, 0 }
 0x4c0   : > { %3555 = vmatpush.bf16.msrb.mxu3 %v3507_v39 }
 0x4c1   : > { %v2858_v26 = vpop.f32.mrf.mxu3 }
 0x4c2   : > { %v2859_v28 = vadd.f32 %v2858_v26, %v2814_v29  ;;  %v3477_v29 = vpack.c.b16 %v3465_v38, %v3465_v38  ;;  %v5655_v38 = vld [vmem:[%s9634_s5 + $0x88] sm:$0xf] }
 0x4c4   : > { %v3504_v43 = vsel %vm3339_vm8, %v3477_v29, 0  ;;  %3556 = vmatpush.bf16.msrb.mxu3 %v5722_v16  ;;  %v5657_v29 = vld [vmem:[%s9634_s5 + $0x90] sm:$0xf0] }
 0x4c5   : > { %3511 = vmatpush.bf16.msrb.mxu2 %v3504_v43 }
 0x4c6   : > { %v2889_v46 = vpop.f32.mrf.mxu2 }
 0x4c9   : > { %v2860_v3 = vpop.f32.mrf.mxu3 }
 0x4ca   : > { %v2861_v27 = vadd.f32 %v2860_v3, %v2816_v18  ;;  %v6241_v18 = vld [vmem:[%s9634_s5 + $0x44] sm:$0xf0]  ;;  %v6239_v3 = vld [vmem:[%s9634_s5 + $0x34] sm:$0xf0] }
 0x4cc   : > { %v2963_v2 = vpack.c.bf16 %v2861_v27, %v2859_v28  ;;  %v6238_v28 = vld [vmem:[%s9634_s5 + $0x34] sm:$0xf] }
 0x4ce   : > { %3113 = vmatmul.bf16.gmra.mxu2 %v2963_v2  ;;  %v2892_v10 = vpop.f32.mrf.mxu2  ;;  %v5711_v2 = vld [vmem:[%s9634_s5 + $0x38] sm:$0xf0] }
 0x4d1   : > { %v2916_v63 = vpop.f32.mrf.mxu3 }
 0x4d2   : > { %v2917_v11 = vadd.f32 %v2916_v63, %v2872_v33  ;;  %v5718_v33 = vor.u32 %v6241_v18, %v5717_v45  ;;  %v5701_v63 = vld [vmem:[%s9634_s5 + $0x20] sm:$0xf]  ;;  %v6248_v45 = vld [vmem:[%s9634_s5 + $0x8c] sm:$0xf]  ;;  %v5647_v18 = vld [vmem:[%s9634_s5 + $0x78] sm:$0xf] }
 0x4d3   : > { %v5660_v50 = vor.u32 %v6248_v45, %v5657_v29  ;;  %v5648_v39 = vor.u32 %v6247_v59, %v5647_v18 }
 0x4d4   : > { %3512 = vmatpush.bf16.msrb.mxu2 %v5718_v33  ;;  %v5649_v33 = vld [vmem:[%s9634_s5 + $0x80] sm:$0xf0] }
 0x4d5   : > { %v5652_v16 = vor.u32 %v6246_v1, %v5649_v33 }
 0x4d6   : > { %v2894_v22 = vpop.f32.mrf.mxu2 }
 0x4d9   : > { %v2918_v24 = vpop.f32.mrf.mxu3 }
 0x4da   : > { %v2919_v32 = vadd.f32 %v2918_v24, %v2874_v12  ;;  %v6237_v24 = vld [vmem:[%s9634_s5 + $0x24] sm:$0xf0] }
 0x4dc   : > { %v2952_v23 = vpack.c.bf16 %v2919_v32, %v2917_v11  ;;  %v6236_v11 = vld [vmem:[%s9634_s5 + $0x24] sm:$0xf]  ;;  %v5702_v32 = vor.u32 %v6237_v24, %v5701_v63 }
 0x4de   : > { %5611 = vmatmul.msk.bf16.vlgmr.msra.gmra.mxu3 %vm3049_vm7, %v2952_v23  ;;  %v2897_v56 = vpop.f32.mrf.mxu2  ;;  %v5703_v23 = vld [vmem:[%s9634_s5 + $0x28] sm:$0xf0] }
 0x4e1   : > { %v2921_v7 = vpop.f32.mrf.mxu3 }
 0x4e2   : > { %v2922_v19 = vadd.f32 %v2921_v7, %v2877_v54  ;;  %v5709_v54 = vld [vmem:[%s9634_s5 + $0x30] sm:$0xf]  ;;  %v5706_v7 = vor.u32 %v6236_v11, %v5703_v23 }
 0x4e3   : > { %v5710_v27 = vor.u32 %v6239_v3, %v5709_v54 }
 0x4e5   : > { %3513 = vmatpush.bf16.msrb.mxu2 %v5710_v27 }
 0x4e6   : > { %v2899_v60 = vpop.f32.mrf.mxu2 }
 0x4e9   : > { %v2923_v9 = vpop.f32.mrf.mxu3  ;;  %3514 = vmatpush.bf16.msrb.mxu2 %v5702_v32 }
 0x4ea   : > { %v2924_v31 = vadd.f32 %v2923_v9, %v2879_v47  ;;  %v5714_v47 = vor.u32 %v6238_v28, %v5711_v2 }
 0x4ec   : > { %v2954_v14 = vpack.c.bf16 %v2924_v31, %v2922_v19  ;;  %3557 = vmatpush.bf16.msrb.mxu3 %v5714_v47 }
 0x4ee   : > { %5612 = vmatmul.msk.bf16.gmra.mxu3 %vm3049_vm7, %v2954_v14  ;;  %v2902_v35 = vpop.f32.mrf.mxu2 }
 0x4f0   : > { %3558 = vmatpush.bf16.msrb.mxu3 %v5706_v7 }
 0x4f1   : > { %v2926_v52 = vpop.f32.mrf.mxu3 }
 0x4f2   : > { %v2927_v8 = vadd.f32 %v2926_v52, %v2882_v53  ;;  %v5628_v53 = vld [vmem:[%s9634_s5 + $0xa8] sm:$0x33]  ;;  %v5693_v52 = vld [vmem:[%s9634_s5 + $0x10] sm:$0xf] }
 0x4f3   : > { %v3293_v9 = vunpack.c.l.b16 %v5628_v53 }
 0x4f5   : > { %v3305_v31 = vpack.c.b16 %v3293_v9, %v3293_v9 }
 0x4f6   : > { %v2904_v40 = vpop.f32.mrf.mxu2 }
 0x4f9   : > { %v2928_v6 = vpop.f32.mrf.mxu3 }
 0x4fa   : > { %v2929_v15 = vadd.f32 %v2928_v6, %v2884_v5  ;;  %v3294_v5 = vunpack.c.h.b16 %v5628_v53  ;;  %v6234_v6 = vld [vmem:[%s9634_s5 + $0x14] sm:$0xf] }
 0x4fc   : > { %v2956_v49 = vpack.c.bf16 %v2929_v15, %v2927_v8  ;;  %v3306_v14 = vpack.c.b16 %v3294_v5, %v3294_v5  ;;  %v3341_v8 = vsel %vm3339_vm8, %v3305_v31, 0 }
 0x4fd   : > { %3348 = vmatpush.bf16.msrb.mxu0 %v3341_v8 }
 0x4fe   : > { %5613 = vmatmul.msk.bf16.gmra.mxu3 %vm3049_vm7, %v2956_v49  ;;  %v8566_v19 = vpop.f32.mrf.mxu2  ;;  %v3344_v15 = vsel %vm3339_vm8, %v3306_v14, 0 }
 0x4ff   : > { %3392 = vmatpush.bf16.msrb.mxu1 %v3344_v15 }
 0x501   : > { %v2931_v62 = vpop.f32.mrf.mxu3 }
 0x502   : > { %v2932_v58 = vadd.f32 %v2931_v62, %v2887_v30  ;;  %v6235_v30 = vld [vmem:[%s9634_s5 + $0x14] sm:$0xf0] }
 0x503   : > { %v5694_v49 = vor.u32 %v6235_v30, %v5693_v52 }
 0x505   : > { %3515 = vmatpush.bf16.msrb.mxu2 %v5694_v49 }
 0x509   : > { %v2933_v34 = vpop.f32.mrf.mxu3 }
 0x50a   : > { %v2934_v44 = vadd.f32 %v2933_v34, %v2889_v46  ;;  %v5695_v46 = vld [vmem:[%s9634_s5 + $0x18] sm:$0xf0]  ;;  %v6233_v34 = vld [vmem:[%s9634_s5 + $0x4] sm:$0xf0] }
 0x50b   : > { %v5698_v62 = vor.u32 %v6234_v6, %v5695_v46 }
 0x50c   : > { %v2958_v48 = vpack.c.bf16 %v2934_v44, %v2932_v58  ;;  %v6232_v58 = vld [vmem:[%s9634_s5 + $0x4] sm:$0xf] }
 0x50d   : > { %3559 = vmatpush.bf16.msrb.mxu3 %v5698_v62 }
 0x50e   : > { %5614 = vmatmul.msk.bf16.gmra.mxu3 %vm3049_vm7, %v2958_v48  ;;  %v5687_v48 = vld [vmem:[%s9634_s5 + $0x8] sm:$0xf0] }
 0x511   : > { %v2936_v41 = vpop.f32.mrf.mxu3 }
 0x512   : > { %v2937_v4 = vadd.f32 %v2936_v41, %v2892_v10  ;;  %v5685_v10 = vld [vmem:[%s9634_s5] sm:$0xf]  ;;  %v5690_v41 = vor.u32 %v6232_v58, %v5687_v48 }
 0x513   : > { %v5686_v44 = vor.u32 %v6233_v34, %v5685_v10 }
 0x514   : > { %3560 = vmatpush.bf16.msrb.mxu3 %v5690_v41 }
 0x515   : > { %3516 = vmatpush.bf16.msrb.mxu2 %v5686_v44 }
 0x519   : > { %v2938_v42 = vpop.f32.mrf.mxu3 }
 0x51a   : > { %v2939_v20 = vadd.f32 %v2938_v42, %v2894_v22  ;;  %v3086_v22 = vpop.f32.mrf.mxu2  ;;  %v5663_v42 = vld [vmem:[%s9634_s5 + $0x98] sm:$0xf] }
 0x51c   : > { %v2960_v17 = vpack.c.bf16 %v2939_v20, %v2937_v4  ;;  %v6251_v4 = vld [vmem:[%s9634_s5 + $0x9c] sm:$0xf0]  ;;  %v6250_v20 = vld [vmem:[%s9634_s5 + $0x9c] sm:$0xf] }
 0x51e   : > { %5615 = vmatmul.msk.bf16.gmra.mxu3 %vm3049_vm7, %v2960_v17  ;;  %v5665_v17 = vld [vmem:[%s9634_s5 + $0xa0] sm:$0xf0] }
 0x51f   : > { %v5668_v0 = vor.u32 %v6250_v20, %v5665_v17 }
 0x521   : > { %v2941_v37 = vpop.f32.mrf.mxu3  ;;  %3393 = vmatpush.bf16.msrb.mxu1 %v5668_v0 }
 0x522   : > { %v2942_v61 = vadd.f32 %v2941_v37, %v2897_v56  ;;  %v5664_v56 = vor.u32 %v6251_v4, %v5663_v42  ;;  %v5656_v37 = vor.u32 %v6249_v25, %v5655_v38  ;;  %v3089_v43 = vpop.f32.mrf.mxu2 }
 0x524   : > { %3349 = vmatpush.bf16.msrb.mxu0 %v5664_v56 }
 0x525   : > { %3394 = vmatpush.bf16.msrb.mxu1 %v5660_v50 }
 0x528   : > { %3350 = vmatpush.bf16.msrb.mxu0 %v5656_v37 }
 0x529   : > { %v2943_v51 = vpop.f32.mrf.mxu3  ;;  %3395 = vmatpush.bf16.msrb.mxu1 %v5652_v16 }
 0x52a   : > { %v2944_v36 = vadd.f32 %v2943_v51, %v2899_v60  ;;  %v5639_v60 = vld [vmem:[%s9634_s5 + $0x68] sm:$0xf]  ;;  %v6245_v51 = vld [vmem:[%s9634_s5 + $0x6c] sm:$0xf0]  ;;  %v3091_v3 = vpop.f32.mrf.mxu2 }
 0x52c   : > { %v2962_v13 = vpack.c.bf16 %v2944_v36, %v2942_v61  ;;  %3351 = vmatpush.bf16.msrb.mxu0 %v5648_v39  ;;  %v6244_v61 = vld [vmem:[%s9634_s5 + $0x6c] sm:$0xf]  ;;  %v5640_v36 = vor.u32 %v6245_v51, %v5639_v60 }
 0x52e   : > { %5616 = vmatmul.msk.bf16.gmra.mxu3 %vm3049_vm7, %v2962_v13  ;;  %v5641_v13 = vld [vmem:[%s9634_s5 + $0x70] sm:$0xf0] }
 0x530   : > { %3352 = vmatpush.bf16.msrb.mxu0 %v5640_v36 }
 0x531   : > { %v2946_v55 = vpop.f32.mrf.mxu3 }
 0x532   : > { %v2947_v21 = vadd.f32 %v2946_v55, %v2902_v35  ;;  %v5644_v35 = vor.u32 %v6244_v61, %v5641_v13  ;;  %v3094_v11 = vpop.f32.mrf.mxu2 }
 0x534   : > { %3396 = vmatpush.bf16.msrb.mxu1 %v5644_v35 }
 0x539   : > { %v2948_v12 = vpop.f32.mrf.mxu3 }
 0x53a   : > { %v2949_v57 = vadd.f32 %v2948_v12, %v2904_v40  ;;  %v5631_v40 = vld [vmem:[%s9634_s5 + $0x58] sm:$0xf]  ;;  %v6243_v12 = vld [vmem:[%s9634_s5 + $0x5c] sm:$0xf0] }
 0x53c   : > { %v2964_v26 = vpack.c.bf16 %v2949_v57, %v2947_v21  ;;  %v6242_v21 = vld [vmem:[%s9634_s5 + $0x5c] sm:$0xf]  ;;  %v5632_v57 = vor.u32 %v6243_v12, %v5631_v40 }
 0x53e   : > { %5617 = vmatmul.msk.bf16.gmra.mxu3 %vm3049_vm7, %v2964_v26  ;;  %v5633_v26 = vld [vmem:[%s9634_s5 + $0x60] sm:$0xf0]  ;;  %3353 = vmatpush.bf16.msrb.mxu0 %v5632_v57 }
 0x53f   : > { %v5636_v54 = vor.u32 %v6242_v21, %v5633_v26 }
 0x541   : > { %3397 = vmatpush.bf16.msrb.mxu1 %v5636_v54 }
 0x561   : > { %v3128_v55 = vpop.f32.mrf.mxu3 }
 0x562   : > { %v3129_v28 = vadd.f32 %v3128_v55, %v8566_v19  ;;  %v3096_v19 = vpop.f32.mrf.mxu2 }
 0x564   : > { %v3163_v47 = vmul.f32 0.25, %v3129_v28 }
 0x569   : > { %v3130_v27 = vpop.f32.mrf.mxu3 }
 0x56a   : > { %v3131_v2 = vadd.f32 %v3130_v27, %v3086_v22  ;;  %v3099_v4 = vpop.f32.mrf.mxu2 }
 0x56c   : > { %v3164_v63 = vmul.f32 0.25, %v3131_v2 }
 0x56e   : > { %v3177_v24 = vpack.c.bf16 %v3164_v63, %v3163_v47 }
 0x570   : > { %5723 = vmatmul.msk.bf16.vlgmr.msrb.gmra.mxu2 %vm3317_vm9, %v3177_v24  ;;  %5730 = vmatmul.msk.bf16.vlgmr.msrb.gmra.mxu3 %vm3317_vm9, %v3177_v24  ;;  %v3208_v32 = vshrl.u32 %v3177_v24, 16  ;;  %v3210_v23 = vshll.u32 %v3177_v24, 16  ;;  %v3616_v58 = vrot.slane %v3177_v24, 1  ;;  %v4076_v44 = vrot.slane %v3177_v24, 2 }
 0x571   : > { %v3133_v53 = vpop.f32.mrf.mxu3 }
 0x572   : > { %v3839_v7 = vrot.slane %v3208_v32, 1  ;;  %v3840_v9 = vrot.slane %v3210_v23, 2  ;;  %v3134_v31 = vadd.f32 %v3133_v53, %v3089_v43  ;;  %v3212_v15 = vrot.slane %v3210_v23, 1  ;;  %v3101_v18 = vpop.f32.mrf.mxu2 }
 0x574   : > { %v3841_v5 = vor.u32 %v3840_v9, %v3839_v7  ;;  %v3165_v30 = vmul.f32 0.25, %v3134_v31  ;;  %v3213_v48 = vor.u32 %v3212_v15, %v3208_v32 }
 0x579   : > { %v3135_v14 = vpop.f32.mrf.mxu3 }
 0x57a   : > { %v3136_v52 = vadd.f32 %v3135_v14, %v3091_v3  ;;  %v3104_v21 = vpop.f32.mrf.mxu2 }
 0x57c   : > { %v3166_v6 = vmul.f32 0.25, %v3136_v52  ;;  %v5812_v52 = vld [vmem:[%s9634_s5 + $0x158] sm:$0x33] }
 0x57e   : > { %v3178_v8 = vpack.c.bf16 %v3166_v6, %v3165_v30  ;;  %v3897_v6 = vunpack.c.l.b16 %v5812_v52 }
 0x580   : > { %5724 = vmatmul.msk.bf16.gmra.mxu2 %vm3317_vm9, %v3178_v8  ;;  %5731 = vmatmul.msk.bf16.gmra.mxu3 %vm3317_vm9, %v3178_v8  ;;  %v3215_v49 = vshll.u32 %v3178_v8, 16  ;;  %v3219_v46 = vshrl.u32 %v3178_v8, 16  ;;  %v3617_v62 = vrot.slane %v3178_v8, 1  ;;  %v4077_v10 = vrot.slane %v3178_v8, 2 }
 0x581   : > { %v3138_v34 = vpop.f32.mrf.mxu3  ;;  %v3898_v8 = vunpack.c.h.b16 %v5812_v52  ;;  %v5747_v52 = vld [vmem:[%s9634_s5 + $0x100] sm:$0x33] }
 0x582   : > { %v3217_v41 = vrot.slane %v3215_v49, 1  ;;  %v3842_v22 = vrot.slane %v3219_v46, 1  ;;  %v3843_v42 = vrot.slane %v3215_v49, 2  ;;  %v8660_v20 = vsel %vm1179_vm3, %v3616_v58, %v3617_v62  ;;  %v3106_v32 = vpop.f32.mrf.mxu2 }
 0x583   : > { %v8663_v56 = vsel %vm1905_vm4, %v4076_v44, %v4077_v10  ;;  %v3139_v25 = vadd.f32 %v3138_v34, %v3094_v11 }
 0x584   : > { %v3218_v17 = vsel %vm553_vm1, %v3213_v48, %v3217_v41  ;;  %v3844_v0 = vor.u32 %v3843_v42, %v3842_v22  ;;  %v3221_v60 = vor.u32 %v3219_v46, %v3217_v41  ;;  %v3909_v46 = vpack.c.b16 %v3897_v6, %v3897_v6  ;;  %v5847_v22 = vld [vmem:[%s9634_s5 + $0x148] sm:$0xf]  ;;  %v6271_v42 = vld [vmem:[%s9634_s5 + $0x14c] sm:$0xf0] }
 0x585   : > { %5669 = vmatmul.msk.bf16.vlgmr.msrb.gmra.mxu0 %vm3317_vm9, %v3218_v17  ;;  %5676 = vmatmul.msk.bf16.vlgmr.msrb.gmra.mxu1 %vm3317_vm9, %v3218_v17  ;;  %v3167_v29 = vmul.f32 0.25, %v3139_v25  ;;  %v5849_v25 = vld [vmem:[%s9634_s5 + $0x150] sm:$0xf0] }
 0x586   : > { %v8669_v38 = vsel %vm1526_vm2, %v3841_v5, %v3844_v0  ;;  %v3943_v58 = vsel %vm3339_vm8, %v3909_v46, 0  ;;  %v3661_v46 = vunpack.c.h.b16 %v5747_v52 }
 0x587   : > { %3950 = vmatpush.bf16.msra.mxu2 %v3943_v58 }
 0x589   : > { %v3140_v45 = vpop.f32.mrf.mxu3 }
 0x58a   : > { %v3141_v37 = vadd.f32 %v3140_v45, %v3096_v19  ;;  %v3109_v34 = vpop.f32.mrf.mxu2 }
 0x58c   : > { %v3168_v50 = vmul.f32 0.25, %v3141_v37 }
 0x58e   : > { %v3179_v59 = vpack.c.bf16 %v3168_v50, %v3167_v29  ;;  %v5839_v50 = vld [vmem:[%s9634_s5 + $0x138] sm:$0xf] }
 0x590   : > { %5725 = vmatmul.msk.bf16.gmra.mxu2 %vm3317_vm9, %v3179_v59  ;;  %5732 = vmatmul.msk.bf16.gmra.mxu3 %vm3317_vm9, %v3179_v59  ;;  %v3223_v1 = vshll.u32 %v3179_v59, 16  ;;  %v3227_v43 = vshrl.u32 %v3179_v59, 16  ;;  %v3619_v39 = vrot.slane %v3179_v59, 1  ;;  %v4079_v33 = vrot.slane %v3179_v59, 2 }
 0x591   : > { %v3143_v16 = vpop.f32.mrf.mxu3 }
 0x592   : > { %v3225_v51 = vrot.slane %v3223_v1, 1  ;;  %v3846_v61 = vrot.slane %v3227_v43, 1  ;;  %v3847_v36 = vrot.slane %v3223_v1, 2  ;;  %v8674_v13 = vsel %vm1179_vm3, %v3617_v62, %v3619_v39 }
 0x593   : > { %v8677_v35 = vsel %vm1905_vm4, %v4077_v10, %v4079_v33  ;;  %v3144_v57 = vadd.f32 %v3143_v16, %v3099_v4  ;;  %v3910_v62 = vpack.c.b16 %v3898_v8, %v3898_v8  ;;  %v6270_v4 = vld [vmem:[%s9634_s5 + $0x14c] sm:$0xf] }
 0x594   : > { %v3226_v55 = vsel %vm553_vm1, %v3221_v60, %v3225_v51  ;;  %v3848_v40 = vor.u32 %v3847_v36, %v3846_v61  ;;  %v3229_v23 = vor.u32 %v3227_v43, %v3225_v51  ;;  %v5852_v45 = vor.u32 %v6270_v4, %v5849_v25  ;;  %v6268_v43 = vld [vmem:[%s9634_s5 + $0x13c] sm:$0xf] }
 0x595   : > { %5670 = vmatmul.msk.bf16.gmra.mxu0 %vm3317_vm9, %v3226_v55  ;;  %5677 = vmatmul.msk.bf16.gmra.mxu1 %vm3317_vm9, %v3226_v55  ;;  %v3169_v3 = vmul.f32 0.25, %v3144_v57  ;;  %v3946_v44 = vsel %vm3339_vm8, %v3910_v62, 0  ;;  %v6262_v62 = vld [vmem:[%s9634_s5 + $0x10c] sm:$0xf] }
 0x596   : > { %v8683_v12 = vsel %vm1526_vm2, %v3844_v0, %v3848_v40  ;;  %3994 = vmatpush.bf16.msra.mxu3 %v3946_v44  ;;  %v5848_v0 = vor.u32 %v6271_v42, %v5847_v22 }
 0x598   : > { %3951 = vmatpush.bf16.msra.mxu2 %v5848_v0 }
 0x599   : > { %v3145_v26 = vpop.f32.mrf.mxu3 }
 0x59a   : > { %v3146_v54 = vadd.f32 %v3145_v26, %v3101_v18  ;;  %v6269_v18 = vld [vmem:[%s9634_s5 + $0x13c] sm:$0xf0]  ;;  %3995 = vmatpush.bf16.msra.mxu3 %v5852_v45  ;;  %v3111_v26 = vpop.f32.mrf.mxu2 }
 0x59b   : > { %v5840_v51 = vor.u32 %v6269_v18, %v5839_v50  ;;  %v5782_v50 = vld [vmem:[%s9634_s5 + $0xf0] sm:$0xf]  ;;  %v6261_v18 = vld [vmem:[%s9634_s5 + $0xf4] sm:$0xf0] }
 0x59c   : > { %v3170_v28 = vmul.f32 0.25, %v3146_v54  ;;  %v5831_v54 = vld [vmem:[%s9634_s5 + $0x128] sm:$0xf] }
 0x59d   : > { %3952 = vmatpush.bf16.msra.mxu2 %v5840_v51 }
 0x59e   : > { %v8685_v27 = vpack.c.bf16 %v3170_v28, %v3169_v3  ;;  %v6267_v3 = vld [vmem:[%s9634_s5 + $0x12c] sm:$0xf0]  ;;  %v6266_v28 = vld [vmem:[%s9634_s5 + $0x12c] sm:$0xf] }
 0x5a0   : > { %5726 = vmatmul.msk.bf16.gmra.mxu2 %vm3317_vm9, %v8685_v27  ;;  %5733 = vmatmul.msk.bf16.gmra.mxu3 %vm3317_vm9, %v8685_v27  ;;  %v3231_v2 = vshll.u32 %v8685_v27, 16  ;;  %v3235_v47 = vshrl.u32 %v8685_v27, 16  ;;  %v3621_v63 = vrot.slane %v8685_v27, 1  ;;  %v4081_v24 = vrot.slane %v8685_v27, 2 }
 0x5a1   : > { %v3148_v11 = vpop.f32.mrf.mxu3 }
 0x5a2   : > { %v3233_v53 = vrot.slane %v3231_v2, 1  ;;  %v3850_v7 = vrot.slane %v3235_v47, 1  ;;  %v3851_v9 = vrot.slane %v3231_v2, 2  ;;  %v8696_v5 = vsel %vm1179_vm3, %v3619_v39, %v3621_v63  ;;  %v5841_v39 = vld [vmem:[%s9634_s5 + $0x140] sm:$0xf0]  ;;  %v3114_v25 = vpop.f32.mrf.mxu2 }
 0x5a3   : > { %v8699_v31 = vsel %vm1905_vm4, %v4079_v33, %v4081_v24  ;;  %v3149_v15 = vadd.f32 %v3148_v11, %v3104_v21  ;;  %v5844_v61 = vor.u32 %v6268_v43, %v5841_v39  ;;  %v5832_v2 = vor.u32 %v6267_v3, %v5831_v54  ;;  %v6260_v43 = vld [vmem:[%s9634_s5 + $0xf4] sm:$0xf]  ;;  %v5784_v39 = vld [vmem:[%s9634_s5 + $0xf8] sm:$0xf0] }
 0x5a4   : > { %v3234_v14 = vsel %vm553_vm1, %v3229_v23, %v3233_v53  ;;  %v8702_v19 = vor.u32 %v3851_v9, %v3850_v7  ;;  %v3237_v1 = vor.u32 %v3235_v47, %v3233_v53  ;;  %v5833_v47 = vld [vmem:[%s9634_s5 + $0x130] sm:$0xf0]  ;;  %v5825_v23 = vld [vmem:[%s9634_s5 + $0x120] sm:$0xf0] }
 0x5a5   : > { %5671 = vmatmul.msk.bf16.gmra.mxu0 %vm3317_vm9, %v3234_v14  ;;  %5678 = vmatmul.msk.bf16.gmra.mxu1 %vm3317_vm9, %v3234_v14  ;;  %v3171_v48 = vmul.f32 0.25, %v3149_v15  ;;  %v5836_v11 = vor.u32 %v6266_v28, %v5833_v47  ;;  %v5815_v15 = vld [vmem:[%s9634_s5 + $0x108] sm:$0xf]  ;;  %v5774_v28 = vld [vmem:[%s9634_s5 + $0xe0] sm:$0xf] }
 0x5a6   : > { %v8711_v30 = vsel %vm1526_vm2, %v3848_v40, %v8702_v19  ;;  %3996 = vmatpush.bf16.msra.mxu3 %v5844_v61  ;;  %3953 = vmatpush.bf16.msra.mxu2 %v5832_v2  ;;  %v5776_v47 = vld [vmem:[%s9634_s5 + $0xe8] sm:$0xf0] }
 0x5a9   : > { %v3150_v49 = vpop.f32.mrf.mxu3 }
 0x5aa   : > { %v3151_v10 = vadd.f32 %v3150_v49, %v3106_v32  ;;  %v6264_v32 = vld [vmem:[%s9634_s5 + $0x11c] sm:$0xf]  ;;  %3997 = vmatpush.bf16.msra.mxu3 %v5836_v11  ;;  %v3660_v49 = vunpack.c.l.b16 %v5747_v52  ;;  %v3116_v52 = vpop.f32.mrf.mxu2 }
 0x5ab   : > { %v5828_v8 = vor.u32 %v6264_v32, %v5825_v23  ;;  %v6256_v32 = vld [vmem:[%s9634_s5 + $0xd4] sm:$0xf]  ;;  %v5768_v23 = vld [vmem:[%s9634_s5 + $0xd8] sm:$0xf0] }
 0x5ac   : > { %v3172_v41 = vmul.f32 0.25, %v3151_v10  ;;  %v5817_v10 = vld [vmem:[%s9634_s5 + $0x110] sm:$0xf0]  ;;  %v3672_v44 = vpack.c.b16 %v3660_v49, %v3660_v49  ;;  %v6255_v49 = vld [vmem:[%s9634_s5 + $0xc4] sm:$0xf0] }
 0x5ad   : > { %v5820_v42 = vor.u32 %v6262_v62, %v5817_v10 }
 0x5ae   : > { %v8724_v17 = vpack.c.bf16 %v3172_v41, %v3171_v48  ;;  %v3673_v48 = vpack.c.b16 %v3661_v46, %v3661_v46  ;;  %3998 = vmatpush.bf16.msra.mxu3 %v5828_v8  ;;  %v3706_v4 = vsel %vm3339_vm8, %v3672_v44, 0  ;;  %v5771_v8 = vor.u32 %v6256_v32, %v5768_v23  ;;  %v5760_v46 = vld [vmem:[%s9634_s5 + $0xc8] sm:$0xf0] }
 0x5af   : > { %3713 = vmatpush.bf16.msra.mxu0 %v3706_v4  ;;  %v6253_v4 = vld [vmem:[%s9634_s5 + $0xb4] sm:$0xf0] }
 0x5b0   : > { %5727 = vmatmul.msk.bf16.gmra.mxu2 %vm3317_vm9, %v8724_v17  ;;  %5734 = vmatmul.msk.bf16.gmra.mxu3 %vm3317_vm9, %v8724_v17  ;;  %v3239_v37 = vshll.u32 %v8724_v17, 16  ;;  %v3243_v29 = vshrl.u32 %v8724_v17, 16  ;;  %v3623_v33 = vrot.slane %v8724_v17, 1  ;;  %v4083_v16 = vrot.slane %v8724_v17, 2  ;;  %v6258_v17 = vld [vmem:[%s9634_s5 + $0xe4] sm:$0xf] }
 0x5b1   : > { %v3153_v59 = vpop.f32.mrf.mxu3  ;;  %v3709_v0 = vsel %vm3339_vm8, %v3673_v48, 0  ;;  %v5779_v11 = vor.u32 %v6258_v17, %v5776_v47 }
 0x5b2   : > { %v8749_v60 = vrot.slane %v3239_v37, 1  ;;  %v3854_v36 = vrot.slane %v3243_v29, 1  ;;  %v3855_v55 = vrot.slane %v3239_v37, 2  ;;  %v8756_v40 = vsel %vm1179_vm3, %v3621_v63, %v3623_v33  ;;  %v5823_v63 = vld [vmem:[%s9634_s5 + $0x118] sm:$0xf]  ;;  %3757 = vmatpush.bf16.msra.mxu1 %v3709_v0  ;;  %3999 = vmatpush.bf16.msra.mxu3 %v5820_v42 }
 0x5b3   : > { %v8761_v21 = vsel %vm1905_vm4, %v4081_v24, %v4083_v16  ;;  %v6265_v24 = vld [vmem:[%s9634_s5 + $0x11c] sm:$0xf0]  ;;  %v3154_v7 = vadd.f32 %v3153_v59, %v3109_v34  ;;  %v5750_v42 = vld [vmem:[%s9634_s5 + $0xb0] sm:$0xf] }
 0x5b4   : > { %v3242_v57 = vsel %vm553_vm1, %v3237_v1, %v8749_v60  ;;  %v8776_v27 = vor.u32 %v3855_v55, %v3854_v36  ;;  %v5824_v14 = vor.u32 %v6265_v24, %v5823_v63  ;;  %v5783_v1 = vor.u32 %v6261_v18, %v5782_v50  ;;  %v5766_v63 = vld [vmem:[%s9634_s5 + $0xd0] sm:$0xf]  ;;  %v6257_v24 = vld [vmem:[%s9634_s5 + $0xd4] sm:$0xf0]  ;;  %v5752_v50 = vld [vmem:[%s9634_s5 + $0xb8] sm:$0xf0] }
 0x5b5   : > { %5672 = vmatmul.msk.bf16.gmra.mxu0 %vm3317_vm9, %v3242_v57  ;;  %5679 = vmatmul.msk.bf16.gmra.mxu1 %vm3317_vm9, %v3242_v57  ;;  %v3173_v34 = vmul.f32 0.25, %v3154_v7  ;;  %v3245_v36 = vor.u32 %v3243_v29, %v8749_v60  ;;  %v5787_v57 = vor.u32 %v6260_v43, %v5784_v39 }
 0x5b6   : > { %v8796_v53 = vsel %vm1526_vm2, %v8702_v19, %v8776_v27  ;;  %v6263_v19 = vld [vmem:[%s9634_s5 + $0x10c] sm:$0xf0]  ;;  %3954 = vmatpush.bf16.msra.mxu2 %v5824_v14  ;;  %3714 = vmatpush.bf16.msra.mxu0 %v5783_v1  ;;  %v5767_v14 = vor.u32 %v6257_v24, %v5766_v63 }
 0x5b7   : > { %v5816_v41 = vor.u32 %v6263_v19, %v5815_v15  ;;  %3758 = vmatpush.bf16.msra.mxu1 %v5787_v57  ;;  %v5758_v15 = vld [vmem:[%s9634_s5 + $0xc0] sm:$0xf] }
 0x5b9   : > { %v3155_v9 = vpop.f32.mrf.mxu3 }
 0x5ba   : > { %v3156_v6 = vadd.f32 %v3155_v9, %v3111_v26  ;;  %3955 = vmatpush.bf16.msra.mxu2 %v5816_v41 }
 0x5bb   : > { %3759 = vmatpush.bf16.msra.mxu1 %v5779_v11 }
 0x5bc   : > { %v3174_v58 = vmul.f32 0.25, %v3156_v6 }
 0x5be   : > { %v8813_v22 = vpack.c.bf16 %v3174_v58, %v3173_v34  ;;  %v5759_v34 = vor.u32 %v6255_v49, %v5758_v15 }
 0x5bf   : > { %3760 = vmatpush.bf16.msra.mxu1 %v5771_v8 }
 0x5c0   : > { %5728 = vmatmul.msk.bf16.gmra.mxu2 %vm3317_vm9, %v8813_v22  ;;  %5735 = vmatmul.msk.bf16.gmra.mxu3 %vm3317_vm9, %v8813_v22  ;;  %v3247_v45 = vshll.u32 %v8813_v22, 16  ;;  %v3251_v37 = vshrl.u32 %v8813_v22, 16  ;;  %v3625_v51 = vrot.slane %v8813_v22, 1  ;;  %v4085_v61 = vrot.slane %v8813_v22, 2 }
 0x5c1   : > { %v3158_v59 = vpop.f32.mrf.mxu3 }
 0x5c2   : > { %v3249_v55 = vrot.slane %v3247_v45, 1  ;;  %v3858_v26 = vrot.slane %v3251_v37, 1  ;;  %v3859_v54 = vrot.slane %v3247_v45, 2  ;;  %v8845_v3 = vsel %vm1179_vm3, %v3623_v33, %v3625_v51  ;;  %v6259_v33 = vld [vmem:[%s9634_s5 + $0xe4] sm:$0xf0] }
 0x5c3   : > { %v8852_v29 = vsel %vm1905_vm4, %v4083_v16, %v4085_v61  ;;  %v5775_v2 = vor.u32 %v6259_v33, %v5774_v28  ;;  %v3159_v9 = vadd.f32 %v3158_v59, %v3114_v25  ;;  %v5751_v25 = vor.u32 %v6253_v4, %v5750_v42  ;;  %v6252_v45 = vld [vmem:[%s9634_s5 + $0xb4] sm:$0xf] }
 0x5c4   : > { %v3250_v60 = vsel %vm553_vm1, %v3245_v36, %v3249_v55  ;;  %v3860_v16 = vor.u32 %v3859_v54, %v3858_v26  ;;  %v3253_v0 = vor.u32 %v3251_v37, %v3249_v55  ;;  %v5755_v43 = vor.u32 %v6252_v45, %v5752_v50 }
 0x5c5   : > { %5673 = vmatmul.msk.bf16.gmra.mxu0 %vm3317_vm9, %v3250_v60  ;;  %5680 = vmatmul.msk.bf16.gmra.mxu1 %vm3317_vm9, %v3250_v60  ;;  %v3175_v62 = vmul.f32 0.25, %v3159_v9 }
 0x5c6   : > { %v8883_v7 = vsel %vm1526_vm2, %v8776_v27, %v3860_v16  ;;  %3715 = vmatpush.bf16.msra.mxu0 %v5775_v2  ;;  %v6254_v27 = vld [vmem:[%s9634_s5 + $0xc4] sm:$0xf] }
 0x5c7   : > { %v5763_v58 = vor.u32 %v6254_v27, %v5760_v46 }
 0x5c9   : > { %v3160_v6 = vpop.f32.mrf.mxu3  ;;  %3761 = vmatpush.bf16.msra.mxu1 %v5763_v58 }
 0x5ca   : > { %v3161_v19 = vadd.f32 %v3160_v6, %v3116_v52  ;;  %3716 = vmatpush.bf16.msra.mxu0 %v5767_v14 }
 0x5cc   : > { %v3176_v10 = vmul.f32 0.25, %v3161_v19 }
 0x5cd   : > { %3762 = vmatpush.bf16.msra.mxu1 %v5755_v43  ;;  %v5912_v43 = vld [vmem:[%s9634_s5 + $0x1a0] sm:$0xf] }
 0x5ce   : > { %v3183_v44 = vpack.c.bf16 %v3176_v10, %v3175_v62  ;;  %3717 = vmatpush.bf16.msra.mxu0 %v5759_v34 }
 0x5d0   : > { %5729 = vmatmul.msk.bf16.gmra.mxu2 %vm3317_vm9, %v3183_v44  ;;  %5736 = vmatmul.msk.bf16.gmra.mxu3 %vm3317_vm9, %v3183_v44  ;;  %v3255_v48 = vshll.u32 %v3183_v44, 16  ;;  %v3259_v41 = vshrl.u32 %v3183_v44, 16  ;;  %v8911_v18 = vrot.slane %v3183_v44, 1  ;;  %v8913_v59 = vrot.slane %v3183_v44, 2 }
 0x5d2   : > { %v3257_v1 = vrot.slane %v3255_v48, 1  ;;  %v3862_v39 = vrot.slane %v3259_v41, 1  ;;  %v3863_v36 = vrot.slane %v3255_v48, 2  ;;  %v8919_v37 = vsel %vm1179_vm3, %v3625_v51, %v8911_v18  ;;  %3718 = vmatpush.bf16.msra.mxu0 %v5751_v25 }
 0x5d3   : > { %v8925_v55 = vsel %vm1905_vm4, %v4085_v61, %v8913_v59 }
 0x5d4   : > { %v3258_v57 = vsel %vm553_vm1, %v3253_v0, %v3257_v1  ;;  %v8928_v26 = vor.u32 %v3863_v36, %v3862_v39  ;;  %v3261_v22 = vor.u32 %v3259_v41, %v3257_v1  ;;  %v5877_v41 = vld [vmem:[%s9634_s5 + $0x1b0] sm:$0x33]  ;;  %v6281_v39 = vld [vmem:[%s9634_s5 + $0x1a4] sm:$0xf0]  ;;  %v6280_v36 = vld [vmem:[%s9634_s5 + $0x1a4] sm:$0xf] }
 0x5d5   : > { %5674 = vmatmul.msk.bf16.gmra.mxu0 %vm3317_vm9, %v3258_v57  ;;  %5681 = vmatmul.msk.bf16.gmra.mxu1 %vm3317_vm9, %v3258_v57  ;;  %v4120_v42 = vunpack.c.l.b16 %v5877_v41  ;;  %v4121_v4 = vunpack.c.h.b16 %v5877_v41  ;;  %v5890_v41 = vld [vmem:[%s9634_s5 + $0x178] sm:$0xf0] }
 0x5d6   : > { %v8934_v51 = vsel %vm1526_vm2, %v3860_v16, %v8928_v26 }
 0x5d7   : > { %v4132_v0 = vpack.c.b16 %v4120_v42, %v4120_v42  ;;  %v4133_v25 = vpack.c.b16 %v4121_v4, %v4121_v4 }
 0x5d9   : > { %v4169_v45 = vsel %vm3339_vm8, %v4133_v25, 0 }
 0x5da   : > { %4217 = vmatpush.bf16.msrb.mxu1 %v4169_v45  ;;  %v6273_v45 = vld [vmem:[%s9634_s5 + $0x164] sm:$0xf0] }
 0x5e0   : > { %5853 = vmatmul.msk.bf16.vlgmr.msra.gmra.mxu2 %vm3317_vm9, %v8669_v38  ;;  %5860 = vmatmul.msk.bf16.vlgmr.msra.gmra.mxu3 %vm3317_vm9, %v8669_v38 }
 0x5e5   : > { %5675 = vmatmul.msk.bf16.gmra.mxu0 %vm3317_vm9, %v3261_v22  ;;  %5682 = vmatmul.msk.bf16.gmra.mxu1 %vm3317_vm9, %v3261_v22 }
 0x5f0   : > { %5854 = vmatmul.msk.bf16.gmra.mxu2 %vm3317_vm9, %v8683_v12  ;;  %5861 = vmatmul.msk.bf16.gmra.mxu3 %vm3317_vm9, %v8683_v12 }
 0x5f3   : > { %v3518_v61 = vpop.f32.mrf.mxu2  ;;  %v3562_v54 = vpop.f32.mrf.mxu3 }
 0x5f5   : > { %5788 = vmatmul.msk.bf16.vlgmr.msra.gmra.mxu0 %vm3317_vm9, %v8660_v20  ;;  %5795 = vmatmul.msk.bf16.vlgmr.msra.gmra.mxu1 %vm3317_vm9, %v8660_v20 }
 0x5fb   : > { %v3520_v38 = vpop.f32.mrf.mxu2  ;;  %v3564_v60 = vpop.f32.mrf.mxu3 }
 0x600   : > { %5855 = vmatmul.msk.bf16.gmra.mxu2 %vm3317_vm9, %v8711_v30  ;;  %5862 = vmatmul.msk.bf16.gmra.mxu3 %vm3317_vm9, %v8711_v30 }
 0x602   : > { %v3355_v28 = vpop.f32.mrf.mxu0  ;;  %v3399_v33 = vpop.f32.mrf.mxu1 }
 0x603   : > { %v8954_v17 = vadd.f32 %v3518_v61, %v3355_v28  ;;  %v8956_v12 = vadd.f32 %v3562_v54, %v3399_v33  ;;  %v3523_v16 = vpop.f32.mrf.mxu2  ;;  %v3567_v2 = vpop.f32.mrf.mxu3  ;;  %v5913_v54 = vor.u32 %v6281_v39, %v5912_v43  ;;  %v5904_v28 = vld [vmem:[%s9634_s5 + $0x190] sm:$0xf]  ;;  %v6279_v33 = vld [vmem:[%s9634_s5 + $0x194] sm:$0xf0] }
 0x605   : > { %5789 = vmatmul.msk.bf16.gmra.mxu0 %vm3317_vm9, %v8674_v13  ;;  %5796 = vmatmul.msk.bf16.gmra.mxu1 %vm3317_vm9, %v8674_v13 }
 0x60a   : > { %v3357_v20 = vpop.f32.mrf.mxu0  ;;  %v3401_v47 = vpop.f32.mrf.mxu1 }
 0x60b   : > { %v8962_v63 = vadd.f32 %v3520_v38, %v3357_v20  ;;  %v8964_v24 = vadd.f32 %v3564_v60, %v3401_v47  ;;  %v3525_v30 = vpop.f32.mrf.mxu2  ;;  %v3569_v11 = vpop.f32.mrf.mxu3  ;;  %v5914_v38 = vld [vmem:[%s9634_s5 + $0x1a8] sm:$0xf0]  ;;  %v5906_v20 = vld [vmem:[%s9634_s5 + $0x198] sm:$0xf0] }
 0x60c   : > { %v5917_v60 = vor.u32 %v6280_v36, %v5914_v38 }
 0x60e   : > { %4218 = vmatpush.bf16.msrb.mxu1 %v5917_v60 }
 0x610   : > { %5856 = vmatmul.msk.bf16.gmra.mxu2 %vm3317_vm9, %v8796_v53  ;;  %5863 = vmatmul.msk.bf16.gmra.mxu3 %vm3317_vm9, %v8796_v53 }
 0x612   : > { %v3360_v32 = vpop.f32.mrf.mxu0  ;;  %v3404_v23 = vpop.f32.mrf.mxu1 }
 0x613   : > { %v8970_v9 = vadd.f32 %v3523_v16, %v3360_v32  ;;  %v8972_v14 = vadd.f32 %v3567_v2, %v3404_v23  ;;  %v3528_v13 = vpop.f32.mrf.mxu2  ;;  %v3572_v52 = vpop.f32.mrf.mxu3  ;;  %v6278_v16 = vld [vmem:[%s9634_s5 + $0x194] sm:$0xf]  ;;  %v5905_v2 = vor.u32 %v6279_v33, %v5904_v28  ;;  %v6277_v32 = vld [vmem:[%s9634_s5 + $0x184] sm:$0xf0]  ;;  %v6276_v23 = vld [vmem:[%s9634_s5 + $0x184] sm:$0xf] }
 0x615   : > { %5790 = vmatmul.msk.bf16.gmra.mxu0 %vm3317_vm9, %v8696_v5  ;;  %5797 = vmatmul.msk.bf16.gmra.mxu1 %vm3317_vm9, %v8696_v5 }
 0x61a   : > { %v3362_v6 = vpop.f32.mrf.mxu0  ;;  %v3406_v8 = vpop.f32.mrf.mxu1 }
 0x61b   : > { %v8978_v15 = vadd.f32 %v3525_v30, %v3362_v6  ;;  %v8980_v19 = vadd.f32 %v3569_v11, %v3406_v8  ;;  %v8982_v53 = vpop.f32.mrf.mxu2  ;;  %v8984_v49 = vpop.f32.mrf.mxu3  ;;  %v5896_v11 = vld [vmem:[%s9634_s5 + $0x180] sm:$0xf]  ;;  %v5898_v8 = vld [vmem:[%s9634_s5 + $0x188] sm:$0xf0] }
 0x61c   : > { %v5897_v6 = vor.u32 %v6277_v32, %v5896_v11 }
 0x620   : > { %5857 = vmatmul.msk.bf16.gmra.mxu2 %vm3317_vm9, %v8883_v7  ;;  %5864 = vmatmul.msk.bf16.gmra.mxu3 %vm3317_vm9, %v8883_v7 }
 0x622   : > { %v3365_v27 = vpop.f32.mrf.mxu0  ;;  %v3409_v46 = vpop.f32.mrf.mxu1 }
 0x623   : > { %v8990_v62 = vadd.f32 %v3528_v13, %v3365_v27  ;;  %v8992_v5 = vadd.f32 %v3572_v52, %v3409_v46  ;;  %v3533_v10 = vpop.f32.mrf.mxu2  ;;  %v3577_v34 = vpop.f32.mrf.mxu3  ;;  %v5888_v27 = vld [vmem:[%s9634_s5 + $0x170] sm:$0xf]  ;;  %v6275_v46 = vld [vmem:[%s9634_s5 + $0x174] sm:$0xf0] }
 0x624   : > { %v5889_v42 = vor.u32 %v6275_v46, %v5888_v27 }
 0x625   : > { %5791 = vmatmul.msk.bf16.gmra.mxu0 %vm3317_vm9, %v8756_v40  ;;  %5798 = vmatmul.msk.bf16.gmra.mxu1 %vm3317_vm9, %v8756_v40  ;;  %v4166_v40 = vsel %vm3339_vm8, %v4132_v0, 0 }
 0x626   : > { %4173 = vmatpush.bf16.msrb.mxu0 %v4166_v40  ;;  %v5880_v40 = vld [vmem:[%s9634_s5 + $0x160] sm:$0xf] }
 0x627   : > { %v5881_v36 = vor.u32 %v6273_v45, %v5880_v40 }
 0x62a   : > { %v8998_v58 = vpop.f32.mrf.mxu0  ;;  %v9000_v44 = vpop.f32.mrf.mxu1  ;;  %4174 = vmatpush.bf16.msrb.mxu0 %v5913_v54  ;;  %v5882_v54 = vld [vmem:[%s9634_s5 + $0x168] sm:$0xf0] }
 0x62b   : > { %v9002_v48 = vpop.f32.mrf.mxu2  ;;  %v9004_v7 = vpop.f32.mrf.mxu3 }
 0x62e   : > { %4175 = vmatpush.bf16.msrb.mxu0 %v5905_v2 }
 0x630   : > { %5858 = vmatmul.msk.bf16.gmra.mxu2 %vm3317_vm9, %v8934_v51  ;;  %5865 = vmatmul.msk.bf16.gmra.mxu3 %vm3317_vm9, %v8934_v51 }
 0x632   : > { %v3370_v50 = vpop.f32.mrf.mxu0  ;;  %v3414_v1 = vpop.f32.mrf.mxu1  ;;  %4176 = vmatpush.bf16.msrb.mxu0 %v5897_v6 }
 0x633   : > { %v9024_v57 = vadd.f32 %v3533_v10, %v3370_v50  ;;  %v9026_v51 = vadd.f32 %v3577_v34, %v3414_v1  ;;  %v3538_v22 = vpop.f32.mrf.mxu2  ;;  %v3582_v61 = vpop.f32.mrf.mxu3  ;;  %v5901_v10 = vor.u32 %v6276_v23, %v5898_v8  ;;  %v6274_v34 = vld [vmem:[%s9634_s5 + $0x174] sm:$0xf]  ;;  %v6272_v50 = vld [vmem:[%s9634_s5 + $0x164] sm:$0xf] }
 0x634   : > { %v5893_v4 = vor.u32 %v6274_v34, %v5890_v41  ;;  %v5885_v38 = vor.u32 %v6272_v50, %v5882_v54 }
 0x635   : > { %5792 = vmatmul.msk.bf16.gmra.mxu0 %vm3317_vm9, %v8845_v3  ;;  %5799 = vmatmul.msk.bf16.gmra.mxu1 %vm3317_vm9, %v8845_v3  ;;  %v5909_v3 = vor.u32 %v6278_v16, %v5906_v20 }
 0x636   : > { %4177 = vmatpush.bf16.msrb.mxu0 %v5889_v42 }
 0x637   : > { %4219 = vmatpush.bf16.msrb.mxu1 %v5909_v3 }
 0x63a   : > { %v9047_v47 = vpop.f32.mrf.mxu0  ;;  %v9049_v30 = vpop.f32.mrf.mxu1  ;;  %4178 = vmatpush.bf16.msrb.mxu0 %v5881_v36 }
 0x63b   : > { %v9060_v13 = vpop.f32.mrf.mxu2  ;;  %v9062_v52 = vpop.f32.mrf.mxu3  ;;  %4220 = vmatpush.bf16.msrb.mxu1 %v5901_v10 }
 0x63f   : > { %4221 = vmatpush.bf16.msrb.mxu1 %v5893_v4 }
 0x640   : > { %5859 = vmatmul.msk.bf16.gmra.mxu2 %vm3317_vm9, %v8928_v26  ;;  %5866 = vmatmul.msk.bf16.gmra.mxu3 %vm3317_vm9, %v8928_v26 }
 0x642   : > { %v3375_v0 = vpop.f32.mrf.mxu0  ;;  %v3419_v25 = vpop.f32.mrf.mxu1 }
 0x643   : > { %v9092_v1 = vadd.f32 %v3538_v22, %v3375_v0  ;;  %v9094_v43 = vadd.f32 %v3582_v61, %v3419_v25  ;;  %v3543_v26 = vpop.f32.mrf.mxu2  ;;  %v3587_v39 = vpop.f32.mrf.mxu3  ;;  %4222 = vmatpush.bf16.msrb.mxu1 %v5885_v38 }
 0x645   : > { %5793 = vmatmul.msk.bf16.gmra.mxu0 %vm3317_vm9, %v8919_v37  ;;  %5800 = vmatmul.msk.bf16.gmra.mxu1 %vm3317_vm9, %v8919_v37 }
 0x64a   : > { %v9103_v22 = vpop.f32.mrf.mxu0  ;;  %v9105_v61 = vpop.f32.mrf.mxu1 }
 0x64b   : > { %v9107_v60 = vpop.f32.mrf.mxu2  ;;  %v9109_v28 = vpop.f32.mrf.mxu3 }
 0x652   : > { %v3380_v33 = vpop.f32.mrf.mxu0  ;;  %v3424_v16 = vpop.f32.mrf.mxu1 }
 0x653   : > { %v9111_v2 = vadd.f32 %v3543_v26, %v3380_v33  ;;  %v9113_v20 = vadd.f32 %v3587_v39, %v3424_v16  ;;  %v3548_v3 = vpop.f32.mrf.mxu2  ;;  %v3592_v11 = vpop.f32.mrf.mxu3 }
 0x655   : > { %5794 = vmatmul.msk.bf16.gmra.mxu0 %vm3317_vm9, %v8911_v18  ;;  %5801 = vmatmul.msk.bf16.gmra.mxu1 %vm3317_vm9, %v8911_v18 }
 0x65a   : > { %v9119_v37 = vpop.f32.mrf.mxu0  ;;  %v9121_v32 = vpop.f32.mrf.mxu1 }
 0x65b   : > { %v9123_v23 = vpop.f32.mrf.mxu2  ;;  %v9125_v6 = vpop.f32.mrf.mxu3 }
 0x662   : > { %v3385_v8 = vpop.f32.mrf.mxu0  ;;  %v3429_v27 = vpop.f32.mrf.mxu1 }
 0x663   : > { %v9127_v46 = vadd.f32 %v3548_v3, %v3385_v8  ;;  %v9129_v10 = vadd.f32 %v3592_v11, %v3429_v27  ;;  %v3957_v18 = vpop.f32.mrf.mxu2  ;;  %v4001_v34 = vpop.f32.mrf.mxu3 }
 0x665   : > { %5918 = vmatmul.msk.bf16.vlgmr.msrb.gmra.mxu0 %vm3317_vm9, %v8663_v56  ;;  %5925 = vmatmul.msk.bf16.vlgmr.msrb.gmra.mxu1 %vm3317_vm9, %v8663_v56 }
 0x66a   : > { %v9135_v41 = vpop.f32.mrf.mxu0  ;;  %v9137_v42 = vpop.f32.mrf.mxu1 }
 0x66b   : > { %v3959_v4 = vpop.f32.mrf.mxu2  ;;  %v9139_v0 = vpop.f32.mrf.mxu3 }
 0x672   : > { %v3720_v25 = vpop.f32.mrf.mxu0  ;;  %v3764_v40 = vpop.f32.mrf.mxu1 }
 0x673   : > { %v3799_v45 = vadd.f32 %v3720_v25, %v8954_v17  ;;  %v3800_v50 = vadd.f32 %v3764_v40, %v8956_v12  ;;  %v3962_v54 = vpop.f32.mrf.mxu2  ;;  %v4006_v38 = vpop.f32.mrf.mxu3 }
 0x675   : > { %5919 = vmatmul.msk.bf16.gmra.mxu0 %vm3317_vm9, %v8677_v35  ;;  %5926 = vmatmul.msk.bf16.gmra.mxu1 %vm3317_vm9, %v8677_v35  ;;  %v9147_v56 = vadd.f32 %v3957_v18, %v3799_v45  ;;  %v9149_v26 = vadd.f32 %v4001_v34, %v3800_v50 }
 0x67a   : > { %v3722_v39 = vpop.f32.mrf.mxu0  ;;  %v3766_v36 = vpop.f32.mrf.mxu1 }
 0x67b   : > { %v3801_v33 = vadd.f32 %v3722_v39, %v8962_v63  ;;  %v9153_v17 = vadd.f32 %v3766_v36, %v8964_v24  ;;  %v3964_v8 = vpop.f32.mrf.mxu2  ;;  %v4008_v27 = vpop.f32.mrf.mxu3 }
 0x67d   : > { %v9155_v12 = vadd.f32 %v3959_v4, %v3801_v33 }
 0x682   : > { %v3725_v16 = vpop.f32.mrf.mxu0  ;;  %v3769_v3 = vpop.f32.mrf.mxu1 }
 0x683   : > { %v3803_v11 = vadd.f32 %v3725_v16, %v8970_v9  ;;  %v3804_v35 = vadd.f32 %v3769_v3, %v8972_v14  ;;  %v3967_v40 = vpop.f32.mrf.mxu2  ;;  %v4011_v45 = vpop.f32.mrf.mxu3 }
 0x685   : > { %5920 = vmatmul.msk.bf16.gmra.mxu0 %vm3317_vm9, %v8699_v31  ;;  %5927 = vmatmul.msk.bf16.gmra.mxu1 %vm3317_vm9, %v8699_v31  ;;  %v9163_v63 = vadd.f32 %v3962_v54, %v3803_v11  ;;  %v9165_v24 = vadd.f32 %v4006_v38, %v3804_v35  ;;  %v3531_v54 = vadd.f32 %v8982_v53, %v8998_v58 }
 0x686   : > { %v3575_v38 = vadd.f32 %v8984_v49, %v9000_v44 }
 0x68a   : > { %v3727_v18 = vpop.f32.mrf.mxu0  ;;  %v3771_v34 = vpop.f32.mrf.mxu1 }
 0x68b   : > { %v3805_v4 = vadd.f32 %v3727_v18, %v8978_v15  ;;  %v3806_v9 = vadd.f32 %v3771_v34, %v8980_v19  ;;  %v3969_v33 = vpop.f32.mrf.mxu2 }
 0x68d   : > { %v9169_v25 = vadd.f32 %v3964_v8, %v3805_v4  ;;  %v9171_v14 = vadd.f32 %v4008_v27, %v3806_v9 }
 0x692   : > { %v3730_v50 = vpop.f32.mrf.mxu0  ;;  %v3774_v39 = vpop.f32.mrf.mxu1 }
 0x693   : > { %v3807_v31 = vadd.f32 %v3730_v50, %v8990_v62  ;;  %v3808_v36 = vadd.f32 %v3774_v39, %v8992_v5  ;;  %v4013_v62 = vpop.f32.mrf.mxu3  ;;  %v3972_v53 = vpop.f32.mrf.mxu2 }
 0x695   : > { %5921 = vmatmul.msk.bf16.gmra.mxu0 %vm3317_vm9, %v8761_v21  ;;  %5928 = vmatmul.msk.bf16.gmra.mxu1 %vm3317_vm9, %v8761_v21  ;;  %v9179_v15 = vadd.f32 %v3967_v40, %v3807_v31  ;;  %v9181_v19 = vadd.f32 %v4011_v45, %v3808_v36 }
 0x69a   : > { %v3732_v16 = vpop.f32.mrf.mxu0  ;;  %v3776_v5 = vpop.f32.mrf.mxu1 }
 0x69b   : > { %v3809_v3 = vadd.f32 %v3732_v16, %v3531_v54  ;;  %v3810_v11 = vadd.f32 %v3776_v5, %v3575_v38  ;;  %v4016_v58 = vpop.f32.mrf.mxu3 }
 0x69d   : > { %v9187_v35 = vadd.f32 %v3969_v33, %v3809_v3  ;;  %v9189_v8 = vadd.f32 %v4013_v62, %v3810_v11  ;;  %v3595_v62 = vadd.f32 %v9125_v6, %v9137_v42 }
 0x6a2   : > { %v3735_v21 = vpop.f32.mrf.mxu0  ;;  %v3779_v27 = vpop.f32.mrf.mxu1 }
 0x6a3   : > { %v3811_v18 = vadd.f32 %v3735_v21, %v9024_v57  ;;  %v3812_v34 = vadd.f32 %v3779_v27, %v9026_v51 }
 0x6a5   : > { %5922 = vmatmul.msk.bf16.gmra.mxu0 %vm3317_vm9, %v8852_v29  ;;  %5929 = vmatmul.msk.bf16.gmra.mxu1 %vm3317_vm9, %v8852_v29  ;;  %v9197_v49 = vadd.f32 %v3972_v53, %v3811_v18  ;;  %v9199_v44 = vadd.f32 %v4016_v58, %v3812_v34  ;;  %v4039_v58 = vadd.f32 %v9139_v0, %v9153_v17 }
 0x6aa   : > { %v9201_v4 = vpop.f32.mrf.mxu0  ;;  %v9203_v9 = vpop.f32.mrf.mxu1 }
 0x6b2   : > { %v3740_v40 = vpop.f32.mrf.mxu0  ;;  %v3784_v57 = vpop.f32.mrf.mxu1 }
 0x6b3   : > { %v9206_v51 = vadd.f32 %v3740_v40, %v9092_v1  ;;  %v9209_v45 = vadd.f32 %v3784_v57, %v9094_v43 }
 0x6b5   : > { %5923 = vmatmul.msk.bf16.gmra.mxu0 %vm3317_vm9, %v8925_v55  ;;  %5930 = vmatmul.msk.bf16.gmra.mxu1 %vm3317_vm9, %v8925_v55 }
 0x6ba   : > { %v9215_v29 = vpop.f32.mrf.mxu0  ;;  %v9217_v50 = vpop.f32.mrf.mxu1 }
 0x6c2   : > { %v3745_v39 = vpop.f32.mrf.mxu0  ;;  %v3789_v31 = vpop.f32.mrf.mxu1 }
 0x6c3   : > { %v9220_v36 = vadd.f32 %v3745_v39, %v9111_v2  ;;  %v9223_v1 = vadd.f32 %v3789_v31, %v9113_v20  ;;  %v3551_v20 = vadd.f32 %v9123_v23, %v9135_v41 }
 0x6c5   : > { %5924 = vmatmul.msk.bf16.gmra.mxu0 %vm3317_vm9, %v8913_v59  ;;  %5931 = vmatmul.msk.bf16.gmra.mxu1 %vm3317_vm9, %v8913_v59 }
 0x6ca   : > { %v9229_v43 = vpop.f32.mrf.mxu0  ;;  %v9231_v55 = vpop.f32.mrf.mxu1 }
 0x6d2   : > { %v3750_v54 = vpop.f32.mrf.mxu0  ;;  %v3794_v38 = vpop.f32.mrf.mxu1 }
 0x6d3   : > { %v9234_v33 = vadd.f32 %v3750_v54, %v9127_v46  ;;  %v9237_v2 = vadd.f32 %v3794_v38, %v9129_v10  ;;  %v4287_v46 = vld [vmem:[%s9635_s6] sm:$0x3] }
 0x6d4   : > { %v9250_v11 = vperm.slane %v4287_v46, 0  ;;  %v9252_v10 = vperm.slane %v4287_v46, 1 }
 0x6da   : > { %v3752_v16 = vpop.f32.mrf.mxu0  ;;  %v3796_v59 = vpop.f32.mrf.mxu1 }
 0x6db   : > { %v9243_v5 = vadd.f32 %v3752_v16, %v3551_v20  ;;  %v9245_v3 = vadd.f32 %v3796_v59, %v3595_v62 }
 0x6e2   : > { %v4180_v21 = vpop.f32.mrf.mxu0  ;;  %v4224_v27 = vpop.f32.mrf.mxu1 }
 0x6e3   : > { %v4259_v23 = vadd.f32 %v4180_v21, %v9147_v56  ;;  %v4260_v6 = vadd.f32 %v4224_v27, %v9149_v26 }
 0x6e5   : > { %v4293_v41 = vadd.f32 %v9250_v11, %v4259_v23  ;;  %v4294_v42 = vadd.f32 %v9252_v10, %v4260_v6 }
 0x6e7   : > { %v4321_v18 = vsub.f32 0.0, %v4293_v41  ;;  %v4322_v53 = vsub.f32 0.0, %v4294_v42 }
 0x6e9   : > { %v4349_v34 = vmul.f32 1.442695, %v4321_v18  ;;  %v4351_v54 = vmul.f32 1.442695, %v4322_v53 }
 0x6ea   : > { %v4182_v40 = vpop.f32.mrf.mxu0  ;;  %v4226_v57 = vpop.f32.mrf.mxu1 }
 0x6eb   : > { %v4261_v39 = vadd.f32 %v4182_v40, %v9155_v12  ;;  %v4262_v31 = vadd.f32 %v4226_v57, %v4039_v58  ;;  %6629 = vpow2.f32 %v4349_v34 }
 0x6ec   : > { %6631 = vpow2.f32 %v4351_v54 }
 0x6ed   : > { %v4295_v56 = vadd.f32 %v9250_v11, %v4261_v39  ;;  %v4296_v26 = vadd.f32 %v9252_v10, %v4262_v31 }
 0x6ef   : > { %v4323_v38 = vsub.f32 0.0, %v4295_v56  ;;  %v4324_v20 = vsub.f32 0.0, %v4296_v26 }
 0x6f1   : > { %v4353_v62 = vmul.f32 1.442695, %v4323_v38  ;;  %v4355_v16 = vmul.f32 1.442695, %v4324_v20  ;;  %v6630_v21 = vpop.eup %6629 }
 0x6f2   : > { %v4185_v59 = vpop.f32.mrf.mxu0  ;;  %v4229_v46 = vpop.f32.mrf.mxu1  ;;  %v4405_v23 = vadd.f32 1.0, %v6630_v21 }
 0x6f3   : > { %6633 = vpow2.f32 %v4353_v62  ;;  %v4263_v0 = vadd.f32 %v4185_v59, %v9163_v63  ;;  %v4264_v17 = vadd.f32 %v4229_v46, %v9165_v24  ;;  %v6632_v6 = vpop.eup %6631 }
 0x6f4   : > { %6635 = vpow2.f32 %v4355_v16  ;;  %v4406_v58 = vadd.f32 1.0, %v6632_v6 }
 0x6f5   : > { %v4297_v12 = vadd.f32 %v9250_v11, %v4263_v0  ;;  %v4298_v27 = vadd.f32 %v9252_v10, %v4264_v17  ;;  %6637 = vrcp.f32 %v4405_v23 }
 0x6f7   : > { %v4325_v41 = vsub.f32 0.0, %v4297_v12  ;;  %v4326_v42 = vsub.f32 0.0, %v4298_v27 }
 0x6f9   : > { %v6634_v18 = vpop.eup %6633  ;;  %v4357_v34 = vmul.f32 1.442695, %v4325_v41  ;;  %v4359_v53 = vmul.f32 1.442695, %v4326_v42 }
 0x6fa   : > { %v4407_v40 = vadd.f32 1.0, %v6634_v18  ;;  %v4187_v57 = vpop.f32.mrf.mxu0  ;;  %v4231_v39 = vpop.f32.mrf.mxu1 }
 0x6fb   : > { %6639 = vpow2.f32 %v4357_v34  ;;  %v4265_v63 = vadd.f32 %v4187_v57, %v9169_v25  ;;  %v4266_v24 = vadd.f32 %v4231_v39, %v9171_v14  ;;  %v6636_v31 = vpop.eup %6635 }
 0x6fc   : > { %6641 = vrcp.f32 %v4407_v40  ;;  %v4408_v54 = vadd.f32 1.0, %v6636_v31  ;;  %v9271_v62 = vpop.eup %6637 }
 0x6fd   : > { %6643 = vpow2.f32 %v4359_v53  ;;  %v4299_v56 = vadd.f32 %v9250_v11, %v4265_v63  ;;  %v4300_v26 = vadd.f32 %v9252_v10, %v4266_v24 }
 0x6fe   : > { %6645 = vrcp.f32 %v4406_v58 }
 0x6ff   : > { %6647 = vrcp.f32 %v4408_v54  ;;  %v4327_v38 = vsub.f32 0.0, %v4299_v56  ;;  %v4328_v20 = vsub.f32 0.0, %v4300_v26  ;;  %v3974_v54 = vpop.f32.mrf.mxu2  ;;  %v4018_v56 = vpop.f32.mrf.mxu3 }
 0x701   : > { %v6640_v16 = vpop.eup %6639  ;;  %v4361_v59 = vmul.f32 1.442695, %v4327_v38  ;;  %v4363_v46 = vmul.f32 1.442695, %v4328_v20 }
 0x702   : > { %v9273_v25 = vpop.eup %6641  ;;  %v4190_v14 = vpop.f32.mrf.mxu0  ;;  %v4409_v41 = vadd.f32 1.0, %v6640_v16 }
 0x703   : > { %v4234_v21 = vpop.f32.mrf.mxu1  ;;  %v6644_v0 = vpop.eup %6643  ;;  %6649 = vpow2.f32 %v4361_v59  ;;  %v4267_v17 = vadd.f32 %v4190_v14, %v9179_v15  ;;  %v4466_v27 = vpack.c.bf16 %v9273_v25, %v9271_v62  ;;  %v6290_v62 = vld [vmem:[%s9637_s8 + $0x30] sm:$0xff]  ;;  %v6289_v25 = vld [vmem:[%s9637_s8 + $0x28] sm:$0xff] }
 0x704   : > { %v4268_v12 = vadd.f32 %v4234_v21, %v9181_v19  ;;  %v9279_v23 = vpop.eup %6645  ;;  %6651 = vpow2.f32 %v4363_v46  ;;  %v4410_v34 = vadd.f32 1.0, %v6644_v0 }
 0x705   : > { %v9281_v6 = vpop.eup %6647  ;;  %v4301_v42 = vadd.f32 %v9250_v11, %v4267_v17  ;;  %6653 = vrcp.f32 %v4409_v41 }
 0x706   : > { %v4302_v18 = vadd.f32 %v9252_v10, %v4268_v12  ;;  %v4467_v53 = vpack.c.bf16 %v9281_v6, %v9279_v23  ;;  %6655 = vrcp.f32 %v4410_v34  ;;  %v6288_v23 = vld [vmem:[%s9637_s8 + $0x20] sm:$0xff]  ;;  %v6287_v6 = vld [vmem:[%s9637_s8 + $0x18] sm:$0xff] }
 0x707   : > { %v4329_v15 = vsub.f32 0.0, %v4301_v42  ;;  %v3580_v42 = vadd.f32 %v9004_v7, %v9049_v30  ;;  %v4021_v7 = vpop.f32.mrf.mxu3 }
 0x708   : > { %v4330_v58 = vsub.f32 0.0, %v4302_v18 }
 0x709   : > { %v6650_v19 = vpop.eup %6649  ;;  %v4365_v40 = vmul.f32 1.442695, %v4329_v15 }
 0x70a   : > { %v4367_v57 = vmul.f32 1.442695, %v4330_v58  ;;  %v4411_v39 = vadd.f32 1.0, %v6650_v19  ;;  %v4192_v63 = vpop.f32.mrf.mxu0  ;;  %v6652_v31 = vpop.eup %6651 }
 0x70b   : > { %v4236_v24 = vpop.f32.mrf.mxu1  ;;  %6657 = vpow2.f32 %v4365_v40  ;;  %v4269_v26 = vadd.f32 %v4192_v63, %v9187_v35  ;;  %v4412_v20 = vadd.f32 1.0, %v6652_v31  ;;  %v9291_v46 = vpop.eup %6653 }
 0x70c   : > { %v4270_v38 = vadd.f32 %v4236_v24, %v9189_v8  ;;  %6659 = vrcp.f32 %v4411_v39  ;;  %v9293_v0 = vpop.eup %6655  ;;  %v3536_v8 = vadd.f32 %v9002_v48, %v9047_v47  ;;  %v3814_v48 = vadd.f32 %v9203_v9, %v3580_v42  ;;  %v3977_v63 = vpop.f32.mrf.mxu2 }
 0x70d   : > { %6661 = vpow2.f32 %v4367_v57  ;;  %v4303_v16 = vadd.f32 %v9250_v11, %v4269_v26 }
 0x70e   : > { %v4304_v59 = vadd.f32 %v9252_v10, %v4270_v38  ;;  %6663 = vrcp.f32 %v4412_v20  ;;  %v3813_v39 = vadd.f32 %v9201_v4, %v3536_v8  ;;  %v4051_v9 = vadd.f32 %v4018_v56, %v3814_v48 }
 0x70f   : > { %v4331_v14 = vsub.f32 0.0, %v4303_v16  ;;  %v4023_v56 = vpop.f32.mrf.mxu3 }
 0x710   : > { %v4332_v21 = vsub.f32 0.0, %v4304_v59  ;;  %v4050_v38 = vadd.f32 %v3974_v54, %v3813_v39 }
 0x711   : > { %v6658_v17 = vpop.eup %6657  ;;  %v4369_v12 = vmul.f32 1.442695, %v4331_v14 }
 0x712   : > { %v4371_v41 = vmul.f32 1.442695, %v4332_v21  ;;  %v9295_v35 = vpop.eup %6659  ;;  %v4195_v18 = vpop.f32.mrf.mxu0  ;;  %v4413_v47 = vadd.f32 1.0, %v6658_v17 }
 0x713   : > { %v4239_v34 = vpop.f32.mrf.mxu1  ;;  %v6662_v15 = vpop.eup %6661  ;;  %6665 = vpow2.f32 %v4369_v12  ;;  %v4271_v58 = vadd.f32 %v4195_v18, %v9197_v49  ;;  %v4468_v40 = vpack.c.bf16 %v9295_v35, %v9291_v46  ;;  %v6291_v46 = vld [vmem:[%s9637_s8 + $0x38] sm:$0xff] }
 0x714   : > { %v4272_v19 = vadd.f32 %v4239_v34, %v9199_v44  ;;  %v9305_v57 = vpop.eup %6663  ;;  %6667 = vpow2.f32 %v4371_v41  ;;  %v4414_v44 = vadd.f32 1.0, %v6662_v15  ;;  %v3979_v34 = vpop.f32.mrf.mxu2  ;;  %4650 = vmatpush.bf16.msra.mxu0 %v6291_v46 }
 0x715   : > { %v4305_v30 = vadd.f32 %v9250_v11, %v4271_v58  ;;  %v4469_v49 = vpack.c.bf16 %v9305_v57, %v9293_v0  ;;  %6669 = vrcp.f32 %v4413_v47  ;;  %v6293_v0 = vld [vmem:[%s9637_s8 + $0x48] sm:$0xff]  ;;  %v6286_v57 = vld [vmem:[%s9637_s8 + $0x10] sm:$0xff] }
 0x716   : > { %v4306_v24 = vadd.f32 %v9252_v10, %v4272_v19  ;;  %6671 = vrcp.f32 %v4414_v44  ;;  %4679 = vmatpush.bf16.msra.mxu1 %v6293_v0  ;;  %v6311_v0 = vld [vmem:[%s9638_s9 + $0x88] sm:$0xff] }
 0x717   : > { %v4333_v31 = vsub.f32 0.0, %v4305_v30  ;;  %v4052_v30 = vadd.f32 %v3977_v63, %v9206_v51 }
 0x718   : > { %v4334_v26 = vsub.f32 0.0, %v4306_v24  ;;  %v4053_v24 = vadd.f32 %v4021_v7, %v9209_v45  ;;  %4651 = vmatpush.bf16.msra.mxu0 %v6290_v62 }
 0x719   : > { %v6666_v20 = vpop.eup %6665  ;;  %v4373_v4 = vmul.f32 1.442695, %v4333_v31  ;;  %v3541_v31 = vadd.f32 %v9060_v13, %v9103_v22 }
 0x71a   : > { %v4375_v16 = vmul.f32 1.442695, %v4334_v26  ;;  %v4415_v59 = vadd.f32 1.0, %v6666_v20  ;;  %v4197_v14 = vpop.f32.mrf.mxu0  ;;  %v6668_v17 = vpop.eup %6667  ;;  %v3585_v26 = vadd.f32 %v9062_v52, %v9105_v61 }
 0x71b   : > { %v4241_v21 = vpop.f32.mrf.mxu1  ;;  %6673 = vpow2.f32 %v4373_v4  ;;  %v4273_v12 = vadd.f32 %v4197_v14, %v4050_v38  ;;  %v4416_v8 = vadd.f32 1.0, %v6668_v17  ;;  %v9315_v18 = vpop.eup %6669  ;;  %v3817_v45 = vadd.f32 %v9215_v29, %v3541_v31 }
 0x71c   : > { %v4274_v41 = vadd.f32 %v4241_v21, %v4051_v9  ;;  %6675 = vrcp.f32 %v4415_v59  ;;  %v9317_v19 = vpop.eup %6671  ;;  %v3818_v63 = vadd.f32 %v9217_v50, %v3585_v26  ;;  %4652 = vmatpush.bf16.msra.mxu0 %v6289_v25 }
 0x71d   : > { %6677 = vpow2.f32 %v4375_v16  ;;  %v4307_v42 = vadd.f32 %v9250_v11, %v4273_v12  ;;  %v4054_v17 = vadd.f32 %v3979_v34, %v3817_v45 }
 0x71e   : > { %v4308_v54 = vadd.f32 %v9252_v10, %v4274_v41  ;;  %6679 = vrcp.f32 %v4416_v8  ;;  %v3982_v41 = vpop.f32.mrf.mxu2  ;;  %v4026_v8 = vpop.f32.mrf.mxu3  ;;  %v4055_v50 = vadd.f32 %v4023_v56, %v3818_v63 }
 0x71f   : > { %v4335_v15 = vsub.f32 0.0, %v4307_v42  ;;  %v4057_v45 = vadd.f32 %v4026_v8, %v9223_v1 }
 0x720   : > { %v4336_v58 = vsub.f32 0.0, %v4308_v54  ;;  %4653 = vmatpush.bf16.msra.mxu0 %v6288_v23 }
 0x721   : > { %v6674_v39 = vpop.eup %6673  ;;  %v4377_v48 = vmul.f32 1.442695, %v4335_v15 }
 0x722   : > { %v4379_v47 = vmul.f32 1.442695, %v4336_v58  ;;  %v9321_v44 = vpop.eup %6675  ;;  %v4200_v38 = vpop.f32.mrf.mxu0  ;;  %v4417_v7 = vadd.f32 1.0, %v6674_v39 }
 0x723   : > { %v4244_v20 = vpop.f32.mrf.mxu1  ;;  %v6678_v4 = vpop.eup %6677  ;;  %6681 = vpow2.f32 %v4377_v48  ;;  %v4275_v16 = vadd.f32 %v4200_v38, %v4052_v30  ;;  %v4470_v59 = vpack.c.bf16 %v9321_v44, %v9315_v18  ;;  %v6285_v18 = vld [vmem:[%s9637_s8 + $0x8] sm:$0xff] }
 0x724   : > { %v4276_v9 = vadd.f32 %v4244_v20, %v4053_v24  ;;  %v9329_v51 = vpop.eup %6679  ;;  %6683 = vpow2.f32 %v4379_v47  ;;  %v4418_v61 = vadd.f32 1.0, %v6678_v4  ;;  %4654 = vmatpush.bf16.msra.mxu0 %v6287_v6  ;;  %v6310_v6 = vld [vmem:[%s9638_s9 + $0x80] sm:$0xff] }
 0x725   : > { %v4309_v13 = vadd.f32 %v9250_v11, %v4275_v16  ;;  %v4471_v22 = vpack.c.bf16 %v9329_v51, %v9317_v19  ;;  %6685 = vrcp.f32 %v4417_v7  ;;  %v3546_v7 = vadd.f32 %v9107_v60, %v9119_v37  ;;  %v6284_v19 = vld [vmem:[%s9637_s8] sm:$0xff] }
 0x726   : > { %v4310_v52 = vadd.f32 %v9252_v10, %v4276_v9  ;;  %6687 = vrcp.f32 %v4418_v61  ;;  %v4056_v9 = vadd.f32 %v3982_v41, %v9220_v36  ;;  %v3984_v1 = vpop.f32.mrf.mxu2  ;;  %v4028_v41 = vpop.f32.mrf.mxu3 }
 0x727   : > { %v4337_v14 = vsub.f32 0.0, %v4309_v13  ;;  %v3590_v13 = vadd.f32 %v9109_v28, %v9121_v32  ;;  %v3821_v8 = vadd.f32 %v9229_v43, %v3546_v7 }
 0x728   : > { %v4338_v21 = vsub.f32 0.0, %v4310_v52  ;;  %4655 = vmatpush.bf16.msra.mxu0 %v6286_v57 }
 0x729   : > { %v6682_v12 = vpop.eup %6681  ;;  %v4381_v29 = vmul.f32 1.442695, %v4337_v14  ;;  %v3822_v60 = vadd.f32 %v9231_v55, %v3590_v13 }
 0x72a   : > { %v4383_v42 = vmul.f32 1.442695, %v4338_v21  ;;  %v4419_v54 = vadd.f32 1.0, %v6682_v12  ;;  %v4202_v15 = vpop.f32.mrf.mxu0  ;;  %v6684_v39 = vpop.eup %6683 }
 0x72b   : > { %v4246_v58 = vpop.f32.mrf.mxu1  ;;  %6689 = vpow2.f32 %v4381_v29  ;;  %v4277_v48 = vadd.f32 %v4202_v15, %v4054_v17  ;;  %v4420_v30 = vadd.f32 1.0, %v6684_v39  ;;  %v9339_v31 = vpop.eup %6685  ;;  %v4058_v15 = vadd.f32 %v3984_v1, %v3821_v8 }
 0x72c   : > { %v4278_v47 = vadd.f32 %v4246_v58, %v4055_v50  ;;  %6691 = vrcp.f32 %v4419_v54  ;;  %v9341_v38 = vpop.eup %6687  ;;  %v4059_v43 = vadd.f32 %v4028_v41, %v3822_v60  ;;  %4656 = vmatpush.bf16.msra.mxu0 %v6285_v18 }
 0x72d   : > { %6693 = vpow2.f32 %v4383_v42  ;;  %v4311_v34 = vadd.f32 %v9250_v11, %v4277_v48 }
 0x72e   : > { %v4312_v24 = vadd.f32 %v9252_v10, %v4278_v47  ;;  %6695 = vrcp.f32 %v4420_v30 }
 0x72f   : > { %v4339_v26 = vsub.f32 0.0, %v4311_v34 }
 0x730   : > { %v4340_v56 = vsub.f32 0.0, %v4312_v24  ;;  %4657 = vmatpush.bf16.msra.mxu0 %v6284_v19 }
 0x731   : > { %v6690_v20 = vpop.eup %6689  ;;  %v4385_v4 = vmul.f32 1.442695, %v4339_v26 }
 0x732   : > { %v4387_v16 = vmul.f32 1.442695, %v4340_v56  ;;  %v9345_v63 = vpop.eup %6691  ;;  %v4205_v52 = vpop.f32.mrf.mxu0  ;;  %v4421_v37 = vadd.f32 1.0, %v6690_v20 }
 0x733   : > { %v4249_v61 = vpop.f32.mrf.mxu1  ;;  %v6694_v14 = vpop.eup %6693  ;;  %6697 = vpow2.f32 %v4385_v4  ;;  %v4279_v21 = vadd.f32 %v4205_v52, %v4056_v9  ;;  %v4472_v12 = vpack.c.bf16 %v9345_v63, %v9339_v31  ;;  %v6282_v31 = vld [vmem:[%s9636_s7] sm:$0xff] }
 0x734   : > { %v4280_v17 = vadd.f32 %v4249_v61, %v4057_v45  ;;  %v9353_v36 = vpop.eup %6695  ;;  %6699 = vpow2.f32 %v4387_v16  ;;  %v4422_v42 = vadd.f32 1.0, %v6694_v14  ;;  %v3987_v16 = vpop.f32.mrf.mxu2 }
 0x735   : > { %v4313_v28 = vadd.f32 %v9250_v11, %v4279_v21  ;;  %v4473_v29 = vpack.c.bf16 %v9353_v36, %v9341_v38  ;;  %6701 = vrcp.f32 %v4421_v37  ;;  %v4031_v9 = vpop.f32.mrf.mxu3  ;;  %v6302_v36 = vld [vmem:[%s9638_s9 + $0x40] sm:$0xff] }
 0x736   : > { %v4314_v32 = vadd.f32 %v9252_v10, %v4280_v17  ;;  %6703 = vrcp.f32 %v4422_v42  ;;  %v4060_v17 = vadd.f32 %v3987_v16, %v9234_v33  ;;  %v4061_v1 = vadd.f32 %v4031_v9, %v9237_v2 }
 0x737   : > { %v4341_v50 = vsub.f32 0.0, %v4313_v28 }
 0x738   : > { %v4342_v54 = vsub.f32 0.0, %v4314_v32 }
 0x739   : > { %v6698_v58 = vpop.eup %6697  ;;  %v4389_v39 = vmul.f32 1.442695, %v4341_v50 }
 0x73a   : > { %v4391_v48 = vmul.f32 1.442695, %v4342_v54  ;;  %v4423_v55 = vadd.f32 1.0, %v6698_v58  ;;  %v4207_v47 = vpop.f32.mrf.mxu0  ;;  %v6700_v34 = vpop.eup %6699 }
 0x73b   : > { %v4251_v30 = vpop.f32.mrf.mxu1  ;;  %6705 = vpow2.f32 %v4389_v39  ;;  %v4281_v24 = vadd.f32 %v4207_v47, %v4058_v15  ;;  %v4424_v56 = vadd.f32 1.0, %v6700_v34  ;;  %v9363_v45 = vpop.eup %6701 }
 0x73c   : > { %v4282_v26 = vadd.f32 %v4251_v30, %v4059_v43  ;;  %6707 = vrcp.f32 %v4423_v55  ;;  %v9365_v52 = vpop.eup %6703 }
 0x73d   : > { %6709 = vpow2.f32 %v4391_v48  ;;  %v4315_v20 = vadd.f32 %v9250_v11, %v4281_v24  ;;  %v3989_v48 = vpop.f32.mrf.mxu2  ;;  %v4033_v43 = vpop.f32.mrf.mxu3 }
 0x73e   : > { %v4316_v4 = vadd.f32 %v9252_v10, %v4282_v26  ;;  %6711 = vrcp.f32 %v4424_v56  ;;  %v4062_v34 = vadd.f32 %v3989_v48, %v9243_v5  ;;  %v4063_v24 = vadd.f32 %v4033_v43, %v9245_v3 }
 0x73f   : > { %v4343_v7 = vsub.f32 0.0, %v4315_v20 }
 0x740   : > { %v4344_v13 = vsub.f32 0.0, %v4316_v4 }
 0x741   : > { %v6706_v61 = vpop.eup %6705  ;;  %v4393_v14 = vmul.f32 1.442695, %v4343_v7 }
 0x742   : > { %v4395_v21 = vmul.f32 1.442695, %v4344_v13  ;;  %v9369_v41 = vpop.eup %6707  ;;  %v4210_v8 = vpop.f32.mrf.mxu0  ;;  %v4425_v15 = vadd.f32 1.0, %v6706_v61 }
 0x743   : > { %v4254_v60 = vpop.f32.mrf.mxu1  ;;  %v6710_v37 = vpop.eup %6709  ;;  %6713 = vpow2.f32 %v4393_v14  ;;  %v4283_v28 = vadd.f32 %v4210_v8, %v4060_v17  ;;  %v4474_v42 = vpack.c.bf16 %v9369_v41, %v9363_v45 }
 0x744   : > { %v4284_v32 = vadd.f32 %v4254_v60, %v4061_v1  ;;  %v9373_v50 = vpop.eup %6711  ;;  %6715 = vpow2.f32 %v4395_v21  ;;  %v4426_v58 = vadd.f32 1.0, %v6710_v37 }
 0x745   : > { %v4317_v54 = vadd.f32 %v9250_v11, %v4283_v28  ;;  %v4475_v2 = vpack.c.bf16 %v9373_v50, %v9365_v52  ;;  %6717 = vrcp.f32 %v4425_v15 }
 0x746   : > { %v4318_v33 = vadd.f32 %v9252_v10, %v4284_v32  ;;  %6719 = vrcp.f32 %v4426_v58 }
 0x747   : > { %v4345_v39 = vsub.f32 0.0, %v4317_v54 }
 0x748   : > { %v4346_v55 = vsub.f32 0.0, %v4318_v33 }
 0x749   : > { %v6714_v47 = vpop.eup %6713  ;;  %v4397_v30 = vmul.f32 1.442695, %v4345_v39 }
 0x74a   : > { %v4427_v26 = vadd.f32 1.0, %v6714_v47  ;;  %v4212_v56 = vpop.f32.mrf.mxu0  ;;  %v6716_v4 = vpop.eup %6715  ;;  %v4399_v13 = vmul.f32 1.442695, %v4346_v55 }
 0x74b   : > { %v4256_v20 = vpop.f32.mrf.mxu1  ;;  %v4285_v16 = vadd.f32 %v4212_v56, %v4062_v34  ;;  %v4428_v7 = vadd.f32 1.0, %v6716_v4  ;;  %v6718_v3 = vpop.eup %6717 }
 0x74c   : > { %v4286_v9 = vadd.f32 %v4256_v20, %v4063_v24  ;;  %6721 = vrcp.f32 %v4427_v26  ;;  %v6720_v17 = vpop.eup %6719 }
 0x74d   : > { %6723 = vpow2.f32 %v4397_v30  ;;  %v4319_v61 = vadd.f32 %v9250_v11, %v4285_v16 }
 0x74e   : > { %v4320_v14 = vadd.f32 %v9252_v10, %v4286_v9  ;;  %6725 = vrcp.f32 %v4428_v7 }
 0x74f   : > { %v4347_v5 = vsub.f32 0.0, %v4319_v61  ;;  %6727 = vpow2.f32 %v4399_v13  ;;  %v6301_v13 = vld [vmem:[%s9638_s9 + $0x38] sm:$0xff]  ;;  %v6308_v61 = vld [vmem:[%s9638_s9 + $0x70] sm:$0xff] }
 0x750   : > { %v4348_v21 = vsub.f32 0.0, %v4320_v14  ;;  %v6300_v14 = vld [vmem:[%s9638_s9 + $0x30] sm:$0xff] }
 0x751   : > { %v4401_v1 = vmul.f32 1.442695, %v4347_v5  ;;  %v6307_v5 = vld [vmem:[%s9638_s9 + $0x68] sm:$0xff] }
 0x752   : > { %v4403_v8 = vmul.f32 1.442695, %v4348_v21  ;;  %v6722_v60 = vpop.eup %6721  ;;  %v6299_v21 = vld [vmem:[%s9638_s9 + $0x28] sm:$0xff] }
 0x753   : > { %v6724_v37 = vpop.eup %6723  ;;  %6729 = vpow2.f32 %v4401_v1  ;;  %v4476_v28 = vpack.c.bf16 %v6722_v60, %v6718_v3  ;;  %v6298_v3 = vld [vmem:[%s9638_s9 + $0x20] sm:$0xff]  ;;  %v6297_v1 = vld [vmem:[%s9638_s9 + $0x18] sm:$0xff] }
 0x754   : > { %v6726_v32 = vpop.eup %6725  ;;  %6731 = vpow2.f32 %v4403_v8  ;;  %v4429_v15 = vadd.f32 1.0, %v6724_v37  ;;  %v6296_v8 = vld [vmem:[%s9638_s9 + $0x10] sm:$0xff]  ;;  %v6305_v60 = vld [vmem:[%s9638_s9 + $0x58] sm:$0xff] }
 0x755   : > { %v4477_v54 = vpack.c.bf16 %v6726_v32, %v6720_v17  ;;  %v6728_v33 = vpop.eup %6727  ;;  %v6306_v17 = vld [vmem:[%s9638_s9 + $0x60] sm:$0xff]  ;;  %v6304_v37 = vld [vmem:[%s9638_s9 + $0x50] sm:$0xff] }
 0x756   : > { %v4430_v58 = vadd.f32 1.0, %v6728_v33  ;;  %6733 = vrcp.f32 %v4429_v15  ;;  %v6294_v32 = vld [vmem:[%s9638_s9] sm:$0xff] }
 0x759   : > { %v6730_v11 = vpop.eup %6729 }
 0x75a   : > { %v4431_v10 = vadd.f32 1.0, %v6730_v11  ;;  %v6732_v39 = vpop.eup %6731  ;;  %v6317_v11 = vld [vmem:[%s9638_s9 + $0xb8] sm:$0xff] }
 0x75b   : > { %v4432_v48 = vadd.f32 1.0, %v6732_v39  ;;  %v6315_v39 = vld [vmem:[%s9638_s9 + $0xa8] sm:$0xff] }
 0x75c   : > { %6735 = vrcp.f32 %v4431_v10  ;;  %v6734_v43 = vpop.eup %6733 }
 0x75d   : > { %6737 = vrcp.f32 %v4430_v58  ;;  %v6316_v58 = vld [vmem:[%s9638_s9 + $0xb0] sm:$0xff] }
 0x75e   : > { %6739 = vrcp.f32 %v4432_v48 }
 0x762   : > { %v6736_v55 = vpop.eup %6735 }
 0x763   : > { %v6738_v47 = vpop.eup %6737  ;;  %v4478_v30 = vpack.c.bf16 %v6736_v55, %v6734_v43 }
 0x764   : > { %v6740_v34 = vpop.eup %6739 }
 0x765   : > { %v4504_v24 = vsel %vm1905_vm4, %v4478_v30, 0  ;;  %v4479_v26 = vpack.c.bf16 %v6740_v34, %v6738_v47  ;;  %v6314_v47 = vld [vmem:[%s9638_s9 + $0xa0] sm:$0xff]  ;;  %v6313_v30 = vld [vmem:[%s9638_s9 + $0x98] sm:$0xff] }
 0x766   : > { %4510 = vmatpush.bf16.msrb.mxu2 %v4504_v24 }
 0x767   : > { %v4507_v56 = vsel %vm1905_vm4, %v4479_v26, 0 }
 0x768   : > { %4533 = vmatpush.bf16.msrb.mxu3 %v4507_v56  ;;  %v6312_v56 = vld [vmem:[%s9638_s9 + $0x90] sm:$0xff] }
 0x76a   : > { %4511 = vmatpush.bf16.msrb.mxu2 %v4476_v28  ;;  %v6295_v28 = vld [vmem:[%s9638_s9 + $0x8] sm:$0xff] }
 0x76c   : > { %4534 = vmatpush.bf16.msrb.mxu3 %v4477_v54  ;;  %v6318_v54 = vld [vmem:[%s9638_s9 + $0xc0] sm:$0xff] }
 0x76d   : > { %4983 = vmatpush.bf16.msrb.mxu0 %v6318_v54 }
 0x76e   : > { %4512 = vmatpush.bf16.msrb.mxu2 %v4474_v42 }
 0x770   : > { %4535 = vmatpush.bf16.msrb.mxu3 %v4475_v2 }
 0x771   : > { %4984 = vmatpush.bf16.msrb.mxu0 %v6317_v11 }
 0x772   : > { %4513 = vmatpush.bf16.msrb.mxu2 %v4472_v12  ;;  %v6303_v12 = vld [vmem:[%s9638_s9 + $0x48] sm:$0xff] }
 0x774   : > { %4536 = vmatpush.bf16.msrb.mxu3 %v4473_v29 }
 0x775   : > { %4985 = vmatpush.bf16.msrb.mxu0 %v6316_v58 }
 0x776   : > { %4514 = vmatpush.bf16.msrb.mxu2 %v4470_v59 }
 0x778   : > { %4537 = vmatpush.bf16.msrb.mxu3 %v4471_v22 }
 0x779   : > { %4986 = vmatpush.bf16.msrb.mxu0 %v6315_v39  ;;  %v5105_v39 = vld [vmem:[%s9642_s13 + $0x28] sm:$0x3] }
 0x77a   : > { %4515 = vmatpush.bf16.msrb.mxu2 %v4468_v40 }
 0x77c   : > { %4538 = vmatpush.bf16.msrb.mxu3 %v4469_v49  ;;  %v6292_v49 = vld [vmem:[%s9637_s8 + $0x40] sm:$0xff] }
 0x77d   : > { %4680 = vmatpush.bf16.msra.mxu1 %v6292_v49  ;;  %4987 = vmatpush.bf16.msrb.mxu0 %v6314_v47  ;;  %v6330_v47 = vld [vmem:[%s9642_s13 + $0x20] sm:$0xff] }
 0x77e   : > { %4516 = vmatpush.bf16.msrb.mxu2 %v4466_v27  ;;  %v6283_v27 = vld [vmem:[%s9636_s7 + $0x8] sm:$0xff] }
 0x780   : > { %4539 = vmatpush.bf16.msrb.mxu3 %v4467_v53  ;;  %v4465_v53 = vld [vmem:[%s9636_s7 + $0x10] sm:$0xf] }
 0x781   : > { %5940 = vmatmul.msk.bf16.vlgmr.msrb.gmra.mxu2 %vm4493_vm10, %v6282_v31  ;;  %v4489_v35 = vunpack.c.l.b16 %v4465_v53 }
 0x782   : > { %4865 = vmatpush.bf16.msra.mxu2 %v6308_v61  ;;  %v6320_v61 = vld [vmem:[%s9640_s11 + $0x8] sm:$0xff] }
 0x783   : > { %5943 = vmatmul.msk.bf16.vlgmr.msrb.gmra.mxu3 %vm4493_vm10, %v6282_v31  ;;  %v4492_v40 = vpack.c.b16 %v4489_v35, %v4489_v35  ;;  %v6309_v35 = vld [vmem:[%s9638_s9 + $0x78] sm:$0xff] }
 0x784   : > { %4761 = vmatpush.bf16.msra.mxu3 %v6303_v12  ;;  %v5019_v12 = vld [vmem:[%s9640_s11 + $0x38] sm:$0xf] }
 0x786   : > { %4866 = vmatpush.bf16.msra.mxu2 %v6307_v5  ;;  %v6319_v5 = vld [vmem:[%s9640_s11] sm:$0xff] }
 0x788   : > { %4762 = vmatpush.bf16.msra.mxu3 %v6302_v36  ;;  %v5053_v36 = vunpack.c.l.b16 %v5019_v12 }
 0x78a   : > { %4867 = vmatpush.bf16.msra.mxu2 %v6306_v17 }
 0x78c   : > { %4763 = vmatpush.bf16.msra.mxu3 %v6301_v13 }
 0x78e   : > { %4868 = vmatpush.bf16.msra.mxu2 %v6305_v60  ;;  %v6370_v60 = vld [vmem:[%s9639_s10] ss:$0 sm:$0xff] }
 0x790   : > { %4764 = vmatpush.bf16.msra.mxu3 %v6300_v14 }
 0x791   : > { %5941 = vmatmul.msk.bf16.gmra.mxu2 %vm4493_vm10, %v6283_v27 }
 0x792   : > { %4869 = vmatpush.bf16.msra.mxu2 %v6304_v37 }
 0x793   : > { %5944 = vmatmul.msk.bf16.gmra.mxu3 %vm4493_vm10, %v6283_v27 }
 0x794   : > { %4765 = vmatpush.bf16.msra.mxu3 %v6299_v21 }
 0x798   : > { %4807 = vmatpush.bf16.msrb.mxu3 %v6298_v3 }
 0x79c   : > { %4808 = vmatpush.bf16.msrb.mxu3 %v6297_v1 }
 0x7a0   : > { %4809 = vmatpush.bf16.msrb.mxu3 %v6296_v8 }
 0x7a1   : > { %5942 = vmatmul.msk.bf16.gmra.mxu2 %vm4493_vm10, %v4492_v40 }
 0x7a3   : > { %5945 = vmatmul.msk.bf16.gmra.mxu3 %vm4493_vm10, %v4492_v40 }
 0x7a4   : > { %4810 = vmatpush.bf16.msrb.mxu3 %v6295_v28 }
 0x7a8   : > { %4811 = vmatpush.bf16.msrb.mxu3 %v6294_v32 }
 0x804   : > { %v4518_v44 = vpop.f32.mrf.mxu2 }
 0x806   : > { %v4541_v59 = vpop.f32.mrf.mxu3 }
 0x80c   : > { %v4520_v51 = vpop.f32.mrf.mxu2 }
 0x80d   : > { %v4555_v22 = vpack.c.bf16 %v4520_v51, %v4518_v44 }
 0x80e   : > { %v4543_v38 = vpop.f32.mrf.mxu3 }
 0x80f   : > { %v4556_v63 = vpack.c.bf16 %v4543_v38, %v4541_v59  ;;  %4658 = vmatmul.bf16.vlgmr.msra.gmra.mxu0 %v4555_v22 }
 0x811   : > { %5986 = vmatmul.msk.bf16.vlgmr.msra.gmra.mxu1 %vm701_vm0, %v4556_v63 }
 0x814   : > { %v4523_v29 = vpop.f32.mrf.mxu2 }
 0x816   : > { %v4546_v45 = vpop.f32.mrf.mxu3 }
 0x81c   : > { %v4525_v52 = vpop.f32.mrf.mxu2 }
 0x81d   : > { %v4557_v41 = vpack.c.bf16 %v4525_v52, %v4523_v29  ;;  %v5061_v29 = vpack.c.b16 %v5053_v36, %v5053_v36 }
 0x81e   : > { %v4548_v42 = vpop.f32.mrf.mxu3 }
 0x81f   : > { %v4558_v50 = vpack.c.bf16 %v4548_v42, %v4546_v45  ;;  %4663 = vmatmul.bf16.gmra.mxu0 %v4557_v41  ;;  %v5074_v45 = vsel %vm3071_vm6, %v5061_v29, 0  ;;  %v6325_v41 = vld [vmem:[%s9640_s11 + $0x30] sm:$0xff]  ;;  %v6324_v42 = vld [vmem:[%s9640_s11 + $0x28] sm:$0xff] }
 0x820   : > { %5076 = vmatpush.bf16.msrb.mxu1 %v5074_v45 }
 0x821   : > { %5987 = vmatmul.msk.bf16.gmra.mxu1 %vm701_vm0, %v4558_v50 }
 0x824   : > { %v4528_v2 = vpop.f32.mrf.mxu2  ;;  %5077 = vmatpush.bf16.msrb.mxu1 %v6325_v41 }
 0x825   : > { %v4559_v4 = vpack.c.bf16 %v4528_v2, %v4528_v2 }
 0x826   : > { %v4551_v20 = vpop.f32.mrf.mxu3 }
 0x827   : > { %v4560_v9 = vpack.c.bf16 %v4551_v20, %v4551_v20  ;;  %v6323_v20 = vld [vmem:[%s9640_s11 + $0x20] sm:$0xff] }
 0x828   : > { %5078 = vmatpush.bf16.msrb.mxu1 %v6324_v42 }
 0x82c   : > { %v4530_v16 = vpop.f32.mrf.mxu2  ;;  %5079 = vmatpush.bf16.msrb.mxu1 %v6323_v20 }
 0x82e   : > { %v4553_v7 = vpop.f32.mrf.mxu3 }
 0x82f   : > { %4668 = vmatmul.bf16.gmra.mxu0 %v4559_v4  ;;  %v6322_v4 = vld [vmem:[%s9640_s11 + $0x18] sm:$0xff]  ;;  %v6321_v7 = vld [vmem:[%s9640_s11 + $0x10] sm:$0xff] }
 0x830   : > { %5080 = vmatpush.bf16.msrb.mxu1 %v6322_v4 }
 0x831   : > { %5988 = vmatmul.msk.bf16.gmra.mxu1 %vm701_vm0, %v4560_v9 }
 0x834   : > { %5081 = vmatpush.bf16.msrb.mxu1 %v6321_v7 }
 0x838   : > { %5082 = vmatpush.bf16.msrb.mxu1 %v6320_v61 }
 0x83c   : > { %5083 = vmatpush.bf16.msrb.mxu1 %v6319_v5 }
 0x88c   : > { %v4659_v33 = vpop.f32.mrf.mxu0 }
 0x88e   : > { %v4682_v15 = vpop.f32.mrf.mxu1 }
 0x88f   : > { %v4683_v62 = vadd.f32 %v4682_v15, %v4659_v33 }
 0x891   : > { %v4696_v53 = vmul.f32 0.25, %v4683_v62 }
 0x893   : > { %v4701_v40 = vpack.c.bf16 %v4696_v53, %v4696_v53 }
 0x894   : > { %v4661_v10 = vpop.f32.mrf.mxu0 }
 0x896   : > { %v4684_v48 = vpop.f32.mrf.mxu1 }
 0x897   : > { %v4685_v43 = vadd.f32 %v4684_v48, %v4661_v10  ;;  %v5131_v48 = vunpack.c.l.b16 %v5105_v39 }
 0x899   : > { %v4697_v55 = vmul.f32 0.25, %v4685_v43  ;;  %v5137_v43 = vpack.c.b16 %v5131_v48, %v5131_v48 }
 0x89b   : > { %v4712_v34 = vpack.c.bf16 %v4697_v55, %v4697_v55  ;;  %v5147_v55 = vsel %vm3339_vm8, %v5137_v43, 0 }
 0x89c   : > { %v4664_v24 = vpop.f32.mrf.mxu0  ;;  %5151 = vmatpush.bf16.msrb.mxu2 %v5147_v55 }
 0x89d   : > { %6019 = vmatmul.msk.bf16.vlgmr.msra.gmra.mxu3 %vm4754_vm11, %v4712_v34  ;;  %v6328_v34 = vld [vmem:[%s9642_s13 + $0x10] sm:$0xff] }
 0x89e   : > { %4924 = vmatpush.bf16.msra.mxu3 %v6313_v30  ;;  %v4687_v26 = vpop.f32.mrf.mxu1  ;;  %v6329_v30 = vld [vmem:[%s9642_s13 + $0x18] sm:$0xff] }
 0x89f   : > { %v4688_v31 = vadd.f32 %v4687_v26, %v4664_v24  ;;  %v6327_v24 = vld [vmem:[%s9642_s13 + $0x8] sm:$0xff]  ;;  %v6326_v26 = vld [vmem:[%s9642_s13] sm:$0xff] }
 0x8a0   : > { %5152 = vmatpush.bf16.msrb.mxu2 %v6330_v47 }
 0x8a1   : > { %v4698_v46 = vmul.f32 0.25, %v4688_v31 }
 0x8a2   : > { %4925 = vmatpush.bf16.msra.mxu3 %v6312_v56  ;;  %v6371_v56 = vld [vmem:[%s9641_s12] ss:$0 sm:$0xff] }
 0x8a3   : > { %v4817_v25 = vpack.c.bf16 %v4698_v46, %v4698_v46 }
 0x8a4   : > { %v4666_v27 = vpop.f32.mrf.mxu0  ;;  %5153 = vmatpush.bf16.msrb.mxu2 %v6329_v30 }
 0x8a5   : > { %6071 = vmatmul.msk.bf16.vlgmr.msra.gmra.mxu2 %vm4754_vm11, %v4817_v25 }
 0x8a6   : > { %4926 = vmatpush.bf16.msra.mxu3 %v6311_v0  ;;  %v4689_v23 = vpop.f32.mrf.mxu1 }
 0x8a7   : > { %v4690_v44 = vadd.f32 %v4689_v23, %v4666_v27 }
 0x8a8   : > { %5154 = vmatpush.bf16.msrb.mxu2 %v6328_v34 }
 0x8a9   : > { %v4699_v38 = vmul.f32 0.25, %v4690_v44 }
 0x8aa   : > { %4927 = vmatpush.bf16.msra.mxu3 %v6310_v6 }
 0x8ab   : > { %v4876_v63 = vpack.c.bf16 %v4699_v38, %v4699_v38 }
 0x8ac   : > { %v4669_v57 = vpop.f32.mrf.mxu0  ;;  %5155 = vmatpush.bf16.msrb.mxu2 %v6327_v24 }
 0x8ad   : > { %6040 = vmatmul.msk.bf16.vlgmr.msrb.gmra.mxu3 %vm4754_vm11, %v4701_v40 }
 0x8ae   : > { %4928 = vmatpush.bf16.msra.mxu3 %v6309_v35  ;;  %v4692_v49 = vpop.f32.mrf.mxu1  ;;  %v6372_v35 = vld [vmem:[%s9643_s14] ss:$0 sm:$0xff] }
 0x8af   : > { %v4693_v18 = vadd.f32 %v4692_v49, %v4669_v57 }
 0x8b0   : > { %5156 = vmatpush.bf16.msrb.mxu2 %v6326_v26 }
 0x8b1   : > { %v4700_v19 = vmul.f32 0.25, %v4693_v18 }
 0x8b3   : > { %v4935_v59 = vpack.c.bf16 %v4700_v19, %v4700_v19 }
 0x8b4   : > { %v4671_v51 = vpop.f32.mrf.mxu0 }
 0x8b5   : > { %6133 = vmatmul.msk.bf16.vlgmr.msrb.gmra.mxu0 %vm4754_vm11, %v4935_v59 }
 0x8b6   : > { %v4694_v22 = vpop.f32.mrf.mxu1 }
 0x8bd   : > { %6102 = vmatmul.msk.bf16.vlgmr.msra.gmra.mxu3 %vm4754_vm11, %v4876_v63 }
 0x920   : > { %v4767_v52 = vpop.f32.mrf.mxu3 }
 0x928   : > { %v4769_v50 = vpop.f32.mrf.mxu3  ;;  %v4871_v2 = vpop.f32.mrf.mxu2 }
 0x930   : > { %v4813_v16 = vpop.f32.mrf.mxu3  ;;  %v4873_v9 = vpop.f32.mrf.mxu2 }
 0x931   : > { %v4814_v3 = vadd.f32 %v4813_v16, %v4767_v52 }
 0x932   : > { %v4989_v13 = vpop.f32.mrf.mxu0 }
 0x933   : > { %v4875_v17 = vadd.f32 %v4871_v2, %v4814_v3 }
 0x938   : > { %v4815_v14 = vpop.f32.mrf.mxu3 }
 0x93a   : > { %v4991_v21 = vpop.f32.mrf.mxu0 }
 0x940   : > { %v4930_v1 = vpop.f32.mrf.mxu3 }
 0x941   : > { %v4934_v8 = vadd.f32 %v4930_v1, %v4875_v17 }
 0x943   : > { %v4993_v37 = vadd.f32 %v4989_v13, %v4934_v8 }
 0x945   : > { %v4998_v28 = vadd.f32 %v6370_v60, %v4993_v37 }
 0x947   : > { %v4999_v32 = vsub.f32 0.0, %v4998_v28 }
 0x948   : > { %v4932_v54 = vpop.f32.mrf.mxu3 }
 0x949   : > { %v5000_v33 = vmul.f32 1.442695, %v4999_v32 }
 0x94b   : > { %6741 = vpow2.f32 %v5000_v33 }
 0x951   : > { %v6742_v15 = vpop.eup %6741 }
 0x952   : > { %v5002_v11 = vadd.f32 1.0, %v6742_v15 }
 0x954   : > { %6743 = vrcp.f32 %v5002_v11 }
 0x95a   : > { %v6744_v58 = vpop.eup %6743 }
 0x95b   : > { %v5004_v10 = vpack.c.bf16 %v6744_v58, %v6744_v58 }
 0x95d   : > { %6162 = vmatmul.msk.bf16.vlgmr.msrb.gmra.mxu1 %vm5069_vm12, %v5004_v10 }
 0x9da   : > { %v5085_v31 = vpop.f32.mrf.mxu1 }
 0x9db   : > { %v5086_v46 = vadd.f32 %v6371_v56, %v5085_v31 }
 0x9dd   : > { %v5089_v0 = vsub.f32 0.0, %v5086_v46 }
 0x9df   : > { %v5090_v62 = vmul.f32 1.442695, %v5089_v0 }
 0x9e1   : > { %6745 = vpow2.f32 %v5090_v62 }
 0x9e2   : > { %v5087_v25 = vpop.f32.mrf.mxu1 }
 0x9e7   : > { %v6746_v27 = vpop.eup %6745 }
 0x9e8   : > { %v5092_v23 = vadd.f32 1.0, %v6746_v27 }
 0x9ea   : > { %6747 = vrcp.f32 %v5092_v23 }
 0x9f0   : > { %v6748_v6 = vpop.eup %6747 }
 0x9f1   : > { %v5094_v53 = vpack.c.bf16 %v6748_v6, %v6748_v6 }
 0x9f3   : > { %6183 = vmatmul.msk.bf16.vlgmr.msrb.gmra.mxu2 %vm3317_vm9, %v5094_v53 }
 0xa76   : > { %v5158_v40 = vpop.f32.mrf.mxu2 }
 0xa77   : > { %v5159_v57 = vadd.f32 %v6372_v35, %v5158_v40 }
 0xa79   : > { %5162 = vst [vmem:[%s488_s30] sm:$0xff] %v5159_v57 }
 0xa7a   : > { %6776 = shalt.err (!%p6773_p3)
}
 0xa7b   : > { %6331 = dma.vmem_to_hbm [thread:$0]  (%p6931_p5), %s5177_s16, 128, %s5179_s17, %s5164_s0  }
 0xa7e   : > { %v5160_v49 = vpop.f32.mrf.mxu2 }
 0xa7f PF: > { %s9892_s18 = sld [smem:[#allocation5_spill]]  ;;  %p6337_p4 = scmp.ge.s32.totalorder %s6811_s21, 2 }
 0xa81   : > { %p6334_p7 = pnand %p6337_p4, %p6935_p6 }
 0xa83   : > { %p6335_p8 = pneg %p6334_p7 }
 0xa85   : > { %s5190_s29 = sand.u32 1, %s9892_s18  }
 0xa86   : > { %s5191_s30 = scalar_lea.sflag [#allocation3], %s5190_s29 }
 0xa87   : > { %6794 = dma.done.wait (%p6335_p8), %s5191_s30, 128  }
 0xa88   : > { %6796 = vsyncadd (%p6335_p8), %s5191_s30, 4294967168  ;;  %s9894_s21 = sld [smem:[#allocation7_spill]]  ;;  %s9897_s18 = smov %s6803_s19 }
 0xa89   : > { %s9895_s1 = sld [smem:[#allocation6_spill]] }
 0xa8a   : > { %s9896_s20 = sld [smem:[#allocation8_spill]] }
 0xa8e   : > { %p25_p9 = scmp.ge.s32.totalorder %s9894_s21, 4  }
 0xa8f   : > { %s9898_s19 = smov %s9895_s1 }
 0xa90   :  { %27 = sbr.rel (!%p25_p9) target bundleno = 6 (0x6), region = 127 }
 0xa95   :  { %5197 = vsyncpa [#allocation3], 1 }
 0xa96   :  { %5199 = vsyncpa [#allocation3 + $0x1], 1 }

</bundles_post_ra>
